<compile_context>
chip_gen: v5e
topology: v5e:2x2
jax: 0.10.0
libtpu: 0.0.40
codegen_flags: <defaults>
</compile_context>

<pallas_src>
import functools
import numpy as np

import jax
import jax.numpy as jnp
from jax.experimental import pallas as pl
from jax.experimental.pallas import tpu as pltpu


# ---------------------------------------------------------------------------
# Fused Pallas kernel: embed + n_layers transformer encoder layers
# ---------------------------------------------------------------------------

def fused_encoder_kernel(patch_ref, wemb_ref, posb_ref,
                         wqkv_ref, bqkv_ref, wo_ref, w1_ref, b1_ref, w2_ref,
                         misc_ref, out_ref,
                         *, n_layers, n_heads, n_bin, mxu_dtype):
    """All tensors are token-major: rows = block_frames * n_bin.

    patch_ref : [rows, n_proc]        flattened unfolded spectrogram patches
    wemb_ref  : [n_proc, H]           conv∘tok_embedding∘scale folded matrix
    posb_ref  : [rows, H]             pos embedding + folded bias (pre-scaled)
    wqkv_ref  : [L, H, 3H]            fused, pre-transposed QKV weights
    bqkv_ref  : [L, 1, 3H]
    wo_ref    : [L, H, H]             pre-transposed output projection
    w1_ref    : [L, H, PF], b1_ref [L, 1, PF]
    w2_ref    : [L, PF, H]
    misc_ref  : [L, 4, H]             rows: bo, b2, gamma, beta (shared LN)
    out_ref   : [rows, H]
    """
    rows = patch_ref.shape[0]
    tb = rows // n_bin
    H = wo_ref.shape[-1]
    hd = H // n_heads
    inv_scale = 1.0 / (float(hd) ** 0.5)

    def mm(a, b):
        return jnp.dot(a.astype(mxu_dtype), b.astype(mxu_dtype),
                       preferred_element_type=jnp.float32)

    # --- embedding (conv + tok linear + scale + pos, all folded) ------------
    x = mm(patch_ref[...], wemb_ref[...]) + posb_ref[...]          # [rows, H]

    # --- transformer encoder layers (static in-kernel loop) ------------------
    for l in range(n_layers):
        wqkv = wqkv_ref[l]          # [H, 3H]
        bqkv = bqkv_ref[l]          # [1, 3H]
        wo = wo_ref[l]              # [H, H]
        w1 = w1_ref[l]              # [H, PF]
        b1 = b1_ref[l]              # [1, PF]
        w2 = w2_ref[l]              # [PF, H]
        misc = misc_ref[l]          # [4, H]
        bo, b2 = misc[0:1, :], misc[1:2, :]
        gamma, beta = misc[2:3, :], misc[3:4, :]

        def layer_norm(v, gamma=gamma, beta=beta):
            mean = jnp.mean(v, axis=-1, keepdims=True)
            cent = v - mean
            var = jnp.mean(cent * cent, axis=-1, keepdims=True)
            return cent * jax.lax.rsqrt(var + 1e-5) * gamma + beta

        # fused QKV projection: one [rows, H] @ [H, 3H] matmul
        qkv = mm(x, wqkv) + bqkv                                   # [rows, 3H]

        # multi-head self attention (per-frame sequence of n_bin tokens)
        attn = None
        for h in range(n_heads):                                   # static loop
            qh = qkv[:, h * hd:(h + 1) * hd].reshape(tb, n_bin, hd)
            kh = qkv[:, H + h * hd:H + (h + 1) * hd].reshape(tb, n_bin, hd)
            vh = qkv[:, 2 * H + h * hd:2 * H + (h + 1) * hd].reshape(tb, n_bin, hd)
            s = jnp.einsum('bqd,bkd->bqk',
                           qh.astype(mxu_dtype), kh.astype(mxu_dtype),
                           preferred_element_type=jnp.float32) * inv_scale
            s = s - jnp.max(s, axis=-1, keepdims=True)
            p = jnp.exp(s)
            p = p * pl.reciprocal(jnp.sum(p, axis=-1, keepdims=True), approx=True)
            ctx = jnp.einsum('bqk,bkd->bqd',
                             p.astype(mxu_dtype), vh.astype(mxu_dtype),
                             preferred_element_type=jnp.float32)
            # accumulate output projection per head (no lane concat)
            part = mm(ctx.reshape(rows, hd), wo[h * hd:(h + 1) * hd, :])
            attn = part if attn is None else attn + part

        y = layer_norm(x + attn + bo)

        # position-wise feed-forward
        hdn = jnp.maximum(mm(y, w1) + b1, 0.0)
        f = mm(hdn, w2) + b2
        x = layer_norm(y + f)

    out_ref[...] = x.astype(out_ref.dtype)


# ---------------------------------------------------------------------------
# Host-side glue: unfold, parameter folding / stacking, pallas_call plumbing
# ---------------------------------------------------------------------------

def unfold_and_patch(spec, n_proc):
    """spec [B, n_bin, T] -> patches [B*n_frame, n_bin, n_proc] (torch.unfold + permute)."""
    B, nb, T = spec.shape
    n_frame = T - n_proc + 1
    idx = jnp.arange(n_frame)[:, None] + jnp.arange(n_proc)[None, :]
    w = spec[:, :, idx]                              # [B, nb, n_frame, n_proc]
    w = jnp.transpose(w, (0, 2, 1, 3))               # [B, n_frame, nb, n_proc]
    return w.reshape(B * n_frame, nb, n_proc)


def build_conv_matrix(conv_w, conv_b, n_proc):
    """Conv2d(1, C, (1, K)) over the width axis == patch @ M + b_eff.

    Output feature ordering matches PyTorch's permute(0,2,1,3).reshape:
    index d = c * Wout + w.
    """
    conv_w = np.asarray(conv_w)
    conv_b = np.asarray(conv_b)
    C, _, _, K = conv_w.shape
    Wout = n_proc - K + 1
    cnn_dim = C * Wout
    M = np.zeros((n_proc, cnn_dim), dtype=np.float32)
    for c in range(C):
        for w in range(Wout):
            for kk in range(K):
                M[w + kk, c * Wout + w] += conv_w[c, 0, 0, kk]
    b = np.repeat(conv_b, Wout).astype(np.float32)   # b[c*Wout + w] = conv_b[c]
    return jnp.asarray(M), jnp.asarray(b).reshape(1, cnn_dim)


def prepare_kernel_params(params, cfg, block_frames, mxu_dtype=jnp.float32):
    """Fold / transpose / stack PyTorch-layout params into kernel layout."""
    hid = cfg["hid_dim"]
    n_proc = cfg["n_proc"]

    conv_mat, conv_bias = build_conv_matrix(params["conv_w"], params["conv_b"], n_proc)
    scale = float(hid) ** 0.5
    tok_wT = params["tok_w"].T                                   # [cnn_dim, hid]
    w_embed = (conv_mat @ tok_wT) * scale                        # [n_proc, hid]
    b_embed = (conv_bias @ tok_wT + params["tok_b"]) * scale     # [1, hid]
    posb = jnp.tile(params["pos_emb"], (block_frames, 1)) + b_embed   # [rows, hid]

    layers = params["layers"]
    wqkv = jnp.stack([jnp.concatenate([lp["wq"].T, lp["wk"].T, lp["wv"].T], axis=1)
                      for lp in layers])                         # [L, hid, 3hid]
    bqkv = jnp.stack([jnp.concatenate([lp["bq"], lp["bk"], lp["bv"]], axis=1)
                      for lp in layers])                         # [L, 1, 3hid]
    wo = jnp.stack([lp["wo"].T for lp in layers])                # [L, hid, hid]
    w1 = jnp.stack([lp["w1"].T for lp in layers])                # [L, hid, pf]
    b1 = jnp.stack([lp["b1"] for lp in layers])                  # [L, 1, pf]
    w2 = jnp.stack([lp["w2"].T for lp in layers])                # [L, pf, hid]
    misc = jnp.stack([jnp.concatenate([lp["bo"], lp["b2"], lp["gamma"], lp["beta"]],
                                      axis=0) for lp in layers])  # [L, 4, hid]

    cast = lambda a: a.astype(mxu_dtype)
    return dict(w_embed=cast(w_embed), posb=posb.astype(jnp.float32),
                wqkv=cast(wqkv), bqkv=bqkv.astype(jnp.float32),
                wo=cast(wo), w1=cast(w1), b1=b1.astype(jnp.float32),
                w2=cast(w2), misc=misc.astype(jnp.float32))


def _pick_block_frames(n_frames_total, n_bin, target_rows=512):
    """Rows per grid step ~= target_rows, but keep >=2 grid steps (v7x megacore)."""
    tb = max(1, target_rows // max(n_bin, 1))
    if n_frames_total >= 2:
        tb = min(tb, pl.cdiv(n_frames_total, 2))
    tb = min(tb, n_frames_total)
    # keep the sublane dimension of the block a multiple of 8 when possible
    while (tb * n_bin) % 8 != 0 and tb < n_frames_total:
        tb += 1
    return tb


def pallas_encoder_forward(spec, params, cfg, block_frames=None,
                           mxu_dtype=jnp.float32):
    """mxu_dtype=jnp.bfloat16 recommended on v6e/v7x (f32 accumulation kept)."""
    n_proc = cfg["n_proc"]
    nb, hid, pf, nh, L = (cfg["n_bin"], cfg["hid_dim"], cfg["pf_dim"],
                          cfg["n_heads"], cfg["n_layers"])
    B = spec.shape[0]
    n_frame = spec.shape[2] - n_proc + 1
    N = B * n_frame

    if block_frames is None:
        block_frames = _pick_block_frames(N, nb)
    tb = block_frames
    G = pl.cdiv(N, tb)
    N_pad = G * tb
    rows = tb * nb

    kp = prepare_kernel_params(params, cfg, tb, mxu_dtype)

    # [N, nb, n_proc] -> token-major [N*nb, n_proc]; pad frames to fill the grid
    patches = unfold_and_patch(spec, n_proc).reshape(N * nb, n_proc)
    if N_pad != N:
        patches = jnp.pad(patches, ((0, (N_pad - N) * nb), (0, 0)))
    patches = patches.astype(mxu_dtype)

    const3 = lambda i: (0, 0, 0)
    fused = pl.pallas_call(
        functools.partial(fused_encoder_kernel, n_layers=L, n_heads=nh,
                          n_bin=nb, mxu_dtype=mxu_dtype),
        out_shape=jax.ShapeDtypeStruct((N_pad * nb, hid), jnp.float32),
        grid=(G,),
        in_specs=[
            pl.BlockSpec((rows, n_proc), lambda i: (i, 0)),       # patches
            pl.BlockSpec((n_proc, hid), lambda i: (0, 0)),        # w_embed
            pl.BlockSpec((rows, hid), lambda i: (0, 0)),          # posb
            pl.BlockSpec((L, hid, 3 * hid), const3),              # wqkv
            pl.BlockSpec((L, 1, 3 * hid), const3),                # bqkv
            pl.BlockSpec((L, hid, hid), const3),                  # wo
            pl.BlockSpec((L, hid, pf), const3),                   # w1
            pl.BlockSpec((L, 1, pf), const3),                     # b1
            pl.BlockSpec((L, pf, hid), const3),                   # w2
            pl.BlockSpec((L, 4, hid), const3),                    # bo/b2/gamma/beta
        ],
        out_specs=pl.BlockSpec((rows, hid), lambda i: (i, 0)),
        compiler_params=pltpu.CompilerParams(
            dimension_semantics=("parallel",)),
    )
    out = fused(patches, kp["w_embed"], kp["posb"], kp["wqkv"], kp["bqkv"],
                kp["wo"], kp["w1"], kp["b1"], kp["w2"], kp["misc"])
    return out[: N * nb].reshape(B, n_frame, nb, hid)


# ---------------------------------------------------------------------------
# Pure-JAX reference (mirrors PyTorch forward exactly, for validation)
# ---------------------------------------------------------------------------

def _ref_layer(x, p, n_heads):
    H = x.shape[-1]
    hd = H // n_heads
    N, S, _ = x.shape

    def lin(v, w, b):
        return v @ w.T + b[0]

    q = lin(x, p["wq"], p["bq"]).reshape(N, S, n_heads, hd).transpose(0, 2, 1, 3)
    k = lin(x, p["wk"], p["bk"]).reshape(N, S, n_heads, hd).transpose(0, 2, 1, 3)
    v = lin(x, p["wv"], p["bv"]).reshape(N, S, n_heads, hd).transpose(0, 2, 1, 3)
    e = jnp.einsum('bnqd,bnkd->bnqk', q, k) / (float(hd) ** 0.5)
    a = jax.nn.softmax(e, axis=-1)
    ctx = jnp.einsum('bnqk,bnkd->bnqd', a, v).transpose(0, 2, 1, 3).reshape(N, S, H)
    attn_out = lin(ctx, p["wo"], p["bo"])

    def ln(v):
        m = jnp.mean(v, -1, keepdims=True)
        var = jnp.mean((v - m) ** 2, -1, keepdims=True)
        return (v - m) / jnp.sqrt(var + 1e-5) * p["gamma"][0] + p["beta"][0]

    y = ln(x + attn_out)
    f = lin(jnp.maximum(lin(y, p["w1"], p["b1"]), 0.0), p["w2"], p["b2"])
    return ln(y + f)


def reference_forward(spec, params, cfg):
    n_proc, nb, hid = cfg["n_proc"], cfg["n_bin"], cfg["hid_dim"]
    C, K = cfg["cnn_channel"], cfg["cnn_kernel"]
    B = spec.shape[0]
    n_frame = spec.shape[2] - n_proc + 1
    Wout = n_proc - K + 1

    x = unfold_and_patch(spec, n_proc)               # [N, nb, n_proc]
    wconv, bconv = params["conv_w"], params["conv_b"]
    conv = jnp.stack(
        [sum(wconv[c, 0, 0, kk] * x[:, :, kk:kk + Wout] for kk in range(K)) + bconv[c]
         for c in range(C)], axis=2)                 # [N, nb, C, Wout]
    feat = conv.reshape(B * n_frame, nb, C * Wout)
    emb = feat @ params["tok_w"].T + params["tok_b"][0]
    h = emb * (float(hid) ** 0.5) + params["pos_emb"][None]
    for lp in params["layers"]:
        h = _ref_layer(h, lp, cfg["n_heads"])
    return h.reshape(B, n_frame, nb, hid)


# ---------------------------------------------------------------------------
# Deterministic parameter init (PyTorch-style layouts)
# ---------------------------------------------------------------------------

def init_params(key, cfg):
    hid, pf = cfg["hid_dim"], cfg["pf_dim"]
    C, K = cfg["cnn_channel"], cfg["cnn_kernel"]
    n_proc, nb, nl = cfg["n_proc"], cfg["n_bin"], cfg["n_layers"]
    cnn_dim = C * (n_proc - (K - 1))

    keys = jax.random.split(key, 8 + nl)

    def nrm(k, shape, s=0.1):
        return (s * jax.random.normal(k, shape)).astype(jnp.float32)

    conv_w = nrm(keys[0], (C, 1, 1, K))
    conv_b = nrm(keys[1], (C,), 0.05)
    tok_w = nrm(keys[2], (hid, cnn_dim))
    tok_b = nrm(keys[3], (1, hid), 0.05)
    pos_emb = nrm(keys[4], (nb, hid))

    layers = []
    for li in range(nl):
        lk = jax.random.split(keys[8 + li], 12)
        layers.append(dict(
            wq=nrm(lk[0], (hid, hid)), bq=nrm(lk[1], (1, hid), 0.05),
            wk=nrm(lk[2], (hid, hid)), bk=nrm(lk[3], (1, hid), 0.05),
            wv=nrm(lk[4], (hid, hid)), bv=nrm(lk[5], (1, hid), 0.05),
            wo=nrm(lk[6], (hid, hid)), bo=nrm(lk[7], (1, hid), 0.05),
            gamma=jnp.ones((1, hid), jnp.float32),
            beta=jnp.zeros((1, hid), jnp.float32),
            w1=nrm(lk[8], (pf, hid)), b1=nrm(lk[9], (1, pf), 0.05),
            w2=nrm(lk[10], (hid, pf)), b2=nrm(lk[11], (1, hid), 0.05)))

    return dict(conv_w=conv_w, conv_b=conv_b,
                tok_w=tok_w, tok_b=tok_b, pos_emb=pos_emb, layers=layers)


# ---------------------------------------------------------------------------
# Main
# ---------------------------------------------------------------------------

if __name__ == "__main__":
    cfg = dict(
        n_frame=6, n_bin=8, cnn_channel=4, cnn_kernel=3, hid_dim=32,
        n_margin=2, n_layers=2, n_heads=4, pf_dim=64, dropout=0.1,
    )
    cfg["n_proc"] = cfg["n_margin"] * 2 + 1          # 5
    cfg["cnn_dim"] = cfg["cnn_channel"] * (cfg["n_proc"] - (cfg["cnn_kernel"] - 1))

    root = jax.random.PRNGKey(0)
    k_params, k_input = jax.random.split(root)
    params = init_params(k_params, cfg)

    B = 2
    T = cfg["n_frame"] + cfg["n_proc"] - 1           # 10
    spec = jax.random.normal(k_input, (B, cfg["n_bin"], T), dtype=jnp.float32)

    # f32 validation run; set mxu_dtype=jnp.bfloat16 on v6e/v7x for production.
    out = pallas_encoder_forward(spec, params, cfg, mxu_dtype=jnp.float32)
    out = jax.block_until_ready(out)

    assert out.shape == (B, cfg["n_frame"], cfg["n_bin"], cfg["hid_dim"]), out.shape
    ref = reference_forward(spec, params, cfg)
    max_err = float(jnp.max(jnp.abs(out - ref)))
    assert max_err < 5e-2, f"mismatch vs reference: {max_err}"

    print("KERNEL_OK")
</pallas_src>

<mosaic_0001>
module attributes {stable_mosaic.version = 11 : i64} {
  func.func @fused_encoder_kernel(%arg0: i32, %arg1: memref<48x5xf32, #tpu.memory_space<vmem>>, %arg2: memref<5x32xf32, #tpu.memory_space<vmem>>, %arg3: memref<48x32xf32, #tpu.memory_space<vmem>>, %arg4: memref<2x32x96xf32, #tpu.memory_space<vmem>>, %arg5: memref<2x1x96xf32, #tpu.memory_space<vmem>>, %arg6: memref<2x32x32xf32, #tpu.memory_space<vmem>>, %arg7: memref<2x32x64xf32, #tpu.memory_space<vmem>>, %arg8: memref<2x1x64xf32, #tpu.memory_space<vmem>>, %arg9: memref<2x64x32xf32, #tpu.memory_space<vmem>>, %arg10: memref<2x4x32xf32, #tpu.memory_space<vmem>>, %arg11: memref<48x32xf32, #tpu.memory_space<vmem>>) attributes {dimension_semantics = [#tpu.dimension_semantics<parallel>], iteration_bounds = array<i64: 2>, scalar_prefetch = 0 : i64, scratch_operands = 0 : i64, tpu.core_type = #tpu.core_type<tc>, window_params = [{transform_indices = @transform_0, window_bounds = array<i64: 48, 5>}, {pipeline_mode = #tpu.pipeline_mode<synchronous>, transform_indices = @transform_1, window_bounds = array<i64: 5, 32>}, {pipeline_mode = #tpu.pipeline_mode<synchronous>, transform_indices = @transform_2, window_bounds = array<i64: 48, 32>}, {pipeline_mode = #tpu.pipeline_mode<synchronous>, transform_indices = @transform_3, window_bounds = array<i64: 2, 32, 96>}, {pipeline_mode = #tpu.pipeline_mode<synchronous>, transform_indices = @transform_4, window_bounds = array<i64: 2, 1, 96>}, {pipeline_mode = #tpu.pipeline_mode<synchronous>, transform_indices = @transform_5, window_bounds = array<i64: 2, 32, 32>}, {pipeline_mode = #tpu.pipeline_mode<synchronous>, transform_indices = @transform_6, window_bounds = array<i64: 2, 32, 64>}, {pipeline_mode = #tpu.pipeline_mode<synchronous>, transform_indices = @transform_7, window_bounds = array<i64: 2, 1, 64>}, {pipeline_mode = #tpu.pipeline_mode<synchronous>, transform_indices = @transform_8, window_bounds = array<i64: 2, 64, 32>}, {pipeline_mode = #tpu.pipeline_mode<synchronous>, transform_indices = @transform_9, window_bounds = array<i64: 2, 4, 32>}, {transform_indices = @transform_10, window_bounds = array<i64: 48, 32>}]} {
    %c0 = arith.constant 0 : index
    %c0_0 = arith.constant 0 : index
    %0 = vector.load %arg1[%c0, %c0_0] : memref<48x5xf32, #tpu.memory_space<vmem>>, vector<48x5xf32>
    %c0_1 = arith.constant 0 : index
    %c0_2 = arith.constant 0 : index
    %1 = vector.load %arg2[%c0_1, %c0_2] : memref<5x32xf32, #tpu.memory_space<vmem>>, vector<5x32xf32>
    %cst = arith.constant dense<0.000000e+00> : vector<48x32xf32>
    %2 = tpu.matmul %0, %1, %cst {dimension_numbers = #tpu.dot_dimension_numbers<[1], [0], [0], [1], [0, 0, 1, 1], [], []>} : vector<48x5xf32>, vector<5x32xf32>, vector<48x32xf32> -> vector<48x32xf32>
    %c0_3 = arith.constant 0 : index
    %c0_4 = arith.constant 0 : index
    %3 = vector.load %arg3[%c0_3, %c0_4] : memref<48x32xf32, #tpu.memory_space<vmem>>, vector<48x32xf32>
    %4 = arith.addf %2, %3 : vector<48x32xf32>
    %c0_5 = arith.constant 0 : index
    %c0_6 = arith.constant 0 : index
    %c0_7 = arith.constant 0 : index
    %5 = vector.load %arg4[%c0_5, %c0_6, %c0_7] : memref<2x32x96xf32, #tpu.memory_space<vmem>>, vector<1x32x96xf32>
    %6 = vector.shape_cast %5 : vector<1x32x96xf32> to vector<32x96xf32>
    %c0_8 = arith.constant 0 : index
    %c0_9 = arith.constant 0 : index
    %c0_10 = arith.constant 0 : index
    %7 = vector.load %arg5[%c0_8, %c0_9, %c0_10] : memref<2x1x96xf32, #tpu.memory_space<vmem>>, vector<1x1x96xf32>
    %8 = vector.shape_cast %7 : vector<1x1x96xf32> to vector<1x96xf32>
    %c0_11 = arith.constant 0 : index
    %c0_12 = arith.constant 0 : index
    %c0_13 = arith.constant 0 : index
    %9 = vector.load %arg6[%c0_11, %c0_12, %c0_13] : memref<2x32x32xf32, #tpu.memory_space<vmem>>, vector<1x32x32xf32>
    %10 = vector.shape_cast %9 : vector<1x32x32xf32> to vector<32x32xf32>
    %c0_14 = arith.constant 0 : index
    %c0_15 = arith.constant 0 : index
    %c0_16 = arith.constant 0 : index
    %11 = vector.load %arg7[%c0_14, %c0_15, %c0_16] : memref<2x32x64xf32, #tpu.memory_space<vmem>>, vector<1x32x64xf32>
    %12 = vector.shape_cast %11 : vector<1x32x64xf32> to vector<32x64xf32>
    %c0_17 = arith.constant 0 : index
    %c0_18 = arith.constant 0 : index
    %c0_19 = arith.constant 0 : index
    %13 = vector.load %arg8[%c0_17, %c0_18, %c0_19] : memref<2x1x64xf32, #tpu.memory_space<vmem>>, vector<1x1x64xf32>
    %14 = vector.shape_cast %13 : vector<1x1x64xf32> to vector<1x64xf32>
    %c0_20 = arith.constant 0 : index
    %c0_21 = arith.constant 0 : index
    %c0_22 = arith.constant 0 : index
    %15 = vector.load %arg9[%c0_20, %c0_21, %c0_22] : memref<2x64x32xf32, #tpu.memory_space<vmem>>, vector<1x64x32xf32>
    %16 = vector.shape_cast %15 : vector<1x64x32xf32> to vector<64x32xf32>
    %c0_23 = arith.constant 0 : index
    %c0_24 = arith.constant 0 : index
    %c0_25 = arith.constant 0 : index
    %17 = vector.load %arg10[%c0_23, %c0_24, %c0_25] : memref<2x4x32xf32, #tpu.memory_space<vmem>>, vector<1x4x32xf32>
    %18 = vector.shape_cast %17 : vector<1x4x32xf32> to vector<4x32xf32>
    %19 = vector.extract_strided_slice %18 {offsets = [0, 0], sizes = [1, 32], strides = [1, 1]} : vector<4x32xf32> to vector<1x32xf32>
    %20 = vector.extract_strided_slice %18 {offsets = [1, 0], sizes = [1, 32], strides = [1, 1]} : vector<4x32xf32> to vector<1x32xf32>
    %21 = vector.extract_strided_slice %18 {offsets = [2, 0], sizes = [1, 32], strides = [1, 1]} : vector<4x32xf32> to vector<1x32xf32>
    %22 = vector.extract_strided_slice %18 {offsets = [3, 0], sizes = [1, 32], strides = [1, 1]} : vector<4x32xf32> to vector<1x32xf32>
    %cst_26 = arith.constant dense<0.000000e+00> : vector<48x96xf32>
    %23 = tpu.matmul %4, %6, %cst_26 {dimension_numbers = #tpu.dot_dimension_numbers<[1], [0], [0], [1], [0, 0, 1, 1], [], []>} : vector<48x32xf32>, vector<32x96xf32>, vector<48x96xf32> -> vector<48x96xf32>
    %24 = vector.broadcast %8 : vector<1x96xf32> to vector<48x96xf32>
    %25 = arith.addf %23, %24 : vector<48x96xf32>
    %26 = vector.extract_strided_slice %25 {offsets = [0, 0], sizes = [48, 8], strides = [1, 1]} : vector<48x96xf32> to vector<48x8xf32>
    %27 = vector.shape_cast %26 : vector<48x8xf32> to vector<6x8x8xf32>
    %28 = vector.extract_strided_slice %25 {offsets = [0, 32], sizes = [48, 8], strides = [1, 1]} : vector<48x96xf32> to vector<48x8xf32>
    %29 = vector.shape_cast %28 : vector<48x8xf32> to vector<6x8x8xf32>
    %30 = vector.extract_strided_slice %25 {offsets = [0, 64], sizes = [48, 8], strides = [1, 1]} : vector<48x96xf32> to vector<48x8xf32>
    %31 = vector.shape_cast %30 : vector<48x8xf32> to vector<6x8x8xf32>
    "tpu.trace_start"() <{level = 10 : i32, message = "bqd,bkd->bqk"}> : () -> ()
    %cst_27 = arith.constant dense<0.000000e+00> : vector<6x8x8xf32>
    %32 = tpu.matmul %27, %29, %cst_27 {dimension_numbers = #tpu.dot_dimension_numbers<[2], [2], [1], [1], [0, 0, 0, 1, 1, 1], [0], [0]>} : vector<6x8x8xf32>, vector<6x8x8xf32>, vector<6x8x8xf32> -> vector<6x8x8xf32>
    "tpu.trace_stop"() : () -> ()
    %cst_28 = arith.constant 0.353553385 : f32
    %33 = vector.broadcast %cst_28 : f32 to vector<6x8x8xf32>
    %34 = arith.mulf %32, %33 : vector<6x8x8xf32>
    %cst_29 = arith.constant dense<0xFF800000> : vector<6x8xf32>
    %35 = vector.multi_reduction <maximumf>, %34, %cst_29 [2] : vector<6x8x8xf32> to vector<6x8xf32>
    %36 = vector.shape_cast %35 : vector<6x8xf32> to vector<6x8x1xf32>
    %37 = vector.broadcast %36 : vector<6x8x1xf32> to vector<6x8x8xf32>
    %38 = arith.subf %34, %37 : vector<6x8x8xf32>
    %39 = math.exp %38 : vector<6x8x8xf32>
    %cst_30 = arith.constant dense<0.000000e+00> : vector<6x8xf32>
    %40 = vector.multi_reduction <add>, %39, %cst_30 [2] : vector<6x8x8xf32> to vector<6x8xf32>
    %41 = vector.shape_cast %40 : vector<6x8xf32> to vector<6x8x1xf32>
    %42 = tpu.reciprocal %41 {approx = true} : vector<6x8x1xf32> -> vector<6x8x1xf32>
    %43 = vector.broadcast %42 : vector<6x8x1xf32> to vector<6x8x8xf32>
    %44 = arith.mulf %39, %43 : vector<6x8x8xf32>
    "tpu.trace_start"() <{level = 10 : i32, message = "bqk,bkd->bqd"}> : () -> ()
    %cst_31 = arith.constant dense<0.000000e+00> : vector<6x8x8xf32>
    %45 = tpu.matmul %44, %31, %cst_31 {dimension_numbers = #tpu.dot_dimension_numbers<[2], [1], [1], [2], [0, 0, 0, 1, 1, 2], [0], [0]>} : vector<6x8x8xf32>, vector<6x8x8xf32>, vector<6x8x8xf32> -> vector<6x8x8xf32>
    "tpu.trace_stop"() : () -> ()
    %46 = vector.shape_cast %45 : vector<6x8x8xf32> to vector<48x8xf32>
    %47 = vector.extract_strided_slice %10 {offsets = [0, 0], sizes = [8, 32], strides = [1, 1]} : vector<32x32xf32> to vector<8x32xf32>
    %cst_32 = arith.constant dense<0.000000e+00> : vector<48x32xf32>
    %48 = tpu.matmul %46, %47, %cst_32 {dimension_numbers = #tpu.dot_dimension_numbers<[1], [0], [0], [1], [0, 0, 1, 1], [], []>} : vector<48x8xf32>, vector<8x32xf32>, vector<48x32xf32> -> vector<48x32xf32>
    %49 = vector.extract_strided_slice %25 {offsets = [0, 8], sizes = [48, 8], strides = [1, 1]} : vector<48x96xf32> to vector<48x8xf32>
    %50 = vector.shape_cast %49 : vector<48x8xf32> to vector<6x8x8xf32>
    %51 = vector.extract_strided_slice %25 {offsets = [0, 40], sizes = [48, 8], strides = [1, 1]} : vector<48x96xf32> to vector<48x8xf32>
    %52 = vector.shape_cast %51 : vector<48x8xf32> to vector<6x8x8xf32>
    %53 = vector.extract_strided_slice %25 {offsets = [0, 72], sizes = [48, 8], strides = [1, 1]} : vector<48x96xf32> to vector<48x8xf32>
    %54 = vector.shape_cast %53 : vector<48x8xf32> to vector<6x8x8xf32>
    "tpu.trace_start"() <{level = 10 : i32, message = "bqd,bkd->bqk"}> : () -> ()
    %cst_33 = arith.constant dense<0.000000e+00> : vector<6x8x8xf32>
    %55 = tpu.matmul %50, %52, %cst_33 {dimension_numbers = #tpu.dot_dimension_numbers<[2], [2], [1], [1], [0, 0, 0, 1, 1, 1], [0], [0]>} : vector<6x8x8xf32>, vector<6x8x8xf32>, vector<6x8x8xf32> -> vector<6x8x8xf32>
    "tpu.trace_stop"() : () -> ()
    %cst_34 = arith.constant 0.353553385 : f32
    %56 = vector.broadcast %cst_34 : f32 to vector<6x8x8xf32>
    %57 = arith.mulf %55, %56 : vector<6x8x8xf32>
    %cst_35 = arith.constant dense<0xFF800000> : vector<6x8xf32>
    %58 = vector.multi_reduction <maximumf>, %57, %cst_35 [2] : vector<6x8x8xf32> to vector<6x8xf32>
    %59 = vector.shape_cast %58 : vector<6x8xf32> to vector<6x8x1xf32>
    %60 = vector.broadcast %59 : vector<6x8x1xf32> to vector<6x8x8xf32>
    %61 = arith.subf %57, %60 : vector<6x8x8xf32>
    %62 = math.exp %61 : vector<6x8x8xf32>
    %cst_36 = arith.constant dense<0.000000e+00> : vector<6x8xf32>
    %63 = vector.multi_reduction <add>, %62, %cst_36 [2] : vector<6x8x8xf32> to vector<6x8xf32>
    %64 = vector.shape_cast %63 : vector<6x8xf32> to vector<6x8x1xf32>
    %65 = tpu.reciprocal %64 {approx = true} : vector<6x8x1xf32> -> vector<6x8x1xf32>
    %66 = vector.broadcast %65 : vector<6x8x1xf32> to vector<6x8x8xf32>
    %67 = arith.mulf %62, %66 : vector<6x8x8xf32>
    "tpu.trace_start"() <{level = 10 : i32, message = "bqk,bkd->bqd"}> : () -> ()
    %cst_37 = arith.constant dense<0.000000e+00> : vector<6x8x8xf32>
    %68 = tpu.matmul %67, %54, %cst_37 {dimension_numbers = #tpu.dot_dimension_numbers<[2], [1], [1], [2], [0, 0, 0, 1, 1, 2], [0], [0]>} : vector<6x8x8xf32>, vector<6x8x8xf32>, vector<6x8x8xf32> -> vector<6x8x8xf32>
    "tpu.trace_stop"() : () -> ()
    %69 = vector.shape_cast %68 : vector<6x8x8xf32> to vector<48x8xf32>
    %70 = vector.extract_strided_slice %10 {offsets = [8, 0], sizes = [8, 32], strides = [1, 1]} : vector<32x32xf32> to vector<8x32xf32>
    %cst_38 = arith.constant dense<0.000000e+00> : vector<48x32xf32>
    %71 = tpu.matmul %69, %70, %cst_38 {dimension_numbers = #tpu.dot_dimension_numbers<[1], [0], [0], [1], [0, 0, 1, 1], [], []>} : vector<48x8xf32>, vector<8x32xf32>, vector<48x32xf32> -> vector<48x32xf32>
    %72 = arith.addf %48, %71 : vector<48x32xf32>
    %73 = vector.extract_strided_slice %25 {offsets = [0, 16], sizes = [48, 8], strides = [1, 1]} : vector<48x96xf32> to vector<48x8xf32>
    %74 = vector.shape_cast %73 : vector<48x8xf32> to vector<6x8x8xf32>
    %75 = vector.extract_strided_slice %25 {offsets = [0, 48], sizes = [48, 8], strides = [1, 1]} : vector<48x96xf32> to vector<48x8xf32>
    %76 = vector.shape_cast %75 : vector<48x8xf32> to vector<6x8x8xf32>
    %77 = vector.extract_strided_slice %25 {offsets = [0, 80], sizes = [48, 8], strides = [1, 1]} : vector<48x96xf32> to vector<48x8xf32>
    %78 = vector.shape_cast %77 : vector<48x8xf32> to vector<6x8x8xf32>
    "tpu.trace_start"() <{level = 10 : i32, message = "bqd,bkd->bqk"}> : () -> ()
    %cst_39 = arith.constant dense<0.000000e+00> : vector<6x8x8xf32>
    %79 = tpu.matmul %74, %76, %cst_39 {dimension_numbers = #tpu.dot_dimension_numbers<[2], [2], [1], [1], [0, 0, 0, 1, 1, 1], [0], [0]>} : vector<6x8x8xf32>, vector<6x8x8xf32>, vector<6x8x8xf32> -> vector<6x8x8xf32>
    "tpu.trace_stop"() : () -> ()
    %cst_40 = arith.constant 0.353553385 : f32
    %80 = vector.broadcast %cst_40 : f32 to vector<6x8x8xf32>
    %81 = arith.mulf %79, %80 : vector<6x8x8xf32>
    %cst_41 = arith.constant dense<0xFF800000> : vector<6x8xf32>
    %82 = vector.multi_reduction <maximumf>, %81, %cst_41 [2] : vector<6x8x8xf32> to vector<6x8xf32>
    %83 = vector.shape_cast %82 : vector<6x8xf32> to vector<6x8x1xf32>
    %84 = vector.broadcast %83 : vector<6x8x1xf32> to vector<6x8x8xf32>
    %85 = arith.subf %81, %84 : vector<6x8x8xf32>
    %86 = math.exp %85 : vector<6x8x8xf32>
    %cst_42 = arith.constant dense<0.000000e+00> : vector<6x8xf32>
    %87 = vector.multi_reduction <add>, %86, %cst_42 [2] : vector<6x8x8xf32> to vector<6x8xf32>
    %88 = vector.shape_cast %87 : vector<6x8xf32> to vector<6x8x1xf32>
    %89 = tpu.reciprocal %88 {approx = true} : vector<6x8x1xf32> -> vector<6x8x1xf32>
    %90 = vector.broadcast %89 : vector<6x8x1xf32> to vector<6x8x8xf32>
    %91 = arith.mulf %86, %90 : vector<6x8x8xf32>
    "tpu.trace_start"() <{level = 10 : i32, message = "bqk,bkd->bqd"}> : () -> ()
    %cst_43 = arith.constant dense<0.000000e+00> : vector<6x8x8xf32>
    %92 = tpu.matmul %91, %78, %cst_43 {dimension_numbers = #tpu.dot_dimension_numbers<[2], [1], [1], [2], [0, 0, 0, 1, 1, 2], [0], [0]>} : vector<6x8x8xf32>, vector<6x8x8xf32>, vector<6x8x8xf32> -> vector<6x8x8xf32>
    "tpu.trace_stop"() : () -> ()
    %93 = vector.shape_cast %92 : vector<6x8x8xf32> to vector<48x8xf32>
    %94 = vector.extract_strided_slice %10 {offsets = [16, 0], sizes = [8, 32], strides = [1, 1]} : vector<32x32xf32> to vector<8x32xf32>
    %cst_44 = arith.constant dense<0.000000e+00> : vector<48x32xf32>
    %95 = tpu.matmul %93, %94, %cst_44 {dimension_numbers = #tpu.dot_dimension_numbers<[1], [0], [0], [1], [0, 0, 1, 1], [], []>} : vector<48x8xf32>, vector<8x32xf32>, vector<48x32xf32> -> vector<48x32xf32>
    %96 = arith.addf %72, %95 : vector<48x32xf32>
    %97 = vector.extract_strided_slice %25 {offsets = [0, 24], sizes = [48, 8], strides = [1, 1]} : vector<48x96xf32> to vector<48x8xf32>
    %98 = vector.shape_cast %97 : vector<48x8xf32> to vector<6x8x8xf32>
    %99 = vector.extract_strided_slice %25 {offsets = [0, 56], sizes = [48, 8], strides = [1, 1]} : vector<48x96xf32> to vector<48x8xf32>
    %100 = vector.shape_cast %99 : vector<48x8xf32> to vector<6x8x8xf32>
    %101 = vector.extract_strided_slice %25 {offsets = [0, 88], sizes = [48, 8], strides = [1, 1]} : vector<48x96xf32> to vector<48x8xf32>
    %102 = vector.shape_cast %101 : vector<48x8xf32> to vector<6x8x8xf32>
    "tpu.trace_start"() <{level = 10 : i32, message = "bqd,bkd->bqk"}> : () -> ()
    %cst_45 = arith.constant dense<0.000000e+00> : vector<6x8x8xf32>
    %103 = tpu.matmul %98, %100, %cst_45 {dimension_numbers = #tpu.dot_dimension_numbers<[2], [2], [1], [1], [0, 0, 0, 1, 1, 1], [0], [0]>} : vector<6x8x8xf32>, vector<6x8x8xf32>, vector<6x8x8xf32> -> vector<6x8x8xf32>
    "tpu.trace_stop"() : () -> ()
    %cst_46 = arith.constant 0.353553385 : f32
    %104 = vector.broadcast %cst_46 : f32 to vector<6x8x8xf32>
    %105 = arith.mulf %103, %104 : vector<6x8x8xf32>
    %cst_47 = arith.constant dense<0xFF800000> : vector<6x8xf32>
    %106 = vector.multi_reduction <maximumf>, %105, %cst_47 [2] : vector<6x8x8xf32> to vector<6x8xf32>
    %107 = vector.shape_cast %106 : vector<6x8xf32> to vector<6x8x1xf32>
    %108 = vector.broadcast %107 : vector<6x8x1xf32> to vector<6x8x8xf32>
    %109 = arith.subf %105, %108 : vector<6x8x8xf32>
    %110 = math.exp %109 : vector<6x8x8xf32>
    %cst_48 = arith.constant dense<0.000000e+00> : vector<6x8xf32>
    %111 = vector.multi_reduction <add>, %110, %cst_48 [2] : vector<6x8x8xf32> to vector<6x8xf32>
    %112 = vector.shape_cast %111 : vector<6x8xf32> to vector<6x8x1xf32>
    %113 = tpu.reciprocal %112 {approx = true} : vector<6x8x1xf32> -> vector<6x8x1xf32>
    %114 = vector.broadcast %113 : vector<6x8x1xf32> to vector<6x8x8xf32>
    %115 = arith.mulf %110, %114 : vector<6x8x8xf32>
    "tpu.trace_start"() <{level = 10 : i32, message = "bqk,bkd->bqd"}> : () -> ()
    %cst_49 = arith.constant dense<0.000000e+00> : vector<6x8x8xf32>
    %116 = tpu.matmul %115, %102, %cst_49 {dimension_numbers = #tpu.dot_dimension_numbers<[2], [1], [1], [2], [0, 0, 0, 1, 1, 2], [0], [0]>} : vector<6x8x8xf32>, vector<6x8x8xf32>, vector<6x8x8xf32> -> vector<6x8x8xf32>
    "tpu.trace_stop"() : () -> ()
    %117 = vector.shape_cast %116 : vector<6x8x8xf32> to vector<48x8xf32>
    %118 = vector.extract_strided_slice %10 {offsets = [24, 0], sizes = [8, 32], strides = [1, 1]} : vector<32x32xf32> to vector<8x32xf32>
    %cst_50 = arith.constant dense<0.000000e+00> : vector<48x32xf32>
    %119 = tpu.matmul %117, %118, %cst_50 {dimension_numbers = #tpu.dot_dimension_numbers<[1], [0], [0], [1], [0, 0, 1, 1], [], []>} : vector<48x8xf32>, vector<8x32xf32>, vector<48x32xf32> -> vector<48x32xf32>
    %120 = arith.addf %96, %119 : vector<48x32xf32>
    %121 = arith.addf %4, %120 : vector<48x32xf32>
    %122 = vector.broadcast %19 : vector<1x32xf32> to vector<48x32xf32>
    %123 = arith.addf %121, %122 : vector<48x32xf32>
    %cst_51 = arith.constant dense<0.000000e+00> : vector<48xf32>
    %124 = vector.multi_reduction <add>, %123, %cst_51 [1] : vector<48x32xf32> to vector<48xf32>
    %125 = vector.shape_cast %124 : vector<48xf32> to vector<48x1xf32>
    %cst_52 = arith.constant 3.200000e+01 : f32
    %126 = vector.broadcast %cst_52 : f32 to vector<48x1xf32>
    %127 = arith.divf %125, %126 : vector<48x1xf32>
    %128 = vector.broadcast %127 : vector<48x1xf32> to vector<48x32xf32>
    %129 = arith.subf %123, %128 : vector<48x32xf32>
    %130 = arith.mulf %129, %129 : vector<48x32xf32>
    %cst_53 = arith.constant dense<0.000000e+00> : vector<48xf32>
    %131 = vector.multi_reduction <add>, %130, %cst_53 [1] : vector<48x32xf32> to vector<48xf32>
    %132 = vector.shape_cast %131 : vector<48xf32> to vector<48x1xf32>
    %cst_54 = arith.constant 3.200000e+01 : f32
    %133 = vector.broadcast %cst_54 : f32 to vector<48x1xf32>
    %134 = arith.divf %132, %133 : vector<48x1xf32>
    %cst_55 = arith.constant 9.99999974E-6 : f32
    %135 = vector.broadcast %cst_55 : f32 to vector<48x1xf32>
    %136 = arith.addf %134, %135 : vector<48x1xf32>
    %137 = math.rsqrt %136 : vector<48x1xf32>
    %138 = vector.broadcast %137 : vector<48x1xf32> to vector<48x32xf32>
    %139 = arith.mulf %129, %138 : vector<48x32xf32>
    %140 = vector.broadcast %21 : vector<1x32xf32> to vector<48x32xf32>
    %141 = arith.mulf %139, %140 : vector<48x32xf32>
    %142 = vector.broadcast %22 : vector<1x32xf32> to vector<48x32xf32>
    %143 = arith.addf %141, %142 : vector<48x32xf32>
    %cst_56 = arith.constant dense<0.000000e+00> : vector<48x64xf32>
    %144 = tpu.matmul %143, %12, %cst_56 {dimension_numbers = #tpu.dot_dimension_numbers<[1], [0], [0], [1], [0, 0, 1, 1], [], []>} : vector<48x32xf32>, vector<32x64xf32>, vector<48x64xf32> -> vector<48x64xf32>
    %145 = vector.broadcast %14 : vector<1x64xf32> to vector<48x64xf32>
    %146 = arith.addf %144, %145 : vector<48x64xf32>
    %cst_57 = arith.constant 0.000000e+00 : f32
    %147 = vector.broadcast %cst_57 : f32 to vector<48x64xf32>
    %148 = arith.maximumf %146, %147 : vector<48x64xf32>
    %cst_58 = arith.constant dense<0.000000e+00> : vector<48x32xf32>
    %149 = tpu.matmul %148, %16, %cst_58 {dimension_numbers = #tpu.dot_dimension_numbers<[1], [0], [0], [1], [0, 0, 1, 1], [], []>} : vector<48x64xf32>, vector<64x32xf32>, vector<48x32xf32> -> vector<48x32xf32>
    %150 = vector.broadcast %20 : vector<1x32xf32> to vector<48x32xf32>
    %151 = arith.addf %149, %150 : vector<48x32xf32>
    %152 = arith.addf %143, %151 : vector<48x32xf32>
    %cst_59 = arith.constant dense<0.000000e+00> : vector<48xf32>
    %153 = vector.multi_reduction <add>, %152, %cst_59 [1] : vector<48x32xf32> to vector<48xf32>
    %154 = vector.shape_cast %153 : vector<48xf32> to vector<48x1xf32>
    %cst_60 = arith.constant 3.200000e+01 : f32
    %155 = vector.broadcast %cst_60 : f32 to vector<48x1xf32>
    %156 = arith.divf %154, %155 : vector<48x1xf32>
    %157 = vector.broadcast %156 : vector<48x1xf32> to vector<48x32xf32>
    %158 = arith.subf %152, %157 : vector<48x32xf32>
    %159 = arith.mulf %158, %158 : vector<48x32xf32>
    %cst_61 = arith.constant dense<0.000000e+00> : vector<48xf32>
    %160 = vector.multi_reduction <add>, %159, %cst_61 [1] : vector<48x32xf32> to vector<48xf32>
    %161 = vector.shape_cast %160 : vector<48xf32> to vector<48x1xf32>
    %cst_62 = arith.constant 3.200000e+01 : f32
    %162 = vector.broadcast %cst_62 : f32 to vector<48x1xf32>
    %163 = arith.divf %161, %162 : vector<48x1xf32>
    %cst_63 = arith.constant 9.99999974E-6 : f32
    %164 = vector.broadcast %cst_63 : f32 to vector<48x1xf32>
    %165 = arith.addf %163, %164 : vector<48x1xf32>
    %166 = math.rsqrt %165 : vector<48x1xf32>
    %167 = vector.broadcast %166 : vector<48x1xf32> to vector<48x32xf32>
    %168 = arith.mulf %158, %167 : vector<48x32xf32>
    %169 = vector.broadcast %21 : vector<1x32xf32> to vector<48x32xf32>
    %170 = arith.mulf %168, %169 : vector<48x32xf32>
    %171 = vector.broadcast %22 : vector<1x32xf32> to vector<48x32xf32>
    %172 = arith.addf %170, %171 : vector<48x32xf32>
    %c1 = arith.constant 1 : index
    %c0_64 = arith.constant 0 : index
    %c0_65 = arith.constant 0 : index
    %173 = vector.load %arg4[%c1, %c0_64, %c0_65] : memref<2x32x96xf32, #tpu.memory_space<vmem>>, vector<1x32x96xf32>
    %174 = vector.shape_cast %173 : vector<1x32x96xf32> to vector<32x96xf32>
    %c1_66 = arith.constant 1 : index
    %c0_67 = arith.constant 0 : index
    %c0_68 = arith.constant 0 : index
    %175 = vector.load %arg5[%c1_66, %c0_67, %c0_68] : memref<2x1x96xf32, #tpu.memory_space<vmem>>, vector<1x1x96xf32>
    %176 = vector.shape_cast %175 : vector<1x1x96xf32> to vector<1x96xf32>
    %c1_69 = arith.constant 1 : index
    %c0_70 = arith.constant 0 : index
    %c0_71 = arith.constant 0 : index
    %177 = vector.load %arg6[%c1_69, %c0_70, %c0_71] : memref<2x32x32xf32, #tpu.memory_space<vmem>>, vector<1x32x32xf32>
    %178 = vector.shape_cast %177 : vector<1x32x32xf32> to vector<32x32xf32>
    %c1_72 = arith.constant 1 : index
    %c0_73 = arith.constant 0 : index
    %c0_74 = arith.constant 0 : index
    %179 = vector.load %arg7[%c1_72, %c0_73, %c0_74] : memref<2x32x64xf32, #tpu.memory_space<vmem>>, vector<1x32x64xf32>
    %180 = vector.shape_cast %179 : vector<1x32x64xf32> to vector<32x64xf32>
    %c1_75 = arith.constant 1 : index
    %c0_76 = arith.constant 0 : index
    %c0_77 = arith.constant 0 : index
    %181 = vector.load %arg8[%c1_75, %c0_76, %c0_77] : memref<2x1x64xf32, #tpu.memory_space<vmem>>, vector<1x1x64xf32>
    %182 = vector.shape_cast %181 : vector<1x1x64xf32> to vector<1x64xf32>
    %c1_78 = arith.constant 1 : index
    %c0_79 = arith.constant 0 : index
    %c0_80 = arith.constant 0 : index
    %183 = vector.load %arg9[%c1_78, %c0_79, %c0_80] : memref<2x64x32xf32, #tpu.memory_space<vmem>>, vector<1x64x32xf32>
    %184 = vector.shape_cast %183 : vector<1x64x32xf32> to vector<64x32xf32>
    %c1_81 = arith.constant 1 : index
    %c0_82 = arith.constant 0 : index
    %c0_83 = arith.constant 0 : index
    %185 = vector.load %arg10[%c1_81, %c0_82, %c0_83] : memref<2x4x32xf32, #tpu.memory_space<vmem>>, vector<1x4x32xf32>
    %186 = vector.shape_cast %185 : vector<1x4x32xf32> to vector<4x32xf32>
    %187 = vector.extract_strided_slice %186 {offsets = [0, 0], sizes = [1, 32], strides = [1, 1]} : vector<4x32xf32> to vector<1x32xf32>
    %188 = vector.extract_strided_slice %186 {offsets = [1, 0], sizes = [1, 32], strides = [1, 1]} : vector<4x32xf32> to vector<1x32xf32>
    %189 = vector.extract_strided_slice %186 {offsets = [2, 0], sizes = [1, 32], strides = [1, 1]} : vector<4x32xf32> to vector<1x32xf32>
    %190 = vector.extract_strided_slice %186 {offsets = [3, 0], sizes = [1, 32], strides = [1, 1]} : vector<4x32xf32> to vector<1x32xf32>
    %cst_84 = arith.constant dense<0.000000e+00> : vector<48x96xf32>
    %191 = tpu.matmul %172, %174, %cst_84 {dimension_numbers = #tpu.dot_dimension_numbers<[1], [0], [0], [1], [0, 0, 1, 1], [], []>} : vector<48x32xf32>, vector<32x96xf32>, vector<48x96xf32> -> vector<48x96xf32>
    %192 = vector.broadcast %176 : vector<1x96xf32> to vector<48x96xf32>
    %193 = arith.addf %191, %192 : vector<48x96xf32>
    %194 = vector.extract_strided_slice %193 {offsets = [0, 0], sizes = [48, 8], strides = [1, 1]} : vector<48x96xf32> to vector<48x8xf32>
    %195 = vector.shape_cast %194 : vector<48x8xf32> to vector<6x8x8xf32>
    %196 = vector.extract_strided_slice %193 {offsets = [0, 32], sizes = [48, 8], strides = [1, 1]} : vector<48x96xf32> to vector<48x8xf32>
    %197 = vector.shape_cast %196 : vector<48x8xf32> to vector<6x8x8xf32>
    %198 = vector.extract_strided_slice %193 {offsets = [0, 64], sizes = [48, 8], strides = [1, 1]} : vector<48x96xf32> to vector<48x8xf32>
    %199 = vector.shape_cast %198 : vector<48x8xf32> to vector<6x8x8xf32>
    "tpu.trace_start"() <{level = 10 : i32, message = "bqd,bkd->bqk"}> : () -> ()
    %cst_85 = arith.constant dense<0.000000e+00> : vector<6x8x8xf32>
    %200 = tpu.matmul %195, %197, %cst_85 {dimension_numbers = #tpu.dot_dimension_numbers<[2], [2], [1], [1], [0, 0, 0, 1, 1, 1], [0], [0]>} : vector<6x8x8xf32>, vector<6x8x8xf32>, vector<6x8x8xf32> -> vector<6x8x8xf32>
    "tpu.trace_stop"() : () -> ()
    %cst_86 = arith.constant 0.353553385 : f32
    %201 = vector.broadcast %cst_86 : f32 to vector<6x8x8xf32>
    %202 = arith.mulf %200, %201 : vector<6x8x8xf32>
    %cst_87 = arith.constant dense<0xFF800000> : vector<6x8xf32>
    %203 = vector.multi_reduction <maximumf>, %202, %cst_87 [2] : vector<6x8x8xf32> to vector<6x8xf32>
    %204 = vector.shape_cast %203 : vector<6x8xf32> to vector<6x8x1xf32>
    %205 = vector.broadcast %204 : vector<6x8x1xf32> to vector<6x8x8xf32>
    %206 = arith.subf %202, %205 : vector<6x8x8xf32>
    %207 = math.exp %206 : vector<6x8x8xf32>
    %cst_88 = arith.constant dense<0.000000e+00> : vector<6x8xf32>
    %208 = vector.multi_reduction <add>, %207, %cst_88 [2] : vector<6x8x8xf32> to vector<6x8xf32>
    %209 = vector.shape_cast %208 : vector<6x8xf32> to vector<6x8x1xf32>
    %210 = tpu.reciprocal %209 {approx = true} : vector<6x8x1xf32> -> vector<6x8x1xf32>
    %211 = vector.broadcast %210 : vector<6x8x1xf32> to vector<6x8x8xf32>
    %212 = arith.mulf %207, %211 : vector<6x8x8xf32>
    "tpu.trace_start"() <{level = 10 : i32, message = "bqk,bkd->bqd"}> : () -> ()
    %cst_89 = arith.constant dense<0.000000e+00> : vector<6x8x8xf32>
    %213 = tpu.matmul %212, %199, %cst_89 {dimension_numbers = #tpu.dot_dimension_numbers<[2], [1], [1], [2], [0, 0, 0, 1, 1, 2], [0], [0]>} : vector<6x8x8xf32>, vector<6x8x8xf32>, vector<6x8x8xf32> -> vector<6x8x8xf32>
    "tpu.trace_stop"() : () -> ()
    %214 = vector.shape_cast %213 : vector<6x8x8xf32> to vector<48x8xf32>
    %215 = vector.extract_strided_slice %178 {offsets = [0, 0], sizes = [8, 32], strides = [1, 1]} : vector<32x32xf32> to vector<8x32xf32>
    %cst_90 = arith.constant dense<0.000000e+00> : vector<48x32xf32>
    %216 = tpu.matmul %214, %215, %cst_90 {dimension_numbers = #tpu.dot_dimension_numbers<[1], [0], [0], [1], [0, 0, 1, 1], [], []>} : vector<48x8xf32>, vector<8x32xf32>, vector<48x32xf32> -> vector<48x32xf32>
    %217 = vector.extract_strided_slice %193 {offsets = [0, 8], sizes = [48, 8], strides = [1, 1]} : vector<48x96xf32> to vector<48x8xf32>
    %218 = vector.shape_cast %217 : vector<48x8xf32> to vector<6x8x8xf32>
    %219 = vector.extract_strided_slice %193 {offsets = [0, 40], sizes = [48, 8], strides = [1, 1]} : vector<48x96xf32> to vector<48x8xf32>
    %220 = vector.shape_cast %219 : vector<48x8xf32> to vector<6x8x8xf32>
    %221 = vector.extract_strided_slice %193 {offsets = [0, 72], sizes = [48, 8], strides = [1, 1]} : vector<48x96xf32> to vector<48x8xf32>
    %222 = vector.shape_cast %221 : vector<48x8xf32> to vector<6x8x8xf32>
    "tpu.trace_start"() <{level = 10 : i32, message = "bqd,bkd->bqk"}> : () -> ()
    %cst_91 = arith.constant dense<0.000000e+00> : vector<6x8x8xf32>
    %223 = tpu.matmul %218, %220, %cst_91 {dimension_numbers = #tpu.dot_dimension_numbers<[2], [2], [1], [1], [0, 0, 0, 1, 1, 1], [0], [0]>} : vector<6x8x8xf32>, vector<6x8x8xf32>, vector<6x8x8xf32> -> vector<6x8x8xf32>
    "tpu.trace_stop"() : () -> ()
    %cst_92 = arith.constant 0.353553385 : f32
    %224 = vector.broadcast %cst_92 : f32 to vector<6x8x8xf32>
    %225 = arith.mulf %223, %224 : vector<6x8x8xf32>
    %cst_93 = arith.constant dense<0xFF800000> : vector<6x8xf32>
    %226 = vector.multi_reduction <maximumf>, %225, %cst_93 [2] : vector<6x8x8xf32> to vector<6x8xf32>
    %227 = vector.shape_cast %226 : vector<6x8xf32> to vector<6x8x1xf32>
    %228 = vector.broadcast %227 : vector<6x8x1xf32> to vector<6x8x8xf32>
    %229 = arith.subf %225, %228 : vector<6x8x8xf32>
    %230 = math.exp %229 : vector<6x8x8xf32>
    %cst_94 = arith.constant dense<0.000000e+00> : vector<6x8xf32>
    %231 = vector.multi_reduction <add>, %230, %cst_94 [2] : vector<6x8x8xf32> to vector<6x8xf32>
    %232 = vector.shape_cast %231 : vector<6x8xf32> to vector<6x8x1xf32>
    %233 = tpu.reciprocal %232 {approx = true} : vector<6x8x1xf32> -> vector<6x8x1xf32>
    %234 = vector.broadcast %233 : vector<6x8x1xf32> to vector<6x8x8xf32>
    %235 = arith.mulf %230, %234 : vector<6x8x8xf32>
    "tpu.trace_start"() <{level = 10 : i32, message = "bqk,bkd->bqd"}> : () -> ()
    %cst_95 = arith.constant dense<0.000000e+00> : vector<6x8x8xf32>
    %236 = tpu.matmul %235, %222, %cst_95 {dimension_numbers = #tpu.dot_dimension_numbers<[2], [1], [1], [2], [0, 0, 0, 1, 1, 2], [0], [0]>} : vector<6x8x8xf32>, vector<6x8x8xf32>, vector<6x8x8xf32> -> vector<6x8x8xf32>
    "tpu.trace_stop"() : () -> ()
    %237 = vector.shape_cast %236 : vector<6x8x8xf32> to vector<48x8xf32>
    %238 = vector.extract_strided_slice %178 {offsets = [8, 0], sizes = [8, 32], strides = [1, 1]} : vector<32x32xf32> to vector<8x32xf32>
    %cst_96 = arith.constant dense<0.000000e+00> : vector<48x32xf32>
    %239 = tpu.matmul %237, %238, %cst_96 {dimension_numbers = #tpu.dot_dimension_numbers<[1], [0], [0], [1], [0, 0, 1, 1], [], []>} : vector<48x8xf32>, vector<8x32xf32>, vector<48x32xf32> -> vector<48x32xf32>
    %240 = arith.addf %216, %239 : vector<48x32xf32>
    %241 = vector.extract_strided_slice %193 {offsets = [0, 16], sizes = [48, 8], strides = [1, 1]} : vector<48x96xf32> to vector<48x8xf32>
    %242 = vector.shape_cast %241 : vector<48x8xf32> to vector<6x8x8xf32>
    %243 = vector.extract_strided_slice %193 {offsets = [0, 48], sizes = [48, 8], strides = [1, 1]} : vector<48x96xf32> to vector<48x8xf32>
    %244 = vector.shape_cast %243 : vector<48x8xf32> to vector<6x8x8xf32>
    %245 = vector.extract_strided_slice %193 {offsets = [0, 80], sizes = [48, 8], strides = [1, 1]} : vector<48x96xf32> to vector<48x8xf32>
    %246 = vector.shape_cast %245 : vector<48x8xf32> to vector<6x8x8xf32>
    "tpu.trace_start"() <{level = 10 : i32, message = "bqd,bkd->bqk"}> : () -> ()
    %cst_97 = arith.constant dense<0.000000e+00> : vector<6x8x8xf32>
    %247 = tpu.matmul %242, %244, %cst_97 {dimension_numbers = #tpu.dot_dimension_numbers<[2], [2], [1], [1], [0, 0, 0, 1, 1, 1], [0], [0]>} : vector<6x8x8xf32>, vector<6x8x8xf32>, vector<6x8x8xf32> -> vector<6x8x8xf32>
    "tpu.trace_stop"() : () -> ()
    %cst_98 = arith.constant 0.353553385 : f32
    %248 = vector.broadcast %cst_98 : f32 to vector<6x8x8xf32>
    %249 = arith.mulf %247, %248 : vector<6x8x8xf32>
    %cst_99 = arith.constant dense<0xFF800000> : vector<6x8xf32>
    %250 = vector.multi_reduction <maximumf>, %249, %cst_99 [2] : vector<6x8x8xf32> to vector<6x8xf32>
    %251 = vector.shape_cast %250 : vector<6x8xf32> to vector<6x8x1xf32>
    %252 = vector.broadcast %251 : vector<6x8x1xf32> to vector<6x8x8xf32>
    %253 = arith.subf %249, %252 : vector<6x8x8xf32>
    %254 = math.exp %253 : vector<6x8x8xf32>
    %cst_100 = arith.constant dense<0.000000e+00> : vector<6x8xf32>
    %255 = vector.multi_reduction <add>, %254, %cst_100 [2] : vector<6x8x8xf32> to vector<6x8xf32>
    %256 = vector.shape_cast %255 : vector<6x8xf32> to vector<6x8x1xf32>
    %257 = tpu.reciprocal %256 {approx = true} : vector<6x8x1xf32> -> vector<6x8x1xf32>
    %258 = vector.broadcast %257 : vector<6x8x1xf32> to vector<6x8x8xf32>
    %259 = arith.mulf %254, %258 : vector<6x8x8xf32>
    "tpu.trace_start"() <{level = 10 : i32, message = "bqk,bkd->bqd"}> : () -> ()
    %cst_101 = arith.constant dense<0.000000e+00> : vector<6x8x8xf32>
    %260 = tpu.matmul %259, %246, %cst_101 {dimension_numbers = #tpu.dot_dimension_numbers<[2], [1], [1], [2], [0, 0, 0, 1, 1, 2], [0], [0]>} : vector<6x8x8xf32>, vector<6x8x8xf32>, vector<6x8x8xf32> -> vector<6x8x8xf32>
    "tpu.trace_stop"() : () -> ()
    %261 = vector.shape_cast %260 : vector<6x8x8xf32> to vector<48x8xf32>
    %262 = vector.extract_strided_slice %178 {offsets = [16, 0], sizes = [8, 32], strides = [1, 1]} : vector<32x32xf32> to vector<8x32xf32>
    %cst_102 = arith.constant dense<0.000000e+00> : vector<48x32xf32>
    %263 = tpu.matmul %261, %262, %cst_102 {dimension_numbers = #tpu.dot_dimension_numbers<[1], [0], [0], [1], [0, 0, 1, 1], [], []>} : vector<48x8xf32>, vector<8x32xf32>, vector<48x32xf32> -> vector<48x32xf32>
    %264 = arith.addf %240, %263 : vector<48x32xf32>
    %265 = vector.extract_strided_slice %193 {offsets = [0, 24], sizes = [48, 8], strides = [1, 1]} : vector<48x96xf32> to vector<48x8xf32>
    %266 = vector.shape_cast %265 : vector<48x8xf32> to vector<6x8x8xf32>
    %267 = vector.extract_strided_slice %193 {offsets = [0, 56], sizes = [48, 8], strides = [1, 1]} : vector<48x96xf32> to vector<48x8xf32>
    %268 = vector.shape_cast %267 : vector<48x8xf32> to vector<6x8x8xf32>
    %269 = vector.extract_strided_slice %193 {offsets = [0, 88], sizes = [48, 8], strides = [1, 1]} : vector<48x96xf32> to vector<48x8xf32>
    %270 = vector.shape_cast %269 : vector<48x8xf32> to vector<6x8x8xf32>
    "tpu.trace_start"() <{level = 10 : i32, message = "bqd,bkd->bqk"}> : () -> ()
    %cst_103 = arith.constant dense<0.000000e+00> : vector<6x8x8xf32>
    %271 = tpu.matmul %266, %268, %cst_103 {dimension_numbers = #tpu.dot_dimension_numbers<[2], [2], [1], [1], [0, 0, 0, 1, 1, 1], [0], [0]>} : vector<6x8x8xf32>, vector<6x8x8xf32>, vector<6x8x8xf32> -> vector<6x8x8xf32>
    "tpu.trace_stop"() : () -> ()
    %cst_104 = arith.constant 0.353553385 : f32
    %272 = vector.broadcast %cst_104 : f32 to vector<6x8x8xf32>
    %273 = arith.mulf %271, %272 : vector<6x8x8xf32>
    %cst_105 = arith.constant dense<0xFF800000> : vector<6x8xf32>
    %274 = vector.multi_reduction <maximumf>, %273, %cst_105 [2] : vector<6x8x8xf32> to vector<6x8xf32>
    %275 = vector.shape_cast %274 : vector<6x8xf32> to vector<6x8x1xf32>
    %276 = vector.broadcast %275 : vector<6x8x1xf32> to vector<6x8x8xf32>
    %277 = arith.subf %273, %276 : vector<6x8x8xf32>
    %278 = math.exp %277 : vector<6x8x8xf32>
    %cst_106 = arith.constant dense<0.000000e+00> : vector<6x8xf32>
    %279 = vector.multi_reduction <add>, %278, %cst_106 [2] : vector<6x8x8xf32> to vector<6x8xf32>
    %280 = vector.shape_cast %279 : vector<6x8xf32> to vector<6x8x1xf32>
    %281 = tpu.reciprocal %280 {approx = true} : vector<6x8x1xf32> -> vector<6x8x1xf32>
    %282 = vector.broadcast %281 : vector<6x8x1xf32> to vector<6x8x8xf32>
    %283 = arith.mulf %278, %282 : vector<6x8x8xf32>
    "tpu.trace_start"() <{level = 10 : i32, message = "bqk,bkd->bqd"}> : () -> ()
    %cst_107 = arith.constant dense<0.000000e+00> : vector<6x8x8xf32>
    %284 = tpu.matmul %283, %270, %cst_107 {dimension_numbers = #tpu.dot_dimension_numbers<[2], [1], [1], [2], [0, 0, 0, 1, 1, 2], [0], [0]>} : vector<6x8x8xf32>, vector<6x8x8xf32>, vector<6x8x8xf32> -> vector<6x8x8xf32>
    "tpu.trace_stop"() : () -> ()
    %285 = vector.shape_cast %284 : vector<6x8x8xf32> to vector<48x8xf32>
    %286 = vector.extract_strided_slice %178 {offsets = [24, 0], sizes = [8, 32], strides = [1, 1]} : vector<32x32xf32> to vector<8x32xf32>
    %cst_108 = arith.constant dense<0.000000e+00> : vector<48x32xf32>
    %287 = tpu.matmul %285, %286, %cst_108 {dimension_numbers = #tpu.dot_dimension_numbers<[1], [0], [0], [1], [0, 0, 1, 1], [], []>} : vector<48x8xf32>, vector<8x32xf32>, vector<48x32xf32> -> vector<48x32xf32>
    %288 = arith.addf %264, %287 : vector<48x32xf32>
    %289 = arith.addf %172, %288 : vector<48x32xf32>
    %290 = vector.broadcast %187 : vector<1x32xf32> to vector<48x32xf32>
    %291 = arith.addf %289, %290 : vector<48x32xf32>
    %cst_109 = arith.constant dense<0.000000e+00> : vector<48xf32>
    %292 = vector.multi_reduction <add>, %291, %cst_109 [1] : vector<48x32xf32> to vector<48xf32>
    %293 = vector.shape_cast %292 : vector<48xf32> to vector<48x1xf32>
    %cst_110 = arith.constant 3.200000e+01 : f32
    %294 = vector.broadcast %cst_110 : f32 to vector<48x1xf32>
    %295 = arith.divf %293, %294 : vector<48x1xf32>
    %296 = vector.broadcast %295 : vector<48x1xf32> to vector<48x32xf32>
    %297 = arith.subf %291, %296 : vector<48x32xf32>
    %298 = arith.mulf %297, %297 : vector<48x32xf32>
    %cst_111 = arith.constant dense<0.000000e+00> : vector<48xf32>
    %299 = vector.multi_reduction <add>, %298, %cst_111 [1] : vector<48x32xf32> to vector<48xf32>
    %300 = vector.shape_cast %299 : vector<48xf32> to vector<48x1xf32>
    %cst_112 = arith.constant 3.200000e+01 : f32
    %301 = vector.broadcast %cst_112 : f32 to vector<48x1xf32>
    %302 = arith.divf %300, %301 : vector<48x1xf32>
    %cst_113 = arith.constant 9.99999974E-6 : f32
    %303 = vector.broadcast %cst_113 : f32 to vector<48x1xf32>
    %304 = arith.addf %302, %303 : vector<48x1xf32>
    %305 = math.rsqrt %304 : vector<48x1xf32>
    %306 = vector.broadcast %305 : vector<48x1xf32> to vector<48x32xf32>
    %307 = arith.mulf %297, %306 : vector<48x32xf32>
    %308 = vector.broadcast %189 : vector<1x32xf32> to vector<48x32xf32>
    %309 = arith.mulf %307, %308 : vector<48x32xf32>
    %310 = vector.broadcast %190 : vector<1x32xf32> to vector<48x32xf32>
    %311 = arith.addf %309, %310 : vector<48x32xf32>
    %cst_114 = arith.constant dense<0.000000e+00> : vector<48x64xf32>
    %312 = tpu.matmul %311, %180, %cst_114 {dimension_numbers = #tpu.dot_dimension_numbers<[1], [0], [0], [1], [0, 0, 1, 1], [], []>} : vector<48x32xf32>, vector<32x64xf32>, vector<48x64xf32> -> vector<48x64xf32>
    %313 = vector.broadcast %182 : vector<1x64xf32> to vector<48x64xf32>
    %314 = arith.addf %312, %313 : vector<48x64xf32>
    %cst_115 = arith.constant 0.000000e+00 : f32
    %315 = vector.broadcast %cst_115 : f32 to vector<48x64xf32>
    %316 = arith.maximumf %314, %315 : vector<48x64xf32>
    %cst_116 = arith.constant dense<0.000000e+00> : vector<48x32xf32>
    %317 = tpu.matmul %316, %184, %cst_116 {dimension_numbers = #tpu.dot_dimension_numbers<[1], [0], [0], [1], [0, 0, 1, 1], [], []>} : vector<48x64xf32>, vector<64x32xf32>, vector<48x32xf32> -> vector<48x32xf32>
    %318 = vector.broadcast %188 : vector<1x32xf32> to vector<48x32xf32>
    %319 = arith.addf %317, %318 : vector<48x32xf32>
    %320 = arith.addf %311, %319 : vector<48x32xf32>
    %cst_117 = arith.constant dense<0.000000e+00> : vector<48xf32>
    %321 = vector.multi_reduction <add>, %320, %cst_117 [1] : vector<48x32xf32> to vector<48xf32>
    %322 = vector.shape_cast %321 : vector<48xf32> to vector<48x1xf32>
    %cst_118 = arith.constant 3.200000e+01 : f32
    %323 = vector.broadcast %cst_118 : f32 to vector<48x1xf32>
    %324 = arith.divf %322, %323 : vector<48x1xf32>
    %325 = vector.broadcast %324 : vector<48x1xf32> to vector<48x32xf32>
    %326 = arith.subf %320, %325 : vector<48x32xf32>
    %327 = arith.mulf %326, %326 : vector<48x32xf32>
    %cst_119 = arith.constant dense<0.000000e+00> : vector<48xf32>
    %328 = vector.multi_reduction <add>, %327, %cst_119 [1] : vector<48x32xf32> to vector<48xf32>
    %329 = vector.shape_cast %328 : vector<48xf32> to vector<48x1xf32>
    %cst_120 = arith.constant 3.200000e+01 : f32
    %330 = vector.broadcast %cst_120 : f32 to vector<48x1xf32>
    %331 = arith.divf %329, %330 : vector<48x1xf32>
    %cst_121 = arith.constant 9.99999974E-6 : f32
    %332 = vector.broadcast %cst_121 : f32 to vector<48x1xf32>
    %333 = arith.addf %331, %332 : vector<48x1xf32>
    %334 = math.rsqrt %333 : vector<48x1xf32>
    %335 = vector.broadcast %334 : vector<48x1xf32> to vector<48x32xf32>
    %336 = arith.mulf %326, %335 : vector<48x32xf32>
    %337 = vector.broadcast %189 : vector<1x32xf32> to vector<48x32xf32>
    %338 = arith.mulf %336, %337 : vector<48x32xf32>
    %339 = vector.broadcast %190 : vector<1x32xf32> to vector<48x32xf32>
    %340 = arith.addf %338, %339 : vector<48x32xf32>
    %c0_122 = arith.constant 0 : index
    %c0_123 = arith.constant 0 : index
    %341 = vector.load %arg11[%c0_122, %c0_123] : memref<48x32xf32, #tpu.memory_space<vmem>>, vector<48x32xf32>
    tpu.vector_store %arg11[%c0_122, %c0_123], %340 {strides = array<i32>} : memref<48x32xf32, #tpu.memory_space<vmem>>, vector<48x32xf32>,
    return
  }
  func.func @transform_0(%arg0: i32) -> (i32, i32) {
    %c0_i32 = arith.constant 0 : i32
    %c0_i32_0 = arith.constant 0 : i32
    return %arg0, %c0_i32 : i32, i32
  }
  func.func @transform_1(%arg0: i32) -> (i32, i32) {
    %c0_i32 = arith.constant 0 : i32
    %c0_i32_0 = arith.constant 0 : i32
    %c0_i32_1 = arith.constant 0 : i32
    return %c0_i32, %c0_i32_0 : i32, i32
  }
  func.func @transform_2(%arg0: i32) -> (i32, i32) {
    %c0_i32 = arith.constant 0 : i32
    %c0_i32_0 = arith.constant 0 : i32
    %c0_i32_1 = arith.constant 0 : i32
    return %c0_i32, %c0_i32_0 : i32, i32
  }
  func.func @transform_3(%arg0: i32) -> (i32, i32, i32) {
    %c0_i32 = arith.constant 0 : i32
    %c0_i32_0 = arith.constant 0 : i32
    %c0_i32_1 = arith.constant 0 : i32
    %c0_i32_2 = arith.constant 0 : i32
    return %c0_i32, %c0_i32_0, %c0_i32_1 : i32, i32, i32
  }
  func.func @transform_4(%arg0: i32) -> (i32, i32, i32) {
    %c0_i32 = arith.constant 0 : i32
    %c0_i32_0 = arith.constant 0 : i32
    %c0_i32_1 = arith.constant 0 : i32
    %c0_i32_2 = arith.constant 0 : i32
    return %c0_i32, %c0_i32_0, %c0_i32_1 : i32, i32, i32
  }
  func.func @transform_5(%arg0: i32) -> (i32, i32, i32) {
    %c0_i32 = arith.constant 0 : i32
    %c0_i32_0 = arith.constant 0 : i32
    %c0_i32_1 = arith.constant 0 : i32
    %c0_i32_2 = arith.constant 0 : i32
    return %c0_i32, %c0_i32_0, %c0_i32_1 : i32, i32, i32
  }
  func.func @transform_6(%arg0: i32) -> (i32, i32, i32) {
    %c0_i32 = arith.constant 0 : i32
    %c0_i32_0 = arith.constant 0 : i32
    %c0_i32_1 = arith.constant 0 : i32
    %c0_i32_2 = arith.constant 0 : i32
    return %c0_i32, %c0_i32_0, %c0_i32_1 : i32, i32, i32
  }
  func.func @transform_7(%arg0: i32) -> (i32, i32, i32) {
    %c0_i32 = arith.constant 0 : i32
    %c0_i32_0 = arith.constant 0 : i32
    %c0_i32_1 = arith.constant 0 : i32
    %c0_i32_2 = arith.constant 0 : i32
    return %c0_i32, %c0_i32_0, %c0_i32_1 : i32, i32, i32
  }
  func.func @transform_8(%arg0: i32) -> (i32, i32, i32) {
    %c0_i32 = arith.constant 0 : i32
    %c0_i32_0 = arith.constant 0 : i32
    %c0_i32_1 = arith.constant 0 : i32
    %c0_i32_2 = arith.constant 0 : i32
    return %c0_i32, %c0_i32_0, %c0_i32_1 : i32, i32, i32
  }
  func.func @transform_9(%arg0: i32) -> (i32, i32, i32) {
    %c0_i32 = arith.constant 0 : i32
    %c0_i32_0 = arith.constant 0 : i32
    %c0_i32_1 = arith.constant 0 : i32
    %c0_i32_2 = arith.constant 0 : i32
    return %c0_i32, %c0_i32_0, %c0_i32_1 : i32, i32, i32
  }
  func.func @transform_10(%arg0: i32) -> (i32, i32) {
    %c0_i32 = arith.constant 0 : i32
    %c0_i32_0 = arith.constant 0 : i32
    return %arg0, %c0_i32 : i32, i32
  }
}

</mosaic_0001>

<bundles_post_ra>
// kernel: tpu_custom_call.1
= control target key start
LH: loop header
LB: loop body
LE: loop exit
PB: predicated region body
PF: predicated region fallthrough
CT: control target
= control target key end

     0   :  { %s5818_s13 = smov 0   ;;  %s7242_s0 = inlined_call_operand.vmem [shape: f32[96,5], index: 0, kind: input, shape index: {}]   ;;  %s7243_s1 = inlined_call_operand.vmem [shape: f32[5,32], index: 1, kind: input, shape index: {}]   ;;  %s7244_s2 = inlined_call_operand.vmem [shape: f32[48,32], index: 2, kind: input, shape index: {}]   ;;  %s7245_s3 = inlined_call_operand.vmem [shape: f32[2,32,96], index: 3, kind: input, shape index: {}]   ;;  %s7246_s4 = inlined_call_operand.vmem [shape: f32[2,1,96], index: 4, kind: input, shape index: {}]   ;;  %s7247_s5 = inlined_call_operand.vmem [shape: f32[2,32,32], index: 5, kind: input, shape index: {}]   ;;  %s7248_s6 = inlined_call_operand.vmem [shape: f32[2,32,64], index: 6, kind: input, shape index: {}]   ;;  %s7249_s7 = inlined_call_operand.vmem [shape: f32[2,1,64], index: 7, kind: input, shape index: {}]   ;;  %s7250_s8 = inlined_call_operand.vmem [shape: f32[2,64,32], index: 8, kind: input, shape index: {}]   ;;  %s7251_s9 = inlined_call_operand.vmem [shape: f32[2,4,32], index: 9, kind: input, shape index: {}]   ;;  %s7252_s10 = inlined_call_operand.vmem [shape: f32[96,32], index: 10, kind: output, shape index: {}]  }
   0x1 LB: > { %s5125_s14 = sadd.s32 4294967295, %s5749_s13   ;;  %p5129_p0 = scmp.ge.s32.totalorder %s5749_s13, 1  ;;  %s5749_s13 = sphi %s5818_s13, %s20_s13  }
   0x2   : > { %p313_p1 = scmp.lt.s32.totalorder %s5749_s13, 3 }
   0x4   : > { %p314_p2 = pnand %p5129_p0, %p313_p1 }
   0x5   : > { %s351_s17 = smul.u32 (!%p314_p2), 6, %s5125_s14  ;;  %s5751_s27 = smov (!%p314_p2), 96  }
   0x6   : > { %317 = sbr.rel (%p314_p2) target bundleno = 6401 (0x1901), region = 60  ;;  %s5752_s28 = smov (!%p314_p2), 88  }
   0x7   : > { %p352_p3 = scmp.lt.s32.totalorder (!%p314_p2), %s351_s17, 11  ;;  %s5753_s29 = smov (!%p314_p2), 64  }
   0x8   : > { %s5754_s30 = smov (!%p314_p2), 120   ;;  %s5755_s11 = smov (!%p314_p2), 56  }
   0x9   : > { %s5756_s12 = smov (!%p314_p2), 80   ;;  %s5757_s14 = smov (!%p314_p2), 112  }
   0xa   : > { %s5758_s15 = smov (!%p314_p2), 48   ;;  %s5759_s20 = smov (!%p314_p2), 104  }
   0xb   : > { %v369_v0 = vld [vmem:[%s7243_s1] sm:$0x1f]  ;;  %vm395_vm0 = vcmask 1044480   ;;  %s7254_s17 = smov (!%p352_p3, %s351_s17), 11  ;;  %vm376_vm1 = vcmask 39936   ;;  %v437_v3 = vld [vmem:[%s7245_s3 + $0x18] sm:$0xff] }
   0xc   : > { %5132 = vmatpush.msk.msra.mxu0 %vm395_vm0, %v369_v0  ;;  %5392 = vmatpush.msk.msra.mxu1 %vm395_vm0, %v369_v0  ;;  %s5130_s18 = sshll.u32 %s7254_s17, 3  ;;  %v436_v4 = vld [vmem:[%s7245_s3 + $0x10] sm:$0xff]  ;;  %v435_v9 = vld [vmem:[%s7245_s3 + $0x8] sm:$0xff]  ;;  %v434_v10 = vld [vmem:[%s7245_s3] sm:$0xff]  ;;  %vm460_vm2 = vcmask 261120   ;;  %vm517_vm3 = vcmask 64512  }
   0xd   : > { %s355_s21 = scalar_lea.vmem %s7242_s0, %s5130_s18  ;;  %v370_v11 = vld [vmem:[%s7244_s2] sm:$0xff]  ;;  %v371_v14 = vld [vmem:[%s7244_s2 + $0x8] sm:$0xff]  ;;  %v372_v17 = vld [vmem:[%s7244_s2 + $0x10] sm:$0xff]  ;;  %s5761_s22 = smov 40  }
   0xe   : > { %v363_v1 = vld [vmem:[%s355_s21] sm:$0xff]  ;;  %v368_v2 = vld [vmem:[%s355_s21 + $0x28] sm:$0xff]  ;;  %491 = vmatpush.msrb.mxu1 %v437_v3  ;;  %v365_v6 = vld [vmem:[%s355_s21 + $0x10] sm:$0xff] }
   0xf   : > { %5133 = vmatmul.msk.f32.vlgmr.msra.gmra.mxu0 %vm376_vm1, %v363_v1  ;;  %5138 = vmatmul.msk.f32.vlgmr.msra.gmra.mxu1 %vm376_vm1, %v368_v2  ;;  %v364_v5 = vld [vmem:[%s355_s21 + $0x8] sm:$0xff]  ;;  %v366_v7 = vld [vmem:[%s355_s21 + $0x18] sm:$0xff]  ;;  %v367_v8 = vld [vmem:[%s355_s21 + $0x20] sm:$0xff]  ;;  %s5760_s21 = smov 72  }
  0x10   : > { %492 = vmatpush.msrb.mxu1 %v436_v4  ;;  %v373_v20 = vld [vmem:[%s7244_s2 + $0x18] sm:$0xff]  ;;  %v374_v23 = vld [vmem:[%s7244_s2 + $0x20] sm:$0xff]  ;;  %v375_v26 = vld [vmem:[%s7244_s2 + $0x28] sm:$0xff] }
  0x11   : > { %v5497_v29 = vld [vmem:[%s7246_s4] ss:$0 sm:$0xff] }
  0x12   : > { %493 = vmatpush.msrb.mxu1 %v435_v9 }
  0x14   : > { %494 = vmatpush.msrb.mxu1 %v434_v10 }
  0x17   : > { %5134 = vmatmul.msk.f32.gmra.mxu0 %vm376_vm1, %v364_v5 }
  0x1f   : > { %5135 = vmatmul.msk.f32.gmra.mxu0 %vm376_vm1, %v365_v6 }
  0x27   : > { %5136 = vmatmul.msk.f32.gmra.mxu0 %vm376_vm1, %v366_v7 }
  0x2f   : > { %5137 = vmatmul.msk.f32.gmra.mxu0 %vm376_vm1, %v367_v8  ;;  %vm2546_vm1 = vcmask 523264  }
  0x8c   : > { %v416_v12 = vpop.f32.mrf.mxu0  ;;  %v431_v27 = vpop.f32.mrf.mxu1 }
  0x8d   : > { %v5858_v13 = vadd.f32 %v416_v12, %v370_v11  ;;  %v5893_v28 = vadd.f32 %v431_v27, %v375_v26 }
  0x8f   : > { %5139 = vmatmul.msk.f32.vlgmr.msrb.gmra.mxu1 %vm460_vm2, %v5858_v13 }
  0x94   : > { %v419_v15 = vpop.f32.mrf.mxu0 }
  0x95   : > { %v5865_v16 = vadd.f32 %v419_v15, %v371_v14 }
  0x97   : > { %5140 = vmatmul.msk.f32.gmra.mxu1 %vm460_vm2, %v5865_v16 }
  0x9c   : > { %v422_v18 = vpop.f32.mrf.mxu0 }
  0x9d   : > { %v5872_v19 = vadd.f32 %v422_v18, %v372_v17 }
  0x9f   : > { %5141 = vmatmul.msk.f32.gmra.mxu1 %vm460_vm2, %v5872_v19 }
  0xa4   : > { %v425_v21 = vpop.f32.mrf.mxu0 }
  0xa5   : > { %v5879_v22 = vadd.f32 %v425_v21, %v373_v20 }
  0xa7   : > { %5142 = vmatmul.msk.f32.gmra.mxu1 %vm460_vm2, %v5879_v22 }
  0xac   : > { %v428_v24 = vpop.f32.mrf.mxu0 }
  0xad   : > { %v5886_v25 = vadd.f32 %v428_v24, %v374_v23 }
  0xaf   : > { %5143 = vmatmul.msk.f32.gmra.mxu1 %vm460_vm2, %v5886_v25 }
  0xb7   : > { %5144 = vmatmul.msk.f32.gmra.mxu1 %vm460_vm2, %v5893_v28 }
 0x10c   : > { %v496_v30 = vpop.f32.mrf.mxu1 }
 0x10d   : > { %v5900_v31 = vadd.f32 %v5497_v29, %v496_v30 }
 0x10f   : > { %515 = vrot.lane.b32.xlu0 %v5900_v31, %s5751_s27 }
 0x114   : > { %v499_v32 = vpop.f32.mrf.mxu1 }
 0x115   : > { %v5908_v36 = vadd.f32 %v5497_v29, %v499_v32 }
 0x11c   : > { %v502_v33 = vpop.f32.mrf.mxu1 }
 0x11d   : > { %v5904_v34 = vadd.f32 %v5497_v29, %v502_v33 }
 0x11f   : > { %570 = vrot.lane.b32.xlu0 %v5904_v34, %s5751_s27 }
 0x124   : > { %v505_v35 = vpop.f32.mrf.mxu1 }
 0x125   : > { %v5910_v37 = vadd.f32 %v5497_v29, %v505_v35 }
 0x127   : > { %597 = vrot.lane.b32.xlu2 %v5910_v37, %s5751_s27  ;;  %543 = vrot.lane.b32.xlu0 %v5908_v36, %s5751_s27 }
 0x12c   : > { %v508_v38 = vpop.f32.mrf.mxu1 }
 0x12d   : > { %v5916_v39 = vadd.f32 %v5497_v29, %v508_v38 }
 0x12f   : > { %624 = vrot.lane.b32.xlu1 %v5916_v39, %s5751_s27 }
 0x134   : > { %v511_v40 = vpop.f32.mrf.mxu1 }
 0x135   : > { %v5920_v41 = vadd.f32 %v5497_v29, %v511_v40 }
 0x137   : > { %651 = vrot.lane.b32.xlu0 %v5920_v41, %s5751_s27 }
 0x13f   : > { %907 = vrot.lane.b32.xlu0 %v5900_v31, %s5752_s28 }
 0x181   : > { %v516_v42 = vpop.permute.xlu0 %515  ;;  %v598_v45 = vpop.permute.xlu2 %597 }
 0x182   : > { %5145 = vmatpush.xpose.msk.msra.mxu1 %vm517_vm3, %v516_v42 }
 0x185   : > { %5146 = vmatmul.msk.f32.vlgmr.msra.gmra.mxu1 %vm517_vm3, %v5900_v31 }
 0x191   : > { %v571_v43 = vpop.permute.xlu0 %570 }
 0x192   : > { %5149 = vmatpush.xpose.msk.msrb.mxu1 %vm517_vm3, %v571_v43 }
 0x195   : > { %5150 = vmatmul.msk.f32.vlgmr.msrb.gmra.mxu1 %vm517_vm3, %v5904_v34 }
 0x199   : > { %v544_v44 = vpop.permute.xlu0 %543 }
 0x19a   : > { %5147 = vmatpush.xpose.msk.msra.mxu3 %vm517_vm3, %v544_v44 }
 0x19d   : > { %5148 = vmatmul.msk.f32.vlgmr.msra.gmra.mxu3 %vm517_vm3, %v5908_v36 }
 0x19e   : > { %5151 = vmatpush.xpose.msk.msrb.mxu3 %vm517_vm3, %v598_v45 }
 0x1a1   : > { %v625_v46 = vpop.permute.xlu1 %624 }
 0x1a2   : > { %5153 = vmatpush.xpose.msk.msra.mxu2 %vm517_vm3, %v625_v46 }
 0x1a5   : > { %5152 = vmatmul.msk.f32.vlgmr.msrb.gmra.mxu3 %vm517_vm3, %v5910_v37  ;;  %5154 = vmatmul.msk.f32.vlgmr.msra.gmra.mxu2 %vm517_vm3, %v5916_v39 }
 0x1a9   : > { %v652_v47 = vpop.permute.xlu0 %651 }
 0x1aa   : > { %5155 = vmatpush.xpose.msk.msra.mxu3 %vm517_vm3, %v652_v47 }
 0x1ad   : > { %5156 = vmatmul.msk.f32.vlgmr.msra.gmra.mxu3 %vm517_vm3, %v5920_v41 }
 0x1b1   : > { %v908_v48 = vpop.permute.xlu0 %907 }
 0x1b2   : > { %5163 = vmatpush.xpose.msk.msrb.mxu0 %vm517_vm3, %v908_v48 }
 0x202   : > { %v539_v49 = vpop.f32.mrf.mxu1 }
 0x203   : > { %v677_v50 = vmul.f32 0.35355338, %v539_v49 }
 0x205   : > { %v683_v51 = vsel %vm517_vm3, %v677_v50, -inf }
 0x206   : > { %684 = vmax.xlane.f32.xlu1 %v683_v51 }
 0x212   : > { %v593_v52 = vpop.f32.mrf.mxu1 }
 0x213   : > { %v679_v53 = vmul.f32 0.35355338, %v593_v52 }
 0x215   : > { %v689_v54 = vsel %vm517_vm3, %v679_v53, -inf }
 0x216   : > { %690 = vmax.xlane.f32.xlu2 %v689_v54 }
 0x21f   : > { %749 = vrot.lane.b32.xlu1 %v5900_v31, %s5753_s29 }
 0x220   : > { %v566_v58 = vpop.f32.mrf.mxu3 }
 0x221   : > { %v678_v23 = vmul.f32 0.35355338, %v566_v58 }
 0x223   : > { %v686_v24 = vsel %vm517_vm3, %v678_v23, -inf }
 0x227   : > { %905 = vrot.lane.b32.xlu1 %v5900_v31, %s5754_s30 }
 0x228   : > { %v647_v55 = vpop.f32.mrf.mxu2  ;;  %v620_v59 = vpop.f32.mrf.mxu3 }
 0x229   : > { %v681_v56 = vmul.f32 0.35355338, %v647_v55  ;;  %v5960_v60 = vmul.f32 0.35355338, %v620_v59 }
 0x22b   : > { %v695_v57 = vsel %vm517_vm3, %v681_v56, -inf  ;;  %v692_v61 = vsel %vm517_vm3, %v5960_v60, -inf }
 0x22c   : > { %696 = vmax.xlane.f32.xlu2 %v695_v57  ;;  %v5417_v57 = vpack.i.bf16 %v5910_v37, %v5908_v36 }
 0x22f   : > { %801 = vrot.lane.b32.xlu1 %v5904_v34, %s5753_s29 }
 0x230   : > { %v674_v18 = vpop.f32.mrf.mxu3 }
 0x231   : > { %v5976_v20 = vmul.f32 0.35355338, %v674_v18 }
 0x233   : > { %v698_v21 = vsel %vm517_vm3, %v5976_v20, -inf }
 0x237   : > { %1017 = vrot.lane.b32.xlu1 %v5916_v39, %s5754_s30 }
 0x23f   : > { %935 = vrot.lane.b32.xlu1 %v5908_v36, %s5752_s28 }
 0x247   : > { %1047 = vrot.lane.b32.xlu1 %v5920_v41, %s5752_s28 }
 0x271   : > { %693 = vmax.xlane.f32.xlu1 %v692_v61 }
 0x279   : > { %v685_v62 = vpop.xlane.xlu1 %684 }
 0x27a   : > { %v701_v63 = vsub.f32 %v677_v50, %v685_v62 }
 0x27c   : > { %v707_v0 = vmul.f32 1.442695, %v701_v63 }
 0x27e   : > { %5501 = vpow2.f32 %v707_v0 }
 0x284   : > { %v5502_v1 = vpop.eup %5501 }
 0x285   : > { %v719_v2 = vsel %vm517_vm3, %v5502_v1, 0.0 }
 0x286   : > { %720 = vadd.xlane.f32.xlu0 %v719_v2 }
 0x289   : > { %v691_v3 = vpop.xlane.xlu2 %690 }
 0x28a   : > { %v703_v4 = vsub.f32 %v679_v53, %v691_v3  ;;  %v5422_v3 = vpack.i.bf16 %v5916_v39, %v5900_v31 }
 0x28c   : > { %v711_v5 = vmul.f32 1.442695, %v703_v4 }
 0x28e   : > { %5503 = vpow2.f32 %v711_v5 }
 0x291   : > { %v750_v6 = vpop.permute.xlu1 %749 }
 0x292   : > { %770 = vmatpush.msrb.mxu2 %v750_v6 }
 0x294   : > { %v5504_v7 = vpop.eup %5503 }
 0x295   : > { %v725_v8 = vsel %vm517_vm3, %v5504_v7, 0.0 }
 0x296   : > { %726 = vadd.xlane.f32.xlu2 %v725_v8 }
 0x299   : > { %v906_v9 = vpop.permute.xlu1 %905 }
 0x29a   : > { %853 = vrot.lane.b32.xlu0 %v5916_v39, %s5753_s29  ;;  %5164 = vmatmul.msk.f32.vlgmr.msrb.gmra.mxu0 %vm517_vm3, %v906_v9 }
 0x29f   : > { %v697_v10 = vpop.xlane.xlu2 %696 }
 0x2a0   : > { %v705_v11 = vsub.f32 %v681_v56, %v697_v10 }
 0x2a1   : > { %v802_v12 = vpop.permute.xlu1 %801 }
 0x2a2   : > { %v715_v14 = vmul.f32 1.442695, %v705_v11  ;;  %933 = vrot.lane.b32.xlu0 %v5908_v36, %s5754_s30  ;;  %822 = vmatpush.msra.mxu2 %v802_v12 }
 0x2a4   : > { %5505 = vpow2.f32 %v715_v14 }
 0x2a9   : > { %v1018_v30 = vpop.permute.xlu1 %1017 }
 0x2aa   : > { %v5506_v15 = vpop.eup %5505  ;;  %1045 = vrot.lane.b32.xlu0 %v5920_v41, %s5754_s30 }
 0x2ab   : > { %v731_v17 = vsel %vm517_vm3, %v5506_v15, 0.0 }
 0x2ac   : > { %732 = vadd.xlane.f32.xlu2 %v731_v17 }
 0x2b1   : > { %v936_v40 = vpop.permute.xlu1 %935 }
 0x2b9   : > { %v1048_v49 = vpop.permute.xlu1 %1047 }
 0x2c4   : > { %1019 = vrot.lane.b32.xlu2 %v5916_v39, %s5752_s28 }
 0x2d4   : > { %699 = vmax.xlane.f32.xlu0 %v698_v21 }
 0x2e4   : > { %v694_v2 = vpop.xlane.xlu1 %693 }
 0x2e5   : > { %v704_v4 = vsub.f32 %v5960_v60, %v694_v2 }
 0x2e7   : > { %v713_v6 = vmul.f32 1.442695, %v704_v4 }
 0x2ed   : > { %687 = vmax.xlane.f32.xlu2 %v686_v24 }
 0x2f9   : > { %v721_v26 = vpop.xlane.xlu0 %720 }
 0x2fa   : > { %5507 = vrcp.f32 %v721_v26 }
 0x300   : > { %v5508_v27 = vpop.eup %5507 }
 0x301   : > { %v743_v29 = vmul.f32 %v5508_v27, %v5502_v1 }
 0x303   : > { %5157 = vmatmul.msk.f32.vlgmr.msrb.gmra.mxu2 %vm517_vm3, %v743_v29 }
 0x309   : > { %v727_v32 = vpop.xlane.xlu2 %726 }
 0x30a   : > { %5509 = vrcp.f32 %v727_v32 }
 0x30c   : > { %v854_v33 = vpop.permute.xlu0 %853 }
 0x30d   : > { %874 = vmatpush.msrb.mxu2 %v854_v33 }
 0x310   : > { %v5510_v35 = vpop.eup %5509 }
 0x311   : > { %v745_v38 = vmul.f32 %v5510_v35, %v5504_v7 }
 0x313   : > { %5159 = vmatmul.msk.f32.vlgmr.msra.gmra.mxu2 %vm517_vm3, %v745_v38 }
 0x314   : > { %5165 = vmatpush.xpose.msk.msra.mxu2 %vm517_vm3, %v936_v40  ;;  %v934_v50 = vpop.permute.xlu0 %933 }
 0x317   : > { %v930_v42 = vpop.f32.mrf.mxu0 }
 0x318   : > { %v1073_v43 = vmul.f32 0.35355338, %v930_v42 }
 0x31a   : > { %v1079_v44 = vsel %vm517_vm3, %v1073_v43, -inf }
 0x31b   : > { %1080 = vmax.xlane.f32.xlu2 %v1079_v44 }
 0x31c   : > { %v1046_v51 = vpop.permute.xlu0 %1045 }
 0x31f   : > { %v733_v45 = vpop.xlane.xlu2 %732 }
 0x320   : > { %5511 = vrcp.f32 %v733_v45 }
 0x326   : > { %v5512_v46 = vpop.eup %5511 }
 0x327   : > { %v747_v47 = vmul.f32 %v5512_v46, %v5506_v15  ;;  %v1020_v48 = vpop.permute.xlu2 %1019 }
 0x328   : > { %5171 = vmatpush.xpose.msk.msra.mxu0 %vm517_vm3, %v1020_v48 }
 0x329   : > { %5161 = vmatmul.msk.f32.vlgmr.msrb.gmra.mxu2 %vm517_vm3, %v747_v47 }
 0x32a   : > { %5173 = vmatpush.xpose.msk.msrb.mxu2 %vm517_vm3, %v1048_v49 }
 0x32b   : > { %5172 = vmatmul.msk.f32.vlgmr.msra.gmra.mxu0 %vm517_vm3, %v1018_v30 }
 0x331   : > { %5166 = vmatmul.msk.f32.vlgmr.msra.gmra.mxu2 %vm517_vm3, %v934_v50 }
 0x333   : > { %991 = vrot.lane.b32.xlu2 %v5910_v37, %s5752_s28 }
 0x339   : > { %5174 = vmatmul.msk.f32.vlgmr.msrb.gmra.mxu2 %vm517_vm3, %v1046_v51 }
 0x360   : > { %v688_v52 = vpop.xlane.xlu2 %687 }
 0x361   : > { %v702_v53 = vsub.f32 %v678_v23, %v688_v52  ;;  %v700_v23 = vpop.xlane.xlu0 %699 }
 0x362   : > { %v706_v40 = vsub.f32 %v5976_v20, %v700_v23 }
 0x363   : > { %v709_v54 = vmul.f32 1.442695, %v702_v53 }
 0x364   : > { %v717_v44 = vmul.f32 1.442695, %v706_v40 }
 0x365   : > { %5513 = vpow2.f32 %v709_v54 }
 0x36b   : > { %v5514_v55 = vpop.eup %5513 }
 0x36c   : > { %v722_v56 = vsel %vm517_vm3, %v5514_v55, 0.0 }
 0x36d   : > { %723 = vadd.xlane.f32.xlu0 %v722_v56 }
 0x381   : > { %5418 = vrot.lane.b32.xlu0 %v5417_v57, %s5753_s29 }
 0x386   : > { %v6008_v1 = vpop.f32.mrf.mxu2 }
 0x389   : > { %879 = vrot.lane.b32.xlu0 %v5920_v41, %s5753_s29 }
 0x38e   : > { %v1081_v58 = vpop.xlane.xlu2 %1080 }
 0x38f   : > { %v1097_v59 = vsub.f32 %v1073_v43, %v1081_v58 }
 0x391   : > { %v1103_v61 = vmul.f32 1.442695, %v1097_v59  ;;  %963 = vrot.lane.b32.xlu0 %v5904_v34, %s5752_s28 }
 0x393   : > { %5515 = vpow2.f32 %v1103_v61 }
 0x394   : > { %5517 = vpow2.f32 %v713_v6 }
 0x396   : > { %v992_v62 = vpop.permute.xlu2 %991  ;;  %v6014_v5 = vpop.f32.mrf.mxu2 }
 0x397   : > { %5169 = vmatpush.xpose.msk.msra.mxu1 %vm517_vm3, %v992_v62 }
 0x399   : > { %v6002_v63 = vpop.eup %5515  ;;  %961 = vrot.lane.b32.xlu0 %v5904_v34, %s5754_s30 }
 0x39a   : > { %v1115_v0 = vsel %vm517_vm3, %v6002_v63, 0.0  ;;  %v5518_v11 = vpop.eup %5517 }
 0x39b   : > { %1116 = vadd.xlane.f32.xlu2 %v1115_v0  ;;  %v728_v60 = vsel %vm517_vm3, %v5518_v11, 0.0 }
 0x3a1   : > { %5423 = vrot.lane.b32.xlu0 %v5422_v3, %s5755_s11 }
 0x3a8   : > { %v1042_v7 = vpop.f32.mrf.mxu0 }
 0x3a9   : > { %v1077_v8 = vmul.f32 0.35355338, %v1042_v7  ;;  %1409 = vrot.lane.b32.xlu0 %v5900_v31, %s5756_s12 }
 0x3ab   : > { %v1091_v9 = vsel %vm517_vm3, %v1077_v8, -inf }
 0x3ac   : > { %1092 = vmax.xlane.f32.xlu1 %v1091_v9  ;;  %v6019_v10 = vpop.f32.mrf.mxu2 }
 0x3b1   : > { %1463 = vrot.lane.b32.xlu0 %v5904_v34, %s5757_s14 }
 0x3b4   : > { %729 = vadd.xlane.f32.xlu1 %v728_v60  ;;  %v958_v12 = vpop.f32.mrf.mxu2 }
 0x3b5   : > { %v1074_v14 = vmul.f32 0.35355338, %v958_v12 }
 0x3b7   : > { %v1082_v15 = vsel %vm517_vm3, %v1074_v14, -inf }
 0x3b8   : > { %1083 = vmax.xlane.f32.xlu2 %v1082_v15 }
 0x3b9   : > { %1275 = vrot.lane.b32.xlu0 %v5920_v41, %s5755_s11 }
 0x3bc   : > { %v1070_v17 = vpop.f32.mrf.mxu2 }
 0x3bd   : > { %v1078_v18 = vmul.f32 0.35355338, %v1070_v17 }
 0x3bf   : > { %v1094_v21 = vsel %vm517_vm3, %v1078_v18, -inf }
 0x3c0   : > { %1095 = vmax.xlane.f32.xlu2 %v1094_v21 }
 0x3c1   : > { %1435 = vrot.lane.b32.xlu0 %v5908_v36, %s5757_s14 }
 0x3cd   : > { %989 = vrot.lane.b32.xlu1 %v5910_v37, %s5754_s30 }
 0x3d8   : > { %1407 = vrot.lane.b32.xlu2 %v5900_v31, %s5757_s14 }
 0x3e0   : > { %v724_v24 = vpop.xlane.xlu0 %723 }
 0x3e1   : > { %5519 = vrcp.f32 %v724_v24 }
 0x3e7   : > { %v5520_v26 = vpop.eup %5519 }
 0x3e8   : > { %v744_v32 = vmul.f32 %v5520_v26, %v5514_v55 }
 0x3f3   : > { %v5419_v27 = vpop.permute.xlu0 %5418 }
 0x3f4   : > { %v5421_v29 = vunpack.i.h.bf16 %v5419_v27  ;;  %v5420_v30 = vunpack.i.l.bf16 %v5419_v27 }
 0x3f6   : > { %796 = vmatpush.msrb.mxu3 %v5420_v30 }
 0x3f7   : > { %5158 = vmatmul.msk.f32.vlgmr.msrb.gmra.mxu3 %vm517_vm3, %v744_v32 }
 0x3f8   : > { %848 = vmatpush.msra.mxu3 %v5421_v29 }
 0x3fb   : > { %v880_v33 = vpop.permute.xlu0 %879 }
 0x3fc   : > { %900 = vmatpush.msrb.mxu3 %v880_v33 }
 0x403   : > { %v964_v20 = vpop.permute.xlu0 %963 }
 0x40b   : > { %v962_v2 = vpop.permute.xlu0 %961 }
 0x40e   : > { %v1117_v43 = vpop.xlane.xlu2 %1116 }
 0x413   : > { %v5424_v3 = vpop.permute.xlu0 %5423 }
 0x414   : > { %v5425_v12 = vunpack.i.l.bf16 %v5424_v3  ;;  %v5426_v15 = vunpack.i.h.bf16 %v5424_v3 }
 0x41b   : > { %v1410_v4 = vpop.permute.xlu0 %1409 }
 0x41f   : > { %v1093_v35 = vpop.xlane.xlu1 %1092 }
 0x420   : > { %v1101_v38 = vsub.f32 %v1077_v8, %v1093_v35 }
 0x422   : > { %v1111_v42 = vmul.f32 1.442695, %v1101_v38 }
 0x423   : > { %v1464_v6 = vpop.permute.xlu0 %1463 }
 0x424   : > { %5521 = vpow2.f32 %v1111_v42 }
 0x427   : > { %v730_v45 = vpop.xlane.xlu1 %729 }
 0x428   : > { %5523 = vrcp.f32 %v730_v45 }
 0x429   : > { %5525 = vpow2.f32 %v717_v44 }
 0x42a   : > { %v6036_v46 = vpop.eup %5521 }
 0x42b   : > { %v1084_v47 = vpop.xlane.xlu2 %1083  ;;  %v1127_v48 = vsel %vm517_vm3, %v6036_v46, 0.0  ;;  %v1276_v9 = vpop.permute.xlu0 %1275 }
 0x42c   : > { %v1098_v49 = vsub.f32 %v1074_v14, %v1084_v47  ;;  %1128 = vadd.xlane.f32.xlu1 %v1127_v48 }
 0x42e   : > { %v5524_v50 = vpop.eup %5523  ;;  %v1105_v51 = vmul.f32 1.442695, %v1098_v49 }
 0x42f   : > { %v746_v52 = vmul.f32 %v5524_v50, %v5518_v11  ;;  %v5526_v53 = vpop.eup %5525 }
 0x430   : > { %5527 = vpow2.f32 %v1105_v51  ;;  %v734_v55 = vsel %vm517_vm3, %v5526_v53, 0.0 }
 0x431   : > { %5160 = vmatmul.msk.f32.vlgmr.msra.gmra.mxu3 %vm517_vm3, %v746_v52 }
 0x432   : > { %5167 = vmatpush.xpose.msk.msra.mxu3 %vm517_vm3, %v964_v20 }
 0x433   : > { %v1096_v54 = vpop.xlane.xlu2 %1095  ;;  %v1436_v14 = vpop.permute.xlu0 %1435 }
 0x434   : > { %v1102_v56 = vsub.f32 %v1078_v18, %v1096_v54  ;;  %735 = vadd.xlane.f32.xlu1 %v734_v55 }
 0x436   : > { %v5528_v57 = vpop.eup %5527  ;;  %v1113_v58 = vmul.f32 1.442695, %v1102_v56 }
 0x437   : > { %v1118_v59 = vsel %vm517_vm3, %v5528_v57, 0.0 }
 0x438   : > { %5529 = vpow2.f32 %v1113_v58  ;;  %1119 = vadd.xlane.f32.xlu0 %v1118_v59 }
 0x43b   : > { %v1408_v17 = vpop.permute.xlu2 %1407 }
 0x43e   : > { %v5530_v61 = vpop.eup %5529 }
 0x43f   : > { %v990_v62 = vpop.permute.xlu1 %989  ;;  %v1130_v0 = vsel %vm517_vm3, %v5530_v61, 0.0 }
 0x440   : > { %5170 = vmatmul.msk.f32.vlgmr.msra.gmra.mxu1 %vm517_vm3, %v990_v62  ;;  %1131 = vadd.xlane.f32.xlu2 %v1130_v0 }
 0x44c   : > { %1491 = vrot.lane.b32.xlu0 %v5910_v37, %s5757_s14 }
 0x44d   : > { %1465 = vrot.lane.b32.xlu1 %v5904_v34, %s5756_s12 }
 0x455   : > { %1171 = vrot.lane.b32.xlu1 %v5908_v36, %s5755_s11 }
 0x458   : > { %1549 = vrot.lane.b32.xlu2 %v5920_v41, %s5756_s12 }
 0x45d   : > { %1521 = vrot.lane.b32.xlu1 %v5916_v39, %s5756_s12 }
 0x465   : > { %1519 = vrot.lane.b32.xlu1 %v5916_v39, %s5757_s14 }
 0x46d   : > { %1437 = vrot.lane.b32.xlu1 %v5908_v36, %s5756_s12 }
 0x475   : > { %1493 = vrot.lane.b32.xlu1 %v5910_v37, %s5756_s12 }
 0x47a   : > { %v6085_v50 = vpop.f32.mrf.mxu3 }
 0x47d   : > { %1547 = vrot.lane.b32.xlu1 %v5920_v41, %s5757_s14 }
 0x49f   : > { %v1129_v7 = vpop.xlane.xlu1 %1128 }
 0x4a7   : > { %v736_v8 = vpop.xlane.xlu1 %735 }
 0x4a8   : > { %5531 = vrcp.f32 %v736_v8 }
 0x4a9   : > { %5533 = vrcp.f32 %v1117_v43 }
 0x4aa   : > { %5535 = vrcp.f32 %v1129_v7 }
 0x4ab   : > { %v1120_v18 = vpop.xlane.xlu0 %1119 }
 0x4ac   : > { %5537 = vrcp.f32 %v1120_v18 }
 0x4ae   : > { %v5532_v11 = vpop.eup %5531 }
 0x4af   : > { %v748_v60 = vmul.f32 %v5532_v11, %v5526_v53  ;;  %v5534_v21 = vpop.eup %5533 }
 0x4b0   : > { %v1139_v26 = vmul.f32 %v5534_v21, %v6002_v63  ;;  %v5536_v30 = vpop.eup %5535 }
 0x4b1   : > { %5162 = vmatmul.msk.f32.vlgmr.msrb.gmra.mxu3 %vm517_vm3, %v748_v60  ;;  %v1143_v35 = vmul.f32 %v5536_v30, %v6036_v46 }
 0x4b2   : > { %1166 = vmatpush.msrb.mxu3 %v5425_v12  ;;  %v5538_v33 = vpop.eup %5537 }
 0x4b3   : > { %v1132_v32 = vpop.xlane.xlu2 %1131  ;;  %v1140_v38 = vmul.f32 %v5538_v33, %v5528_v57 }
 0x4b4   : > { %5539 = vrcp.f32 %v1132_v32  ;;  %v6087_v51 = vpop.f32.mrf.mxu3 }
 0x4b9   : > { %5168 = vmatmul.msk.f32.vlgmr.msra.gmra.mxu3 %vm517_vm3, %v962_v2 }
 0x4ba   : > { %1270 = vmatpush.msra.mxu3 %v5426_v15  ;;  %v5540_v63 = vpop.eup %5539 }
 0x4bb   : > { %v1144_v42 = vmul.f32 %v5540_v63, %v5530_v61  ;;  %v1550_v47 = vpop.permute.xlu2 %1549  ;;  %v5427_v61 = vpack.i.bf16 %v5904_v34, %v5900_v31 }
 0x4bd   : > { %v1014_v23 = vpop.f32.mrf.mxu1 }
 0x4be   : > { %v1076_v24 = vmul.f32 0.35355338, %v1014_v23  ;;  %v1492_v48 = vpop.permute.xlu0 %1491 }
 0x4bf   : > { %v1466_v27 = vpop.permute.xlu1 %1465 }
 0x4c0   : > { %v1088_v29 = vsel %vm517_vm3, %v1076_v24, -inf }
 0x4c1   : > { %1089 = vmax.xlane.f32.xlu0 %v1088_v29  ;;  %5175 = vmatmul.msk.f32.vlgmr.msrb.gmra.mxu3 %vm517_vm3, %v1139_v26 }
 0x4c2   : > { %5193 = vmatpush.xpose.msk.msrb.mxu3 %vm517_vm3, %v1410_v4 }
 0x4c7   : > { %v1172_v40 = vpop.permute.xlu1 %1171 }
 0x4c8   : > { %1192 = vmatpush.msrb.mxu1 %v1172_v40 }
 0x4c9   : > { %5176 = vmatmul.msk.f32.vlgmr.msrb.gmra.mxu1 %vm517_vm3, %v1140_v38  ;;  %5179 = vmatmul.msk.f32.vlgmr.msra.gmra.mxu3 %vm517_vm3, %v1143_v35 }
 0x4ca   : > { %1296 = vmatpush.msra.mxu1 %v1276_v9  ;;  %5197 = vmatpush.xpose.msk.msra.mxu3 %vm517_vm3, %v1466_v27 }
 0x4cf   : > { %v1522_v43 = vpop.permute.xlu1 %1521 }
 0x4d1   : > { %5180 = vmatmul.msk.f32.vlgmr.msra.gmra.mxu1 %vm517_vm3, %v1144_v42  ;;  %5194 = vmatmul.msk.f32.vlgmr.msrb.gmra.mxu3 %vm517_vm3, %v1408_v17 }
 0x4d2   : > { %5201 = vmatpush.xpose.msk.msrb.mxu3 %vm517_vm3, %v1522_v43 }
 0x4d7   : > { %v1520_v44 = vpop.permute.xlu1 %1519 }
 0x4d9   : > { %5198 = vmatmul.msk.f32.vlgmr.msra.gmra.mxu3 %vm517_vm3, %v1464_v6 }
 0x4df   : > { %v1438_v45 = vpop.permute.xlu1 %1437 }
 0x4e0   : > { %5195 = vmatpush.xpose.msk.msrb.mxu1 %vm517_vm3, %v1438_v45 }
 0x4e1   : > { %5202 = vmatmul.msk.f32.vlgmr.msrb.gmra.mxu3 %vm517_vm3, %v1520_v44 }
 0x4e3   : > { %5196 = vmatmul.msk.f32.vlgmr.msrb.gmra.mxu1 %vm517_vm3, %v1436_v14 }
 0x4e7   : > { %v1494_v46 = vpop.permute.xlu1 %1493 }
 0x4e8   : > { %5199 = vmatpush.xpose.msk.msra.mxu1 %vm517_vm3, %v1494_v46 }
 0x4eb   : > { %5200 = vmatmul.msk.f32.vlgmr.msra.gmra.mxu1 %vm517_vm3, %v1492_v48 }
 0x4ec   : > { %5203 = vmatpush.xpose.msk.msrb.mxu1 %vm517_vm3, %v1550_v47 }
 0x4ef   : > { %v1548_v49 = vpop.permute.xlu1 %1547 }
 0x4f3   : > { %5204 = vmatmul.msk.f32.vlgmr.msrb.gmra.mxu1 %vm517_vm3, %v1548_v49 }
 0x534   : > { %v1090_v52 = vpop.xlane.xlu0 %1089  ;;  %v6089_v53 = vpop.f32.mrf.mxu3 }
 0x535   : > { %v1100_v20 = vsub.f32 %v1076_v24, %v1090_v52 }
 0x537   : > { %v1109_v54 = vmul.f32 1.442695, %v1100_v20 }
 0x539   : > { %5541 = vpow2.f32 %v1109_v54 }
 0x53c   : > { %v6091_v55 = vpop.f32.mrf.mxu3 }
 0x53f   : > { %v6093_v56 = vpop.eup %5541 }
 0x540   : > { %v1124_v57 = vsel %vm517_vm3, %v6093_v56, 0.0 }
 0x541   : > { %1125 = vadd.xlane.f32.xlu0 %v1124_v57 }
 0x544   : > { %v6097_v58 = vpop.f32.mrf.mxu3 }
 0x546   : > { %v6109_v60 = vpop.f32.mrf.mxu1 }
 0x54c   : > { %v6099_v59 = vpop.f32.mrf.mxu3 }
 0x54e   : > { %v6111_v18 = vpop.f32.mrf.mxu1 }
 0x554   : > { %v1432_v62 = vpop.f32.mrf.mxu3 }
 0x555   : > { %v1575_v0 = vmul.f32 0.35355338, %v1432_v62  ;;  %5428 = vrot.lane.b32.xlu0 %v5427_v61, %s5758_s15  ;;  %v439_v62 = vld [vmem:[%s7247_s5] sm:$0xff] }
 0x557   : > { %v1581_v2 = vsel %vm517_vm3, %v1575_v0, -inf }
 0x558   : > { %1582 = vmax.xlane.f32.xlu1 %v1581_v2 }
 0x55c   : > { %v1488_v3 = vpop.f32.mrf.mxu3 }
 0x55d   : > { %v1577_v4 = vmul.f32 0.35355338, %v1488_v3 }
 0x55f   : > { %v1587_v6 = vsel %vm517_vm3, %v1577_v4, -inf }
 0x560   : > { %1588 = vmax.xlane.f32.xlu2 %v1587_v6  ;;  %v1460_v26 = vpop.f32.mrf.mxu1 }
 0x561   : > { %v1576_v33 = vmul.f32 0.35355338, %v1460_v26 }
 0x563   : > { %v1584_v43 = vsel %vm517_vm3, %v1576_v33, -inf }
 0x564   : > { %v1544_v7 = vpop.f32.mrf.mxu3 }
 0x565   : > { %v1579_v8 = vmul.f32 0.35355338, %v1544_v7 }
 0x567   : > { %v1593_v9 = vsel %vm517_vm3, %v1579_v8, -inf }
 0x568   : > { %1594 = vmax.xlane.f32.xlu1 %v1593_v9  ;;  %v1516_v63 = vpop.f32.mrf.mxu1 }
 0x569   : > { %v1578_v45 = vmul.f32 0.35355338, %v1516_v63 }
 0x56b   : > { %v1590_v47 = vsel %vm517_vm3, %v1578_v45, -inf }
 0x570   : > { %v1572_v49 = vpop.f32.mrf.mxu1 }
 0x571   : > { %v1580_v52 = vmul.f32 0.35355338, %v1572_v49 }
 0x573   : > { %v1596_v20 = vsel %vm517_vm3, %v1580_v52, -inf }
 0x581   : > { %1223 = vrot.lane.b32.xlu1 %v5910_v37, %s5755_s11 }
 0x5b4   : > { %v1126_v11 = vpop.xlane.xlu0 %1125 }
 0x5c7   : > { %v5429_v12 = vpop.permute.xlu0 %5428 }
 0x5c8   : > { %v5431_v14 = vunpack.i.h.bf16 %v5429_v12  ;;  %v5430_v15 = vunpack.i.l.bf16 %v5429_v12 }
 0x5ca   : > { %1668 = vmatpush.msra.mxu3 %v5430_v15 }
 0x5cb   : > { %v1583_v17 = vpop.xlane.xlu1 %1582 }
 0x5cc   : > { %1720 = vmatpush.msrb.mxu3 %v5431_v14  ;;  %v1599_v21 = vsub.f32 %v1575_v0, %v1583_v17  ;;  %v5432_v0 = vpack.i.bf16 %v5908_v36, %v5916_v39 }
 0x5ce   : > { %v1605_v23 = vmul.f32 1.442695, %v1599_v21 }
 0x5d0   : > { %5543 = vpow2.f32 %v1605_v23 }
 0x5d3   : > { %v1589_v24 = vpop.xlane.xlu2 %1588 }
 0x5d4   : > { %v1601_v27 = vsub.f32 %v1577_v4, %v1589_v24 }
 0x5d6   : > { %v5544_v29 = vpop.eup %5543  ;;  %v1609_v30 = vmul.f32 1.442695, %v1601_v27 }
 0x5d7   : > { %v1617_v32 = vsel %vm517_vm3, %v5544_v29, 0.0 }
 0x5d8   : > { %5545 = vpow2.f32 %v1609_v30  ;;  %1618 = vadd.xlane.f32.xlu0 %v1617_v32 }
 0x5db   : > { %v1595_v35 = vpop.xlane.xlu1 %1594 }
 0x5dc   : > { %v1603_v38 = vsub.f32 %v1579_v8, %v1595_v35 }
 0x5de   : > { %v5546_v40 = vpop.eup %5545  ;;  %v1613_v42 = vmul.f32 1.442695, %v1603_v38 }
 0x5df   : > { %v1623_v44 = vsel %vm517_vm3, %v5546_v40, 0.0 }
 0x5e0   : > { %5547 = vpow2.f32 %v1613_v42  ;;  %1585 = vmax.xlane.f32.xlu0 %v1584_v43  ;;  %1624 = vadd.xlane.f32.xlu2 %v1623_v44  ;;  %v1075_v44 = vmul.f32 0.35355338, %v6091_v55 }
 0x5e1   : > { %5549 = vrcp.f32 %v1126_v11 }
 0x5e6   : > { %v6116_v46 = vpop.eup %5547 }
 0x5e7   : > { %v1629_v48 = vsel %vm517_vm3, %v6116_v46, 0.0  ;;  %v5550_v54 = vpop.eup %5549 }
 0x5e8   : > { %1591 = vmax.xlane.f32.xlu0 %v1590_v47  ;;  %1630 = vadd.xlane.f32.xlu2 %v1629_v48  ;;  %v1142_v57 = vmul.f32 %v5550_v54, %v6093_v56 }
 0x5f0   : > { %1597 = vmax.xlane.f32.xlu2 %v1596_v20 }
 0x5f3   : > { %v1224_v61 = vpop.permute.xlu1 %1223 }
 0x5f4   : > { %1244 = vmatpush.msra.mxu2 %v1224_v61 }
 0x5f5   : > { %5178 = vmatmul.msk.f32.vlgmr.msra.gmra.mxu2 %vm517_vm3, %v1142_v57 }
 0x5f6   : > { %1387 = vmatpush.msrb.mxu2 %v439_v62 }
 0x5fc   : > { %5433 = vrot.lane.b32.xlu0 %v5432_v0, %s5758_s15 }
 0x5fd   : > { %5187 = vmatmul.msk.f32.vlgmr.msrb.gmra.mxu2 %vm517_vm3, %v6008_v1 }
 0x604   : > { %1862 = vrot.lane.b32.xlu0 %v5900_v31, %s5759_s20 }
 0x605   : > { %5188 = vmatmul.msk.f32.gmra.mxu2 %vm517_vm3, %v6085_v50 }
 0x608   : > { %1864 = vrot.lane.b32.xlu2 %v5900_v31, %s5760_s21 }
 0x60c   : > { %1892 = vrot.lane.b32.xlu0 %v5908_v36, %s5760_s21 }
 0x60d   : > { %5189 = vmatmul.msk.f32.gmra.mxu2 %vm517_vm3, %v6014_v5 }
 0x614   : > { %1890 = vrot.lane.b32.xlu0 %v5908_v36, %s5759_s20 }
 0x615   : > { %5190 = vmatmul.msk.f32.gmra.mxu2 %vm517_vm3, %v6087_v51 }
 0x61c   : > { %1725 = vrot.lane.b32.xlu0 %v5910_v37, %s5758_s15 }
 0x61d   : > { %5191 = vmatmul.msk.f32.gmra.mxu2 %vm517_vm3, %v6019_v10 }
 0x624   : > { %1948 = vrot.lane.b32.xlu0 %v5910_v37, %s5760_s21 }
 0x625   : > { %5192 = vmatmul.msk.f32.gmra.mxu2 %vm517_vm3, %v6089_v53 }
 0x62c   : > { %1946 = vrot.lane.b32.xlu0 %v5910_v37, %s5759_s20 }
 0x634   : > { %1918 = vrot.lane.b32.xlu0 %v5904_v34, %s5759_s20 }
 0x64b   : > { %v1619_v1 = vpop.xlane.xlu0 %1618 }
 0x64c   : > { %5551 = vrcp.f32 %v1619_v1 }
 0x652   : > { %v5552_v5 = vpop.eup %5551 }
 0x653   : > { %v1641_v50 = vmul.f32 %v5552_v5, %v5544_v29  ;;  %v1586_v51 = vpop.xlane.xlu0 %1585  ;;  %v1625_v56 = vpop.xlane.xlu2 %1624 }
 0x654   : > { %v1600_v2 = vsub.f32 %v1576_v33, %v1586_v51  ;;  %5553 = vrcp.f32 %v1625_v56 }
 0x655   : > { %5205 = vmatmul.msk.f32.vlgmr.msra.gmra.mxu3 %vm517_vm3, %v1641_v50 }
 0x656   : > { %v1607_v10 = vmul.f32 1.442695, %v1600_v2 }
 0x658   : > { %5555 = vpow2.f32 %v1607_v10 }
 0x65a   : > { %v5554_v3 = vpop.eup %5553 }
 0x65b   : > { %v1643_v53 = vmul.f32 %v5554_v3, %v5546_v40  ;;  %v1592_v4 = vpop.xlane.xlu0 %1591  ;;  %v1631_v6 = vpop.xlane.xlu2 %1630 }
 0x65c   : > { %v1602_v7 = vsub.f32 %v1578_v45, %v1592_v4  ;;  %v1085_v45 = vsel %vm517_vm3, %v1075_v44, -inf }
 0x65d   : > { %5207 = vmatmul.msk.f32.vlgmr.msrb.gmra.mxu3 %vm517_vm3, %v1643_v53 }
 0x65e   : > { %v5556_v8 = vpop.eup %5555  ;;  %v1611_v9 = vmul.f32 1.442695, %v1602_v7 }
 0x65f   : > { %v1620_v11 = vsel %vm517_vm3, %v5556_v8, 0.0 }
 0x660   : > { %5557 = vpow2.f32 %v1611_v9  ;;  %1621 = vadd.xlane.f32.xlu1 %v1620_v11 }
 0x661   : > { %5559 = vrcp.f32 %v1631_v6 }
 0x663   : > { %v1598_v12 = vpop.xlane.xlu2 %1597 }
 0x664   : > { %v1604_v14 = vsub.f32 %v1580_v52, %v1598_v12 }
 0x666   : > { %v5558_v15 = vpop.eup %5557  ;;  %v1615_v17 = vmul.f32 1.442695, %v1604_v14 }
 0x667   : > { %v1626_v21 = vsel %vm517_vm3, %v5558_v15, 0.0  ;;  %v5560_v24 = vpop.eup %5559 }
 0x668   : > { %5561 = vpow2.f32 %v1615_v17  ;;  %1627 = vadd.xlane.f32.xlu2 %v1626_v21  ;;  %v1645_v33 = vmul.f32 %v5560_v24, %v6116_v46 }
 0x66b   : > { %v1865_v23 = vpop.permute.xlu2 %1864 }
 0x66c   : > { %5217 = vmatpush.xpose.msk.msra.mxu2 %vm517_vm3, %v1865_v23 }
 0x66e   : > { %v5562_v26 = vpop.eup %5561  ;;  %v5434_v27 = vpop.permute.xlu0 %5433 }
 0x66f   : > { %v5436_v29 = vunpack.i.h.bf16 %v5434_v27  ;;  %v5435_v30 = vunpack.i.l.bf16 %v5434_v27  ;;  %v1632_v32 = vsel %vm517_vm3, %v5562_v26, 0.0 }
 0x670   : > { %1633 = vadd.xlane.f32.xlu1 %v1632_v32 }
 0x671   : > { %1694 = vmatpush.msra.mxu1 %v5436_v29  ;;  %1772 = vmatpush.msra.mxu3 %v5435_v30 }
 0x672   : > { %5209 = vmatmul.msk.f32.vlgmr.msra.gmra.mxu3 %vm517_vm3, %v1645_v33 }
 0x676   : > { %v1863_v35 = vpop.permute.xlu0 %1862 }
 0x677   : > { %5218 = vmatmul.msk.f32.vlgmr.msra.gmra.mxu2 %vm517_vm3, %v1863_v35 }
 0x678   : > { %v6177_v46 = vpop.f32.mrf.mxu2 }
 0x67e   : > { %v1893_v38 = vpop.permute.xlu0 %1892 }
 0x67f   : > { %5219 = vmatpush.xpose.msk.msrb.mxu3 %vm517_vm3, %v1893_v38 }
 0x680   : > { %1920 = vrot.lane.b32.xlu2 %v5904_v34, %s5760_s21  ;;  %v6179_v47 = vpop.f32.mrf.mxu2 }
 0x686   : > { %v1891_v40 = vpop.permute.xlu0 %1890 }
 0x687   : > { %5220 = vmatmul.msk.f32.vlgmr.msrb.gmra.mxu3 %vm517_vm3, %v1891_v40 }
 0x688   : > { %v6181_v48 = vpop.f32.mrf.mxu2 }
 0x689   : > { %1777 = vrot.lane.b32.xlu1 %v5920_v41, %s5758_s15 }
 0x68e   : > { %v1726_v63 = vpop.permute.xlu0 %1725 }
 0x68f   : > { %1746 = vmatpush.msrb.mxu1 %v1726_v63 }
 0x690   : > { %v6183_v52 = vpop.f32.mrf.mxu2 }
 0x696   : > { %v1949_v42 = vpop.permute.xlu0 %1948 }
 0x697   : > { %5223 = vmatpush.xpose.msk.msrb.mxu2 %vm517_vm3, %v1949_v42 }
 0x698   : > { %v6186_v55 = vpop.f32.mrf.mxu2 }
 0x69e   : > { %v1947_v43 = vpop.permute.xlu0 %1946 }
 0x69f   : > { %5224 = vmatmul.msk.f32.vlgmr.msrb.gmra.mxu2 %vm517_vm3, %v1947_v43 }
 0x6a0   : > { %v6189_v0 = vpop.f32.mrf.mxu2 }
 0x6a8   : > { %v6193_v50 = vpop.f32.mrf.mxu2 }
 0x6b3   : > { %1086 = vmax.xlane.f32.xlu1 %v1085_v45 }
 0x6d3   : > { %v1622_v49 = vpop.xlane.xlu1 %1621 }
 0x6d4   : > { %5563 = vrcp.f32 %v1622_v49 }
 0x6d8   : > { %v6191_v5 = vpop.f32.mrf.mxu3 }
 0x6da   : > { %v5564_v20 = vpop.eup %5563 }
 0x6db   : > { %v1642_v54 = vmul.f32 %v5564_v20, %v5556_v8  ;;  %v1628_v57 = vpop.xlane.xlu2 %1627  ;;  %v1919_v8 = vpop.permute.xlu0 %1918 }
 0x6dc   : > { %5565 = vrcp.f32 %v1628_v57 }
 0x6dd   : > { %5206 = vmatmul.msk.f32.vlgmr.msra.gmra.mxu1 %vm517_vm3, %v1642_v54 }
 0x6e0   : > { %v6195_v56 = vpop.f32.mrf.mxu3 }
 0x6e2   : > { %v5566_v61 = vpop.eup %5565 }
 0x6e3   : > { %v1644_v62 = vmul.f32 %v5566_v61, %v5558_v15  ;;  %v1634_v1 = vpop.xlane.xlu1 %1633  ;;  %v1921_v4 = vpop.permute.xlu2 %1920  ;;  %v5437_v61 = vpack.i.bf16 %v5908_v36, %v5900_v31  ;;  %v440_v31 = vld [vmem:[%s7247_s5 + $0x8] sm:$0xff] }
 0x6e4   : > { %5567 = vrcp.f32 %v1634_v1 }
 0x6e5   : > { %5208 = vmatmul.msk.f32.vlgmr.msrb.gmra.mxu1 %vm517_vm3, %v1644_v62  ;;  %v5442_v62 = vpack.i.bf16 %v5910_v37, %v5904_v34 }
 0x6ea   : > { %v5568_v51 = vpop.eup %5567 }
 0x6eb   : > { %v1646_v10 = vmul.f32 %v5568_v51, %v5562_v26 }
 0x6f5   : > { %v6200_v7 = vpop.f32.mrf.mxu3 }
 0x6fa   : > { %v1887_v2 = vpop.f32.mrf.mxu2 }
 0x6fb   : > { %v2030_v3 = vmul.f32 0.35355338, %v1887_v2  ;;  %v1778_v53 = vpop.permute.xlu1 %1777 }
 0x6fc   : > { %1798 = vmatpush.msra.mxu1 %v1778_v53 }
 0x6fd   : > { %5210 = vmatmul.msk.f32.vlgmr.msra.gmra.mxu1 %vm517_vm3, %v1646_v10  ;;  %v2036_v6 = vsel %vm517_vm3, %v2030_v3, -inf }
 0x6fe   : > { %5221 = vmatpush.xpose.msk.msrb.mxu1 %vm517_vm3, %v1921_v4  ;;  %2037 = vmax.xlane.f32.xlu0 %v2036_v6 }
 0x705   : > { %5222 = vmatmul.msk.f32.vlgmr.msrb.gmra.mxu1 %vm517_vm3, %v1919_v8 }
 0x70a   : > { %v1915_v9 = vpop.f32.mrf.mxu3 }
 0x70b   : > { %v2031_v11 = vmul.f32 0.35355338, %v1915_v9 }
 0x70d   : > { %v2039_v12 = vsel %vm517_vm3, %v2031_v11, -inf }
 0x70e   : > { %2040 = vmax.xlane.f32.xlu2 %v2039_v12 }
 0x722   : > { %v1971_v14 = vpop.f32.mrf.mxu2 }
 0x723   : > { %v2033_v15 = vmul.f32 0.35355338, %v1971_v14 }
 0x725   : > { %v2045_v17 = vsel %vm517_vm3, %v2033_v15, -inf }
 0x726   : > { %2046 = vmax.xlane.f32.xlu0 %v2045_v17  ;;  %v1087_v21 = vpop.xlane.xlu1 %1086 }
 0x727   : > { %v1099_v23 = vsub.f32 %v1075_v44, %v1087_v21 }
 0x729   : > { %v1107_v24 = vmul.f32 1.442695, %v1099_v23 }
 0x72b   : > { %5569 = vpow2.f32 %v1107_v24 }
 0x731   : > { %v5570_v26 = vpop.eup %5569 }
 0x732   : > { %v1121_v27 = vsel %vm517_vm3, %v5570_v26, 0.0 }
 0x733   : > { %1122 = vadd.xlane.f32.xlu1 %v1121_v27 }
 0x73a   : > { %1197 = vrot.lane.b32.xlu0 %v5904_v34, %s5755_s11 }
 0x74c   : > { %1976 = vrot.lane.b32.xlu1 %v5916_v39, %s5760_s21 }
 0x75a   : > { %v6210_v29 = vpop.f32.mrf.mxu1 }
 0x762   : > { %v6212_v32 = vpop.f32.mrf.mxu1 }
 0x771   : > { %v2038_v30 = vpop.xlane.xlu0 %2037 }
 0x772   : > { %v2054_v33 = vsub.f32 %v2030_v3, %v2038_v30 }
 0x774   : > { %v2060_v35 = vmul.f32 1.442695, %v2054_v33 }
 0x776   : > { %5571 = vpow2.f32 %v2060_v35 }
 0x77a   : > { %v6214_v38 = vpop.f32.mrf.mxu1 }
 0x77c   : > { %v6216_v40 = vpop.eup %5571 }
 0x77d   : > { %v2072_v63 = vsel %vm517_vm3, %v6216_v40, 0.0 }
 0x77e   : > { %2073 = vadd.xlane.f32.xlu2 %v2072_v63 }
 0x781   : > { %v2041_v42 = vpop.xlane.xlu2 %2040 }
 0x782   : > { %v2055_v43 = vsub.f32 %v2031_v11, %v2041_v42  ;;  %v1943_v44 = vpop.f32.mrf.mxu1  ;;  %v441_v42 = vld [vmem:[%s7247_s5 + $0x10] sm:$0xff] }
 0x783   : > { %v2032_v45 = vmul.f32 0.35355338, %v1943_v44 }
 0x784   : > { %v2062_v49 = vmul.f32 1.442695, %v2055_v43 }
 0x785   : > { %v2042_v20 = vsel %vm517_vm3, %v2032_v45, -inf }
 0x786   : > { %5573 = vpow2.f32 %v2062_v49  ;;  %2043 = vmax.xlane.f32.xlu1 %v2042_v20 }
 0x78c   : > { %v5574_v54 = vpop.eup %5573 }
 0x78d   : > { %v2075_v57 = vsel %vm517_vm3, %v5574_v54, 0.0 }
 0x78e   : > { %2076 = vadd.xlane.f32.xlu0 %v2075_v57 }
 0x796   : > { %1974 = vrot.lane.b32.xlu2 %v5916_v39, %s5759_s20 }
 0x799   : > { %v2047_v1 = vpop.xlane.xlu0 %2046 }
 0x79a   : > { %v2057_v34 = vsub.f32 %v2033_v15, %v2047_v1 }
 0x79c   : > { %v2066_v3 = vmul.f32 1.442695, %v2057_v34 }
 0x79e   : > { %2004 = vrot.lane.b32.xlu2 %v5920_v41, %s5760_s21 }
 0x79f   : > { %5438 = vrot.lane.b32.xlu1 %v5437_v61, %s5761_s22 }
 0x7a2   : > { %5443 = vrot.lane.b32.xlu0 %v5442_v62, %s5761_s22 }
 0x7a6   : > { %2002 = vrot.lane.b32.xlu2 %v5920_v41, %s5759_s20  ;;  %v1123_v51 = vpop.xlane.xlu1 %1122 }
 0x7a7   : > { %5575 = vrcp.f32 %v1123_v51 }
 0x7a8   : > { %5577 = vpow2.f32 %v2066_v3 }
 0x7ac   : > { %v1198_v36 = vpop.permute.xlu0 %1197 }
 0x7ad   : > { %v5576_v2 = vpop.eup %5575  ;;  %1218 = vmatpush.msrb.mxu0 %v1198_v36 }
 0x7ae   : > { %v1141_v10 = vmul.f32 %v5576_v2, %v5570_v26  ;;  %v5578_v53 = vpop.eup %5577 }
 0x7af   : > { %1334 = vmatpush.msra.mxu0 %v440_v31  ;;  %v2081_v4 = vsel %vm517_vm3, %v5578_v53, 0.0 }
 0x7b0   : > { %5177 = vmatmul.msk.f32.vlgmr.msrb.gmra.mxu0 %vm517_vm3, %v1141_v10 }
 0x7b1   : > { %1836 = vmatpush.msrb.mxu0 %v441_v42 }
 0x7b8   : > { %5181 = vmatmul.msk.f32.vlgmr.msra.gmra.mxu0 %vm517_vm3, %v6097_v58 }
 0x7be   : > { %v1977_v37 = vpop.permute.xlu1 %1976 }
 0x7bf   : > { %5225 = vmatpush.xpose.msk.msra.mxu3 %vm517_vm3, %v1977_v37 }
 0x7c0   : > { %5182 = vmatmul.msk.f32.gmra.mxu0 %vm517_vm3, %v6109_v60 }
 0x7cf   : > { %2082 = vadd.xlane.f32.xlu2 %v2081_v4 }
 0x7e7   : > { %2206 = vrot.lane.b32.xlu2 %v5916_v39, %s5761_s22 }
 0x7f1   : > { %v2074_v6 = vpop.xlane.xlu2 %2073 }
 0x7f9   : > { %v1975_v8 = vpop.permute.xlu2 %1974  ;;  %v2044_v9 = vpop.xlane.xlu1 %2043 }
 0x7fa   : > { %v2056_v58 = vsub.f32 %v2032_v45, %v2044_v9  ;;  %5226 = vmatmul.msk.f32.vlgmr.msra.gmra.mxu3 %vm517_vm3, %v1975_v8 }
 0x7fc   : > { %v2064_v11 = vmul.f32 1.442695, %v2056_v58 }
 0x7fe   : > { %5579 = vpow2.f32 %v2064_v11 }
 0x7ff   : > { %5581 = vrcp.f32 %v2074_v6 }
 0x801   : > { %v2005_v12 = vpop.permute.xlu2 %2004  ;;  %v2077_v15 = vpop.xlane.xlu0 %2076 }
 0x802   : > { %5227 = vmatpush.xpose.msk.msra.mxu1 %vm517_vm3, %v2005_v12  ;;  %5583 = vrcp.f32 %v2077_v15 }
 0x804   : > { %v5580_v60 = vpop.eup %5579 }
 0x805   : > { %v2078_v14 = vsel %vm517_vm3, %v5580_v60, 0.0  ;;  %v5582_v39 = vpop.eup %5581 }
 0x806   : > { %2079 = vadd.xlane.f32.xlu1 %v2078_v14  ;;  %v2096_v27 = vmul.f32 %v5582_v39, %v6216_v40  ;;  %v6296_v14 = vld [vmem:[%s7251_s9] sm:$0xf] }
 0x808   : > { %v5584_v21 = vpop.eup %5583 }
 0x809   : > { %v2003_v17 = vpop.permute.xlu2 %2002  ;;  %v2097_v30 = vmul.f32 %v5584_v21, %v5574_v54  ;;  %v6299_v21 = vperm.slane %v6296_v14, 0 }
 0x80a   : > { %5228 = vmatmul.msk.f32.vlgmr.msra.gmra.mxu1 %vm517_vm3, %v2003_v17 }
 0x811   : > { %v5439_v23 = vpop.permute.xlu1 %5438 }
 0x812   : > { %v5441_v24 = vunpack.i.h.bf16 %v5439_v23  ;;  %v5440_v26 = vunpack.i.l.bf16 %v5439_v23 }
 0x814   : > { %v5444_v33 = vpop.permute.xlu0 %5443  ;;  %2123 = vmatpush.msra.mxu2 %v5440_v26  ;;  %2149 = vmatpush.msrb.mxu3 %v5441_v24 }
 0x815   : > { %v5446_v35 = vunpack.i.h.bf16 %v5444_v33  ;;  %v5445_v63 = vunpack.i.l.bf16 %v5444_v33  ;;  %5229 = vmatmul.msk.f32.vlgmr.msra.gmra.mxu2 %vm517_vm3, %v2096_v27  ;;  %5230 = vmatmul.msk.f32.vlgmr.msrb.gmra.mxu3 %vm517_vm3, %v2097_v30 }
 0x817   : > { %2175 = vmatpush.msrb.mxu1 %v5445_v63  ;;  %2201 = vmatpush.msrb.mxu2 %v5446_v35 }
 0x82d   : > { %v1220_v43 = vpop.f32.mrf.mxu0 }
 0x82e   : > { %5183 = vmatmul.msk.f32.gmra.mxu0 %vm517_vm3, %v1220_v43 }
 0x835   : > { %v1336_v61 = vpop.f32.mrf.mxu0 }
 0x836   : > { %5184 = vmatmul.msk.f32.gmra.mxu0 %vm517_vm3, %v6177_v46 }
 0x83d   : > { %v1339_v62 = vpop.f32.mrf.mxu0 }
 0x83e   : > { %5185 = vmatmul.msk.f32.gmra.mxu0 %vm517_vm3, %v6099_v59  ;;  %v442_v59 = vld [vmem:[%s7247_s5 + $0x18] sm:$0xff]  ;;  %v1393_v26 = vadd.f32 %v6181_v48, %v1339_v62 }
 0x83f   : > { %2291 = vmatpush.msra.mxu2 %v442_v59 }
 0x842   : > { %v2083_v40 = vpop.xlane.xlu2 %2082 }
 0x843   : > { %5585 = vrcp.f32 %v2083_v40 }
 0x846   : > { %5186 = vmatmul.msk.f32.gmra.mxu0 %vm517_vm3, %v6111_v18 }
 0x849   : > { %v5586_v44 = vpop.eup %5585 }
 0x84a   : > { %v2099_v45 = vmul.f32 %v5586_v44, %v5578_v53  ;;  %v2207_v49 = vpop.permute.xlu2 %2206  ;;  %v5762_v44 = vmov 32.0  }
 0x84b   : > { %2227 = vmatpush.msra.mxu3 %v2207_v49 }
 0x84c   : > { %5232 = vmatmul.msk.f32.vlgmr.msrb.gmra.mxu2 %vm517_vm3, %v2099_v45 }
 0x84e   : > { %5211 = vmatmul.msk.f32.vlgmr.msrb.gmra.mxu0 %vm517_vm3, %v6191_v5 }
 0x856   : > { %5212 = vmatmul.msk.f32.gmra.mxu0 %vm517_vm3, %v6210_v29 }
 0x85e   : > { %5213 = vmatmul.msk.f32.gmra.mxu0 %vm517_vm3, %v6195_v56 }
 0x866   : > { %5214 = vmatmul.msk.f32.gmra.mxu0 %vm517_vm3, %v6212_v32 }
 0x86e   : > { %5215 = vmatmul.msk.f32.gmra.mxu0 %vm517_vm3, %v6200_v7 }
 0x876   : > { %5216 = vmatmul.msk.f32.gmra.mxu0 %vm517_vm3, %v6214_v38 }
 0x879   : > { %v2080_v18 = vpop.xlane.xlu1 %2079 }
 0x87a   : > { %5587 = vrcp.f32 %v2080_v18 }
 0x87d   : > { %v1999_v46 = vpop.f32.mrf.mxu3 }
 0x87e   : > { %v2034_v5 = vmul.f32 0.35355338, %v1999_v46 }
 0x880   : > { %v5588_v29 = vpop.eup %5587  ;;  %v2048_v56 = vsel %vm517_vm3, %v2034_v5, -inf }
 0x881   : > { %v2098_v20 = vmul.f32 %v5588_v29, %v5580_v60  ;;  %2049 = vmax.xlane.f32.xlu0 %v2048_v56  ;;  %v1390_v60 = vadd.f32 %v6179_v47, %v1336_v61 }
 0x883   : > { %5231 = vmatmul.msk.f32.vlgmr.msrb.gmra.mxu1 %vm517_vm3, %v2098_v20 }
 0x887   : > { %v2027_v7 = vpop.f32.mrf.mxu1 }
 0x888   : > { %v2035_v32 = vmul.f32 0.35355338, %v2027_v7 }
 0x88a   : > { %v2051_v38 = vsel %vm517_vm3, %v2035_v32, -inf }
 0x88b   : > { %2052 = vmax.xlane.f32.xlu1 %v2051_v38 }
 0x898   : > { %v2125_v54 = vpop.f32.mrf.mxu2  ;;  %v2151_v57 = vpop.f32.mrf.mxu3 }
 0x899   : > { %5235 = vmatmul.msk.f32.vlgmr.msra.gmra.mxu2 %vm517_vm3, %v2125_v54 }
 0x8a1   : > { %5236 = vmatmul.msk.f32.gmra.mxu2 %vm517_vm3, %v2151_v57 }
 0x8ab   : > { %v1342_v1 = vpop.f32.mrf.mxu0 }
 0x8b3   : > { %v1345_v2 = vpop.f32.mrf.mxu0 }
 0x8b4   : > { %v1399_v56 = vadd.f32 %v6186_v55, %v1345_v2 }
 0x8bb   : > { %v6286_v6 = vpop.f32.mrf.mxu0 }
 0x8c3   : > { %v6290_v11 = vpop.f32.mrf.mxu0 }
 0x8cb   : > { %v1838_v12 = vpop.f32.mrf.mxu0 }
 0x8cc   : > { %v1856_v15 = vadd.f32 %v1838_v12, %v1390_v60 }
 0x8cf   : > { %v2203_v8 = vpop.f32.mrf.mxu2 }
 0x8d3   : > { %v1841_v24 = vpop.f32.mrf.mxu0 }
 0x8d4   : > { %v1857_v30 = vadd.f32 %v1841_v24, %v1393_v26 }
 0x8db   : > { %v1844_v45 = vpop.f32.mrf.mxu0 }
 0x8e3   : > { %v1847_v29 = vpop.f32.mrf.mxu0 }
 0x8e4   : > { %v1859_v38 = vadd.f32 %v1847_v29, %v1399_v56 }
 0x8f4   : > { %v2050_v51 = vpop.xlane.xlu0 %2049 }
 0x8f5   : > { %v2058_v31 = vsub.f32 %v2034_v5, %v2050_v51 }
 0x8f7   : > { %v2068_v36 = vmul.f32 1.442695, %v2058_v31 }
 0x8f9   : > { %5589 = vpow2.f32 %v2068_v36 }
 0x8fe   : > { %v2053_v10 = vpop.xlane.xlu1 %2052 }
 0x8ff   : > { %v5590_v34 = vpop.eup %5589  ;;  %v2059_v37 = vsub.f32 %v2035_v32, %v2053_v10 }
 0x900   : > { %v2177_v3 = vpop.f32.mrf.mxu1  ;;  %v2084_v53 = vsel %vm517_vm3, %v5590_v34, 0.0 }
 0x901   : > { %v2070_v4 = vmul.f32 1.442695, %v2059_v37  ;;  %2085 = vadd.xlane.f32.xlu1 %v2084_v53  ;;  %5237 = vmatmul.msk.f32.gmra.mxu2 %vm517_vm3, %v2177_v3 }
 0x903   : > { %5591 = vpow2.f32 %v2070_v4 }
 0x909   : > { %v5592_v9 = vpop.eup %5591  ;;  %5238 = vmatmul.msk.f32.gmra.mxu2 %vm517_vm3, %v2203_v8 }
 0x90a   : > { %v2087_v58 = vsel %vm517_vm3, %v5592_v9, 0.0 }
 0x90b   : > { %2088 = vadd.xlane.f32.xlu1 %v2087_v58 }
 0x91c   : > { %v2293_v17 = vpop.f32.mrf.mxu2 }
 0x91d   : > { %v2311_v39 = vadd.f32 %v2293_v17, %v1856_v15 }
 0x91f   : > { %v2317_v23 = vadd.f32 %v2311_v39, %v5858_v13 }
 0x921   : > { %v2324_v27 = vadd.f32 %v6299_v21, %v2317_v23 }
 0x923   : > { %v2330_v47 = vsel %vm460_vm2, %v2324_v27, 0.0 }
 0x924   : > { %2232 = vrot.lane.b32.xlu1 %v5920_v41, %s5761_s22  ;;  %2331 = vadd.xlane.f32.xlu2 %v2330_v47  ;;  %v2296_v33 = vpop.f32.mrf.mxu2  ;;  %v1396_v41 = vadd.f32 %v6183_v52, %v1342_v1  ;;  %v445_v47 = vld [vmem:[%s7248_s6 + $0x10] sm:$0xff] }
 0x925   : > { %v2312_v35 = vadd.f32 %v2296_v33, %v1857_v30 }
 0x926   : > { %v1858_v59 = vadd.f32 %v1844_v45, %v1396_v41 }
 0x927   : > { %v2318_v63 = vadd.f32 %v2312_v35, %v5865_v16  ;;  %v444_v35 = vld [vmem:[%s7248_s6 + $0x8] sm:$0xff] }
 0x929   : > { %v2325_v42 = vadd.f32 %v6299_v21, %v2318_v63 }
 0x92b   : > { %v2333_v13 = vsel %vm460_vm2, %v2325_v42, 0.0 }
 0x92c   : > { %2334 = vadd.xlane.f32.xlu0 %v2333_v13 }
 0x974   : > { %v2086_v43 = vpop.xlane.xlu1 %2085 }
 0x975   : > { %5593 = vrcp.f32 %v2086_v43 }
 0x976   : > { %5595 = vrcp.f32 %v5762_v44 }
 0x97b   : > { %v5594_v48 = vpop.eup %5593 }
 0x97c   : > { %v2100_v40 = vmul.f32 %v5594_v48, %v5590_v34  ;;  %v5596_v49 = vpop.eup %5595 }
 0x97d   : > { %v2349_v46 = vmul.f32 32.0, %v5596_v49  ;;  %vm2353_vm4 = vweird.f32 %v5596_v49 }
 0x97e   : > { %5233 = vmatmul.msk.f32.vlgmr.msra.gmra.mxu3 %vm517_vm3, %v2100_v40  ;;  %v2089_v32 = vpop.xlane.xlu1 %2088 }
 0x97f   : > { %v2350_v7 = vsub.f32 1.0, %v2349_v46  ;;  %5597 = vrcp.f32 %v2089_v32 }
 0x981   : > { %v2351_v61 = vmul.f32 %v5596_v49, %v2350_v7 }
 0x984   : > { %v2299_v18 = vpop.f32.mrf.mxu2 }
 0x985   : > { %v2313_v16 = vadd.f32 %v2299_v18, %v1858_v59  ;;  %v5598_v51 = vpop.eup %5597 }
 0x986   : > { %v2101_v36 = vmul.f32 %v5598_v51, %v5592_v9 }
 0x987   : > { %v2319_v5 = vadd.f32 %v2313_v16, %v5872_v19  ;;  %v2352_v19 = vadd.f32 %v5596_v49, %v2351_v61 }
 0x989   : > { %v2326_v20 = vadd.f32 %v6299_v21, %v2319_v5  ;;  %v6319_v31 = vsel %vm2353_vm4, %v5596_v49, %v2352_v19 }
 0x98b   : > { %v2336_v54 = vsel %vm460_vm2, %v2326_v20, 0.0 }
 0x98c   : > { %2337 = vadd.xlane.f32.xlu1 %v2336_v54  ;;  %v2302_v57 = vpop.f32.mrf.mxu2 }
 0x98d   : > { %v2314_v52 = vadd.f32 %v2302_v57, %v1859_v38  ;;  %v6362_v38 = vperm.slane %v6296_v14, 3 }
 0x98f   : > { %v2320_v62 = vadd.f32 %v2314_v52, %v5879_v22 }
 0x991   : > { %v2327_v1 = vadd.f32 %v6299_v21, %v2320_v62 }
 0x993   : > { %v2339_v55 = vsel %vm460_vm2, %v2327_v1, 0.0 }
 0x994   : > { %2340 = vadd.xlane.f32.xlu0 %v2339_v55 }
 0x996   : > { %v2233_v2 = vpop.permute.xlu1 %2232 }
 0x997   : > { %2253 = vmatpush.msra.mxu1 %v2233_v2  ;;  %v2332_v10 = vpop.xlane.xlu2 %2331 }
 0x998   : > { %v2355_v34 = vmul.f32 %v6319_v31, %v2332_v10  ;;  %5234 = vmatmul.msk.f32.vlgmr.msra.gmra.mxu1 %vm517_vm3, %v2101_v36 }
 0x99a   : > { %v2361_v37 = vsub.f32 %v2324_v27, %v2355_v34  ;;  %v446_v27 = vld [vmem:[%s7248_s6 + $0x18] sm:$0xff] }
 0x99b   : > { %2516 = vmatpush.msrb.mxu1 %v446_v27  ;;  %5393 = vmatpush.msrb.mxu3 %v446_v27 }
 0x99c   : > { %v2367_v22 = vmul.f32 %v2361_v37, %v2361_v37 }
 0x99d   : > { %2517 = vmatpush.msrb.mxu1 %v445_v47  ;;  %5394 = vmatpush.msrb.mxu3 %v445_v47 }
 0x99e   : > { %v2373_v3 = vsel %vm460_vm2, %v2367_v22, 0.0  ;;  %v455_v22 = vld [vmem:[%s7250_s8 + $0x38] sm:$0xff] }
 0x99f   : > { %v2335_v53 = vpop.xlane.xlu0 %2334  ;;  %2374 = vadd.xlane.f32.xlu0 %v2373_v3  ;;  %2518 = vmatpush.msrb.mxu1 %v444_v35  ;;  %v454_v3 = vld [vmem:[%s7250_s8 + $0x30] sm:$0xff] }
 0x9a0   : > { %v2356_v4 = vmul.f32 %v6319_v31, %v2335_v53  ;;  %5395 = vmatpush.msrb.mxu3 %v444_v35  ;;  %v1402_v53 = vadd.f32 %v6189_v0, %v6286_v6  ;;  %v451_v0 = vld [vmem:[%s7250_s8 + $0x18] sm:$0xff] }
 0x9a2   : > { %v6325_v8 = vsub.f32 %v2325_v42, %v2356_v4  ;;  %v443_v42 = vld [vmem:[%s7248_s6] sm:$0xff] }
 0x9a3   : > { %2519 = vmatpush.msrb.mxu1 %v443_v42  ;;  %5396 = vmatpush.msrb.mxu3 %v443_v42 }
 0x9a4   : > { %v2368_v9 = vmul.f32 %v6325_v8, %v6325_v8 }
 0x9a5   : > { %2573 = vmatpush.msra.mxu1 %v455_v22 }
 0x9a6   : > { %v2376_v58 = vsel %vm460_vm2, %v2368_v9, 0.0  ;;  %v453_v9 = vld [vmem:[%s7250_s8 + $0x28] sm:$0xff] }
 0x9a7   : > { %2377 = vadd.xlane.f32.xlu0 %v2376_v58  ;;  %2574 = vmatpush.msra.mxu1 %v454_v3 }
 0x9a9   : > { %2575 = vmatpush.msra.mxu1 %v453_v9 }
 0x9ff   : > { %v2338_v12 = vpop.xlane.xlu1 %2337 }
 0xa00   : > { %v2357_v60 = vmul.f32 %v6319_v31, %v2338_v12 }
 0xa01   : > { %v2229_v15 = vpop.f32.mrf.mxu3 }
 0xa02   : > { %v6331_v17 = vsub.f32 %v2326_v20, %v2357_v60  ;;  %5239 = vmatmul.msk.f32.gmra.mxu2 %vm517_vm3, %v2229_v15  ;;  %v6359_v20 = vperm.slane %v6296_v14, 2 }
 0xa04   : > { %v2369_v39 = vmul.f32 %v6331_v17, %v6331_v17 }
 0xa06   : > { %v2379_v23 = vsel %vm460_vm2, %v2369_v39, 0.0  ;;  %v452_v39 = vld [vmem:[%s7250_s8 + $0x20] sm:$0xff] }
 0xa07   : > { %2380 = vadd.xlane.f32.xlu0 %v2379_v23  ;;  %v2341_v24 = vpop.xlane.xlu0 %2340  ;;  %2576 = vmatpush.msra.mxu1 %v452_v39 }
 0xa08   : > { %v2358_v26 = vmul.f32 %v6319_v31, %v2341_v24 }
 0xa09   : > { %2577 = vmatpush.msra.mxu1 %v451_v0 }
 0xa0a   : > { %v6341_v30 = vsub.f32 %v2327_v1, %v2358_v26 }
 0xa0c   : > { %v2370_v33 = vmul.f32 %v6341_v30, %v6341_v30 }
 0xa0e   : > { %v2382_v63 = vsel %vm460_vm2, %v2370_v33, 0.0 }
 0xa0f   : > { %2383 = vadd.xlane.f32.xlu2 %v2382_v63  ;;  %v450_v63 = vld [vmem:[%s7250_s8 + $0x10] sm:$0xff] }
 0xa10   : > { %2578 = vmatpush.msra.mxu1 %v450_v63 }
 0xa12   : > { %v2375_v13 = vpop.xlane.xlu0 %2374 }
 0xa13   : > { %v2391_v43 = vmul.f32 %v2375_v13, %v6319_v31 }
 0xa15   : > { %v2397_v48 = vadd.f32 1e-05, %v2391_v43  ;;  %v2255_v40 = vpop.f32.mrf.mxu1 }
 0xa16   : > { %5240 = vmatmul.msk.f32.gmra.mxu2 %vm517_vm3, %v2255_v40 }
 0xa17   : > { %5599 = vrsqrt.f32 %v2397_v48  ;;  %vm2409_vm6 = vweird.f32 %v2397_v48 }
 0xa1a   : > { %v2378_v44 = vpop.xlane.xlu0 %2377 }
 0xa1b   : > { %v2392_v45 = vmul.f32 %v2378_v44, %v6319_v31 }
 0xa1d   : > { %v5600_v41 = vpop.eup %5599  ;;  %v2398_v49 = vadd.f32 1e-05, %v2392_v45 }
 0xa1e   : > { %v2404_v59 = vmul.f32 %v5600_v41, %v2397_v48  ;;  %vm2410_vm5 = vweird.f32 %v5600_v41  ;;  %v448_v48 = vld [vmem:[%s7250_s8] sm:$0xff] }
 0xa1f   : > { %5601 = vrsqrt.f32 %v2398_v49  ;;  %vm2411_vm7 = vmor %vm2409_vm6, %vm2410_vm5  ;;  %vm2419_vm9 = vweird.f32 %v2398_v49 }
 0xa20   : > { %v2405_v18 = vmul.f32 %v5600_v41, %v2404_v59 }
 0xa22   : > { %v2406_v16 = vmul.f32 0.5, %v2405_v18 }
 0xa24   : > { %v2407_v46 = vsub.f32 1.5, %v2406_v16 }
 0xa25   : > { %v5602_v5 = vpop.eup %5601 }
 0xa26   : > { %v2408_v29 = vmul.f32 %v5600_v41, %v2407_v46  ;;  %v2414_v56 = vmul.f32 %v5602_v5, %v2398_v49  ;;  %vm2420_vm8 = vweird.f32 %v5602_v5  ;;  %v1405_v46 = vadd.f32 %v6193_v50, %v6290_v11 }
 0xa27   : > { %vm2421_vm10 = vmor %vm2419_vm9, %vm2420_vm8 }
 0xa28   : > { %v2412_v7 = vsel %vm2411_vm7, %v5600_v41, %v2408_v29  ;;  %v2415_v32 = vmul.f32 %v5602_v5, %v2414_v56 }
 0xa29   : > { %v2463_v54 = vmul.f32 %v2412_v7, %v2361_v37  ;;  %v1850_v37 = vpop.f32.mrf.mxu0 }
 0xa2a   : > { %v2416_v57 = vmul.f32 0.5, %v2415_v32  ;;  %v1860_v58 = vadd.f32 %v1850_v37, %v1402_v53 }
 0xa2b   : > { %v2470_v52 = vmul.f32 %v6359_v20, %v2463_v54 }
 0xa2c   : > { %v2417_v61 = vsub.f32 1.5, %v2416_v57 }
 0xa2d   : > { %v6366_v62 = vadd.f32 %v6362_v38, %v2470_v52 }
 0xa2e   : > { %v2418_v1 = vmul.f32 %v5602_v5, %v2417_v61 }
 0xa2f   : > { %5241 = vmatmul.msk.f32.vlgmr.msrb.gmra.mxu1 %vm460_vm2, %v6366_v62 }
 0xa30   : > { %v2422_v19 = vsel %vm2421_vm10, %v5602_v5, %v2418_v1 }
 0xa31   : > { %v2464_v51 = vmul.f32 %v2422_v19, %v6325_v8  ;;  %v1853_v18 = vpop.f32.mrf.mxu0 }
 0xa33   : > { %v2471_v55 = vmul.f32 %v6359_v20, %v2464_v51 }
 0xa35   : > { %v6373_v36 = vadd.f32 %v6362_v38, %v2471_v55 }
 0xa37   : > { %5242 = vmatmul.msk.f32.gmra.mxu1 %vm460_vm2, %v6373_v36 }
 0xa7a   : > { %v2381_v2 = vpop.xlane.xlu0 %2380 }
 0xa7b   : > { %v2393_v10 = vmul.f32 %v2381_v2, %v6319_v31 }
 0xa7d   : > { %v2399_v34 = vadd.f32 1e-05, %v2393_v10 }
 0xa7f   : > { %5603 = vrsqrt.f32 %v2399_v34  ;;  %vm2429_vm12 = vweird.f32 %v2399_v34 }
 0xa82   : > { %v2384_v4 = vpop.xlane.xlu2 %2383 }
 0xa83   : > { %v2394_v8 = vmul.f32 %v2384_v4, %v6319_v31 }
 0xa85   : > { %v5604_v12 = vpop.eup %5603  ;;  %v2400_v60 = vadd.f32 1e-05, %v2394_v8  ;;  %v2305_v15 = vpop.f32.mrf.mxu2 }
 0xa86   : > { %v2424_v23 = vmul.f32 %v5604_v12, %v2399_v34  ;;  %v2315_v24 = vadd.f32 %v2305_v15, %v1860_v58  ;;  %vm2430_vm11 = vweird.f32 %v5604_v12 }
 0xa87   : > { %5605 = vrsqrt.f32 %v2400_v60  ;;  %vm2431_vm13 = vmor %vm2429_vm12, %vm2430_vm11  ;;  %vm2439_vm15 = vweird.f32 %v2400_v60 }
 0xa88   : > { %v2425_v6 = vmul.f32 %v5604_v12, %v2424_v23  ;;  %v2321_v26 = vadd.f32 %v2315_v24, %v5886_v25  ;;  %v449_v25 = vld [vmem:[%s7250_s8 + $0x8] sm:$0xff]  ;;  %v6445_v23 = vperm.slane %v6296_v14, 1 }
 0xa89   : > { %2579 = vmatpush.msra.mxu1 %v449_v25 }
 0xa8a   : > { %v2426_v27 = vmul.f32 0.5, %v2425_v6  ;;  %v2328_v47 = vadd.f32 %v6299_v21, %v2321_v26 }
 0xa8b   : > { %2580 = vmatpush.msra.mxu1 %v448_v48 }
 0xa8c   : > { %v2427_v33 = vsub.f32 1.5, %v2426_v27  ;;  %v2342_v35 = vsel %vm460_vm2, %v2328_v47, 0.0 }
 0xa8d   : > { %v5606_v42 = vpop.eup %5605  ;;  %2343 = vadd.xlane.f32.xlu0 %v2342_v35 }
 0xa8e   : > { %v2428_v13 = vmul.f32 %v5604_v12, %v2427_v33  ;;  %v2434_v43 = vmul.f32 %v5606_v42, %v2400_v60  ;;  %vm2440_vm14 = vweird.f32 %v5606_v42 }
 0xa8f   : > { %vm2441_vm0 = vmor %vm2439_vm15, %vm2440_vm14 }
 0xa90   : > { %v2432_v40 = vsel %vm2431_vm13, %v5604_v12, %v2428_v13  ;;  %v2435_v44 = vmul.f32 %v5606_v42, %v2434_v43 }
 0xa91   : > { %v2465_v45 = vmul.f32 %v2432_v40, %v6331_v17  ;;  %v1861_v17 = vadd.f32 %v1853_v18, %v1405_v46 }
 0xa92   : > { %v2436_v41 = vmul.f32 0.5, %v2435_v44 }
 0xa93   : > { %v2472_v49 = vmul.f32 %v6359_v20, %v2465_v45 }
 0xa94   : > { %v2437_v59 = vsub.f32 1.5, %v2436_v41 }
 0xa95   : > { %v6411_v16 = vadd.f32 %v6362_v38, %v2472_v49 }
 0xa96   : > { %v2438_v5 = vmul.f32 %v5606_v42, %v2437_v59 }
 0xa97   : > { %5243 = vmatmul.msk.f32.vlgmr.msrb.gmra.mxu3 %vm460_vm2, %v6411_v16 }
 0xa98   : > { %v2442_v29 = vsel %vm2441_vm0, %v5606_v42, %v2438_v5 }
 0xa99   : > { %v2308_v56 = vpop.f32.mrf.mxu2  ;;  %v2466_v7 = vmul.f32 %v2442_v29, %v6341_v30  ;;  %v6430_v30 = vld [vmem:[%s7249_s7] ss:$0 sm:$0xff] }
 0xa9a   : > { %v2316_v32 = vadd.f32 %v2308_v56, %v1861_v17 }
 0xa9b   : > { %v2473_v54 = vmul.f32 %v6359_v20, %v2466_v7 }
 0xa9c   : > { %v2322_v57 = vadd.f32 %v2316_v32, %v5893_v28 }
 0xa9d   : > { %v6421_v52 = vadd.f32 %v6362_v38, %v2473_v54 }
 0xa9e   : > { %v2329_v50 = vadd.f32 %v6299_v21, %v2322_v57 }
 0xa9f   : > { %5244 = vmatmul.msk.f32.gmra.mxu3 %vm460_vm2, %v6421_v52 }
 0xaa0   : > { %v2345_v11 = vsel %vm460_vm2, %v2329_v50, 0.0 }
 0xaa1   : > { %2346 = vadd.xlane.f32.xlu2 %v2345_v11 }
 0xaac   : > { %v2521_v61 = vpop.f32.mrf.mxu1 }
 0xaad   : > { %v2522_v1 = vadd.f32 %v6430_v30, %v2521_v61 }
 0xaaf   : > { %v2539_v28 = vmax.f32 %v2522_v1, 0.0 }
 0xab1   : > { %5247 = vmatmul.msk.f32.vlgmr.msra.gmra.mxu1 %vm2546_vm1, %v2539_v28 }
 0xab4   : > { %v2524_v19 = vpop.f32.mrf.mxu1 }
 0xab5   : > { %v2525_v21 = vadd.f32 %v6430_v30, %v2524_v19 }
 0xab7   : > { %v2540_v51 = vmax.f32 %v2525_v21, 0.0 }
 0xab9   : > { %5248 = vmatmul.msk.f32.gmra.mxu1 %vm2546_vm1, %v2540_v51 }
 0xb00   : > { %v2344_v55 = vpop.xlane.xlu0 %2343 }
 0xb01   : > { %v2359_v2 = vmul.f32 %v6319_v31, %v2344_v55 }
 0xb03   : > { %v2365_v10 = vsub.f32 %v2328_v47, %v2359_v2 }
 0xb05   : > { %v2371_v34 = vmul.f32 %v2365_v10, %v2365_v10 }
 0xb07   : > { %v2385_v37 = vsel %vm460_vm2, %v2371_v34, 0.0 }
 0xb08   : > { %2386 = vadd.xlane.f32.xlu0 %v2385_v37 }
 0xb14   : > { %v2347_v22 = vpop.xlane.xlu2 %2346 }
 0xb15   : > { %v2360_v3 = vmul.f32 %v6319_v31, %v2347_v22 }
 0xb17   : > { %v2366_v53 = vsub.f32 %v2329_v50, %v2360_v3 }
 0xb19   : > { %v2372_v4 = vmul.f32 %v2366_v53, %v2366_v53 }
 0xb1a   : > { %v2527_v8 = vpop.f32.mrf.mxu3 }
 0xb1b   : > { %v2528_v9 = vadd.f32 %v6430_v30, %v2527_v8  ;;  %v2388_v58 = vsel %vm460_vm2, %v2372_v4, 0.0 }
 0xb1c   : > { %2389 = vadd.xlane.f32.xlu1 %v2388_v58 }
 0xb1d   : > { %v2541_v12 = vmax.f32 %v2528_v9, 0.0 }
 0xb1f   : > { %5249 = vmatmul.msk.f32.gmra.mxu1 %vm2546_vm1, %v2541_v12  ;;  %v5256_v12 = vld [vmem:[%s7245_s3 + $0x38] sm:$0xff] }
 0xb20   : > { %2813 = vmatpush.msra.mxu0 %v5256_v12 }
 0xb22   : > { %v2530_v60 = vpop.f32.mrf.mxu3 }
 0xb23   : > { %v2531_v15 = vadd.f32 %v6430_v30, %v2530_v60 }
 0xb25   : > { %v2542_v39 = vmax.f32 %v2531_v15, 0.0  ;;  %v5255_v15 = vld [vmem:[%s7245_s3 + $0x30] sm:$0xff] }
 0xb26   : > { %2814 = vmatpush.msra.mxu0 %v5255_v15 }
 0xb27   : > { %5250 = vmatmul.msk.f32.gmra.mxu1 %vm2546_vm1, %v2542_v39 }
 0xb2e   : > { %v2582_v24 = vpop.f32.mrf.mxu1 }
 0xb2f   : > { %v2583_v0 = vadd.f32 %v2582_v24, %v6445_v23 }
 0xb31   : > { %v2600_v6 = vadd.f32 %v2583_v0, %v6366_v62 }
 0xb33   : > { %v2606_v26 = vsel %vm460_vm2, %v2600_v6, 0.0 }
 0xb34   : > { %2607 = vadd.xlane.f32.xlu2 %v2606_v26 }
 0xb36   : > { %v2585_v27 = vpop.f32.mrf.mxu1 }
 0xb37   : > { %v2586_v47 = vadd.f32 %v2585_v27, %v6445_v23 }
 0xb39   : > { %v2601_v33 = vadd.f32 %v2586_v47, %v6373_v36 }
 0xb3b   : > { %v2609_v35 = vsel %vm460_vm2, %v2601_v33, 0.0 }
 0xb3c   : > { %2610 = vadd.xlane.f32.xlu0 %v2609_v35 }
 0xb7b   : > { %v2387_v63 = vpop.xlane.xlu0 %2386 }
 0xb7c   : > { %v2395_v14 = vmul.f32 %v2387_v63, %v6319_v31 }
 0xb7e   : > { %v2401_v42 = vadd.f32 1e-05, %v2395_v14 }
 0xb80   : > { %5607 = vrsqrt.f32 %v2401_v42  ;;  %vm2449_vm5 = vweird.f32 %v2401_v42 }
 0xb86   : > { %v5608_v13 = vpop.eup %5607 }
 0xb87   : > { %v2444_v43 = vmul.f32 %v5608_v13, %v2401_v42  ;;  %vm2450_vm4 = vweird.f32 %v5608_v13 }
 0xb88   : > { %vm2451_vm6 = vmor %vm2449_vm5, %vm2450_vm4 }
 0xb89   : > { %v2445_v25 = vmul.f32 %v5608_v13, %v2444_v43 }
 0xb8b   : > { %v2446_v62 = vmul.f32 0.5, %v2445_v25 }
 0xb8d   : > { %v2447_v48 = vsub.f32 1.5, %v2446_v62 }
 0xb8f   : > { %v2448_v40 = vmul.f32 %v5608_v13, %v2447_v48  ;;  %v2390_v44 = vpop.xlane.xlu1 %2389 }
 0xb90   : > { %v2396_v36 = vmul.f32 %v2390_v44, %v6319_v31 }
 0xb91   : > { %v2452_v45 = vsel %vm2451_vm6, %v5608_v13, %v2448_v40 }
 0xb92   : > { %v2402_v41 = vadd.f32 1e-05, %v2396_v36  ;;  %v2467_v49 = vmul.f32 %v2452_v45, %v2365_v10 }
 0xb94   : > { %5609 = vrsqrt.f32 %v2402_v41  ;;  %v2474_v59 = vmul.f32 %v6359_v20, %v2467_v49  ;;  %vm2459_vm8 = vweird.f32 %v2402_v41 }
 0xb96   : > { %v6457_v18 = vadd.f32 %v6362_v38, %v2474_v59 }
 0xb98   : > { %5245 = vmatmul.msk.f32.gmra.mxu3 %vm460_vm2, %v6457_v18 }
 0xb9a   : > { %v5610_v46 = vpop.eup %5609 }
 0xb9b   : > { %v2454_v5 = vmul.f32 %v5610_v46, %v2402_v41  ;;  %vm2460_vm7 = vweird.f32 %v5610_v46 }
 0xb9c   : > { %v2588_v17 = vpop.f32.mrf.mxu1  ;;  %vm2461_vm9 = vmor %vm2459_vm8, %vm2460_vm7 }
 0xb9d   : > { %v2455_v29 = vmul.f32 %v5610_v46, %v2454_v5  ;;  %v2589_v56 = vadd.f32 %v2588_v17, %v6445_v23 }
 0xb9f   : > { %v2456_v7 = vmul.f32 0.5, %v2455_v29  ;;  %v2602_v32 = vadd.f32 %v2589_v56, %v6411_v16 }
 0xba1   : > { %v2457_v54 = vsub.f32 1.5, %v2456_v7  ;;  %v2612_v57 = vsel %vm460_vm2, %v2602_v32, 0.0 }
 0xba2   : > { %2613 = vadd.xlane.f32.xlu1 %v2612_v57 }
 0xba3   : > { %v2458_v50 = vmul.f32 %v5610_v46, %v2457_v54 }
 0xba4   : > { %v2591_v11 = vpop.f32.mrf.mxu1 }
 0xba5   : > { %v2462_v61 = vsel %vm2461_vm9, %v5610_v46, %v2458_v50  ;;  %v2592_v1 = vadd.f32 %v2591_v11, %v6445_v23 }
 0xba6   : > { %v2468_v28 = vmul.f32 %v2462_v61, %v2366_v53 }
 0xba7   : > { %v2608_v19 = vpop.xlane.xlu2 %2607  ;;  %v2603_v21 = vadd.f32 %v2592_v1, %v6421_v52 }
 0xba8   : > { %v2624_v51 = vmul.f32 %v2608_v19, %v6319_v31  ;;  %v2475_v16 = vmul.f32 %v6359_v20, %v2468_v28 }
 0xba9   : > { %v2615_v55 = vsel %vm460_vm2, %v2603_v21, 0.0 }
 0xbaa   : > { %v2630_v2 = vsub.f32 %v2600_v6, %v2624_v51  ;;  %2616 = vadd.xlane.f32.xlu2 %v2615_v55  ;;  %v6470_v10 = vadd.f32 %v6362_v38, %v2475_v16  ;;  %v5254_v6 = vld [vmem:[%s7245_s3 + $0x28] sm:$0xff] }
 0xbab   : > { %2815 = vmatpush.msra.mxu0 %v5254_v6 }
 0xbac   : > { %5246 = vmatmul.msk.f32.gmra.mxu3 %vm460_vm2, %v6470_v10  ;;  %v2636_v34 = vmul.f32 %v2630_v2, %v2630_v2 }
 0xbae   : > { %v2642_v37 = vsel %vm460_vm2, %v2636_v34, 0.0 }
 0xbaf   : > { %v2611_v22 = vpop.xlane.xlu0 %2610  ;;  %2643 = vadd.xlane.f32.xlu0 %v2642_v37 }
 0xbb0   : > { %v2625_v52 = vmul.f32 %v2611_v22, %v6319_v31 }
 0xbb2   : > { %v6476_v3 = vsub.f32 %v2601_v33, %v2625_v52  ;;  %v5253_v33 = vld [vmem:[%s7245_s3 + $0x20] sm:$0xff] }
 0xbb3   : > { %2816 = vmatpush.msra.mxu0 %v5253_v33 }
 0xbb4   : > { %v2637_v53 = vmul.f32 %v6476_v3, %v6476_v3 }
 0xbb6   : > { %v2645_v4 = vsel %vm460_vm2, %v2637_v53, 0.0 }
 0xbb7   : > { %2646 = vadd.xlane.f32.xlu1 %v2645_v4 }
 0xc15   : > { %v2614_v8 = vpop.xlane.xlu1 %2613 }
 0xc16   : > { %v2626_v9 = vmul.f32 %v2614_v8, %v6319_v31 }
 0xc18   : > { %v6482_v58 = vsub.f32 %v2602_v32, %v2626_v9 }
 0xc1a   : > { %v2638_v60 = vmul.f32 %v6482_v58, %v6482_v58 }
 0xc1b   : > { %v2533_v39 = vpop.f32.mrf.mxu3 }
 0xc1c   : > { %v2534_v24 = vadd.f32 %v6430_v30, %v2533_v39  ;;  %v2648_v0 = vsel %vm460_vm2, %v2638_v60, 0.0 }
 0xc1d   : > { %2649 = vadd.xlane.f32.xlu2 %v2648_v0  ;;  %v2617_v26 = vpop.xlane.xlu2 %2616 }
 0xc1e   : > { %v2543_v27 = vmax.f32 %v2534_v24, 0.0  ;;  %v2627_v47 = vmul.f32 %v2617_v26, %v6319_v31 }
 0xc20   : > { %v6501_v35 = vsub.f32 %v2603_v21, %v2627_v47  ;;  %5251 = vmatmul.msk.f32.gmra.mxu1 %vm2546_vm1, %v2543_v27 }
 0xc22   : > { %v2644_v63 = vpop.xlane.xlu0 %2643  ;;  %v2639_v14 = vmul.f32 %v6501_v35, %v6501_v35 }
 0xc23   : > { %v2660_v42 = vmul.f32 %v2644_v63, %v6319_v31 }
 0xc24   : > { %v2651_v13 = vsel %vm460_vm2, %v2639_v14, 0.0 }
 0xc25   : > { %v2666_v43 = vadd.f32 1e-05, %v2660_v42  ;;  %2652 = vadd.xlane.f32.xlu0 %v2651_v13 }
 0xc27   : > { %5611 = vrsqrt.f32 %v2666_v43  ;;  %vm2678_vm11 = vweird.f32 %v2666_v43 }
 0xc2a   : > { %v2647_v25 = vpop.xlane.xlu1 %2646 }
 0xc2b   : > { %v2661_v62 = vmul.f32 %v2647_v25, %v6319_v31 }
 0xc2d   : > { %v5612_v48 = vpop.eup %5611  ;;  %v2667_v40 = vadd.f32 1e-05, %v2661_v62 }
 0xc2e   : > { %v2673_v44 = vmul.f32 %v5612_v48, %v2666_v43  ;;  %vm2679_vm10 = vweird.f32 %v5612_v48 }
 0xc2f   : > { %5613 = vrsqrt.f32 %v2667_v40  ;;  %v2536_v36 = vpop.f32.mrf.mxu3  ;;  %vm2680_vm12 = vmor %vm2678_vm11, %vm2679_vm10  ;;  %vm2688_vm14 = vweird.f32 %v2667_v40 }
 0xc30   : > { %v2674_v45 = vmul.f32 %v5612_v48, %v2673_v44  ;;  %v2537_v41 = vadd.f32 %v6430_v30, %v2536_v36 }
 0xc32   : > { %v2675_v49 = vmul.f32 0.5, %v2674_v45  ;;  %v2544_v59 = vmax.f32 %v2537_v41, 0.0 }
 0xc34   : > { %v2676_v46 = vsub.f32 1.5, %v2675_v49  ;;  %5252 = vmatmul.msk.f32.gmra.mxu1 %vm2546_vm1, %v2544_v59 }
 0xc35   : > { %v5614_v5 = vpop.eup %5613 }
 0xc36   : > { %v2677_v17 = vmul.f32 %v5612_v48, %v2676_v46  ;;  %v2683_v29 = vmul.f32 %v5614_v5, %v2667_v40  ;;  %vm2689_vm13 = vweird.f32 %v5614_v5 }
 0xc37   : > { %vm2690_vm15 = vmor %vm2688_vm14, %vm2689_vm13 }
 0xc38   : > { %v2681_v56 = vsel %vm2680_vm12, %v5612_v48, %v2677_v17  ;;  %v2684_v7 = vmul.f32 %v5614_v5, %v2683_v29 }
 0xc39   : > { %v2732_v32 = vmul.f32 %v2681_v56, %v2630_v2 }
 0xc3a   : > { %v2685_v54 = vmul.f32 0.5, %v2684_v7 }
 0xc3b   : > { %v2738_v57 = vmul.f32 %v2732_v32, %v6359_v20 }
 0xc3c   : > { %v2686_v50 = vsub.f32 1.5, %v2685_v54 }
 0xc3d   : > { %v6513_v30 = vadd.f32 %v2738_v57, %v6362_v38 }
 0xc3e   : > { %v2687_v11 = vmul.f32 %v5614_v5, %v2686_v50 }
 0xc3f   : > { %5276 = vmatmul.msk.f32.vlgmr.msra.gmra.mxu0 %vm460_vm2, %v6513_v30 }
 0xc40   : > { %v2691_v61 = vsel %vm2690_vm15, %v5614_v5, %v2687_v11 }
 0xc41   : > { %v2733_v1 = vmul.f32 %v2691_v61, %v6476_v3 }
 0xc43   : > { %v2739_v28 = vmul.f32 %v2733_v1, %v6359_v20 }
 0xc45   : > { %v6520_v19 = vadd.f32 %v2739_v28, %v6362_v38 }
 0xc47   : > { %5277 = vmatmul.msk.f32.gmra.mxu0 %vm460_vm2, %v6520_v19 }
 0xc90   : > { %v2650_v21 = vpop.xlane.xlu2 %2649 }
 0xc91   : > { %v2662_v51 = vmul.f32 %v2650_v21, %v6319_v31 }
 0xc93   : > { %v2668_v16 = vadd.f32 1e-05, %v2662_v51 }
 0xc95   : > { %5615 = vrsqrt.f32 %v2668_v16  ;;  %vm2698_vm4 = vweird.f32 %v2668_v16 }
 0xc98   : > { %v2653_v55 = vpop.xlane.xlu0 %2652 }
 0xc99   : > { %v2663_v2 = vmul.f32 %v2653_v55, %v6319_v31 }
 0xc9b   : > { %v5616_v34 = vpop.eup %5615  ;;  %v2669_v37 = vadd.f32 1e-05, %v2663_v2 }
 0xc9c   : > { %v2693_v22 = vmul.f32 %v5616_v34, %v2668_v16  ;;  %vm2699_vm0 = vweird.f32 %v5616_v34 }
 0xc9d   : > { %5617 = vrsqrt.f32 %v2669_v37  ;;  %v2594_v52 = vpop.f32.mrf.mxu1  ;;  %vm2700_vm5 = vmor %vm2698_vm4, %vm2699_vm0  ;;  %vm2708_vm7 = vweird.f32 %v2669_v37 }
 0xc9e   : > { %v2694_v3 = vmul.f32 %v5616_v34, %v2693_v22  ;;  %v2595_v53 = vadd.f32 %v2594_v52, %v6445_v23 }
 0xca0   : > { %v2695_v4 = vmul.f32 0.5, %v2694_v3  ;;  %v2604_v8 = vadd.f32 %v2595_v53, %v6457_v18 }
 0xca2   : > { %v2696_v9 = vsub.f32 1.5, %v2695_v4  ;;  %v2618_v12 = vsel %vm460_vm2, %v2604_v8, 0.0 }
 0xca3   : > { %v5618_v60 = vpop.eup %5617  ;;  %2619 = vadd.xlane.f32.xlu1 %v2618_v12 }
 0xca4   : > { %v2697_v15 = vmul.f32 %v5616_v34, %v2696_v9  ;;  %v2703_v39 = vmul.f32 %v5618_v60, %v2669_v37  ;;  %vm2709_vm6 = vweird.f32 %v5618_v60 }
 0xca5   : > { %vm2710_vm8 = vmor %vm2708_vm7, %vm2709_vm6 }
 0xca6   : > { %v2701_v24 = vsel %vm2700_vm5, %v5616_v34, %v2697_v15  ;;  %v2704_v0 = vmul.f32 %v5618_v60, %v2703_v39 }
 0xca7   : > { %v2734_v6 = vmul.f32 %v2701_v24, %v6482_v58 }
 0xca8   : > { %v2705_v26 = vmul.f32 0.5, %v2704_v0 }
 0xca9   : > { %v2740_v27 = vmul.f32 %v2734_v6, %v6359_v20 }
 0xcaa   : > { %v2706_v47 = vsub.f32 1.5, %v2705_v26 }
 0xcab   : > { %v6532_v18 = vadd.f32 %v2740_v27, %v6362_v38 }
 0xcac   : > { %v2707_v33 = vmul.f32 %v5618_v60, %v2706_v47 }
 0xcad   : > { %5278 = vmatmul.msk.f32.gmra.mxu0 %vm460_vm2, %v6532_v18 }
 0xcae   : > { %v2711_v63 = vsel %vm2710_vm8, %v5618_v60, %v2707_v33 }
 0xcaf   : > { %v2735_v14 = vmul.f32 %v2711_v63, %v6501_v35  ;;  %v6549_v35 = vld [vmem:[%s7246_s4 + $0x1] ss:$0 sm:$0xff] }
 0xcb1   : > { %v2597_v42 = vpop.f32.mrf.mxu1  ;;  %v2741_v58 = vmul.f32 %v2735_v14, %v6359_v20 }
 0xcb2   : > { %v2598_v13 = vadd.f32 %v2597_v42, %v6445_v23 }
 0xcb3   : > { %v6540_v43 = vadd.f32 %v2741_v58, %v6362_v38 }
 0xcb4   : > { %v2605_v25 = vadd.f32 %v2598_v13, %v6470_v10 }
 0xcb5   : > { %5279 = vmatmul.msk.f32.gmra.mxu0 %vm460_vm2, %v6540_v43 }
 0xcb6   : > { %v2621_v62 = vsel %vm460_vm2, %v2605_v25, 0.0 }
 0xcb7   : > { %2622 = vadd.xlane.f32.xlu2 %v2621_v62 }
 0xcbc   : > { %v2818_v48 = vpop.f32.mrf.mxu0 }
 0xcbd   : > { %v6552_v40 = vadd.f32 %v6549_v35, %v2818_v48 }
 0xcbf   : > { %2837 = vrot.lane.b32.xlu0 %v6552_v40, %s5751_s27 }
 0xcc4   : > { %v2821_v23 = vpop.f32.mrf.mxu0 }
 0xcc5   : > { %v6557_v10 = vadd.f32 %v6549_v35, %v2821_v23 }
 0xcc7   : > { %2864 = vrot.lane.b32.xlu1 %v6557_v10, %s5751_s27 }
 0xd16   : > { %v2620_v44 = vpop.xlane.xlu1 %2619 }
 0xd17   : > { %v2628_v36 = vmul.f32 %v2620_v44, %v6319_v31 }
 0xd19   : > { %v2634_v45 = vsub.f32 %v2604_v8, %v2628_v36 }
 0xd1b   : > { %v2640_v41 = vmul.f32 %v2634_v45, %v2634_v45 }
 0xd1d   : > { %v2654_v49 = vsel %vm460_vm2, %v2640_v41, 0.0 }
 0xd1e   : > { %2655 = vadd.xlane.f32.xlu1 %v2654_v49 }
 0xd2a   : > { %v2824_v59 = vpop.f32.mrf.mxu0  ;;  %v2623_v7 = vpop.xlane.xlu2 %2622 }
 0xd2b   : > { %v6564_v46 = vadd.f32 %v6549_v35, %v2824_v59  ;;  %v2629_v32 = vmul.f32 %v2623_v7, %v6319_v31 }
 0xd2d   : > { %2891 = vrot.lane.b32.xlu2 %v6564_v46, %s5751_s27  ;;  %v2635_v54 = vsub.f32 %v2605_v25, %v2629_v32 }
 0xd2f   : > { %v2641_v57 = vmul.f32 %v2635_v54, %v2635_v54 }
 0xd31   : > { %v2838_v5 = vpop.permute.xlu0 %2837  ;;  %v2657_v50 = vsel %vm460_vm2, %v2641_v57, 0.0 }
 0xd32   : > { %v2827_v17 = vpop.f32.mrf.mxu0  ;;  %5282 = vmatpush.xpose.msk.msrb.mxu2 %vm517_vm3, %v2838_v5 }
 0xd33   : > { %v6570_v29 = vadd.f32 %v6549_v35, %v2827_v17 }
 0xd35   : > { %5283 = vmatmul.msk.f32.vlgmr.msrb.gmra.mxu2 %vm517_vm3, %v6552_v40  ;;  %2918 = vrot.lane.b32.xlu0 %v6570_v29, %s5751_s27 }
 0xd39   : > { %v2865_v56 = vpop.permute.xlu1 %2864 }
 0xd3a   : > { %5284 = vmatpush.xpose.msk.msra.mxu3 %vm517_vm3, %v2865_v56 }
 0xd3d   : > { %5285 = vmatmul.msk.f32.vlgmr.msra.gmra.mxu3 %vm517_vm3, %v6557_v10 }
 0xd56   : > { %2658 = vadd.xlane.f32.xlu2 %v2657_v50 }
 0xd87   : > { %v2892_v11 = vpop.permute.xlu2 %2891 }
 0xd88   : > { %5286 = vmatpush.xpose.msk.msra.mxu2 %vm517_vm3, %v2892_v11 }
 0xd8b   : > { %5287 = vmatmul.msk.f32.vlgmr.msra.gmra.mxu2 %vm517_vm3, %v6564_v46 }
 0xd91   : > { %v2656_v61 = vpop.xlane.xlu1 %2655 }
 0xd92   : > { %v2664_v1 = vmul.f32 %v2656_v61, %v6319_v31 }
 0xd94   : > { %v2670_v28 = vadd.f32 1e-05, %v2664_v1 }
 0xd96   : > { %5619 = vrsqrt.f32 %v2670_v28  ;;  %vm2718_vm10 = vweird.f32 %v2670_v28 }
 0xd9c   : > { %v5620_v21 = vpop.eup %5619 }
 0xd9d   : > { %v2713_v51 = vmul.f32 %v5620_v21, %v2670_v28  ;;  %vm2719_vm9 = vweird.f32 %v5620_v21 }
 0xd9e   : > { %vm2720_vm11 = vmor %vm2718_vm10, %vm2719_vm9 }
 0xd9f   : > { %v2714_v16 = vmul.f32 %v5620_v21, %v2713_v51 }
 0xda1   : > { %v2715_v55 = vmul.f32 0.5, %v2714_v16 }
 0xda3   : > { %v2716_v2 = vsub.f32 1.5, %v2715_v55 }
 0xda5   : > { %v2717_v34 = vmul.f32 %v5620_v21, %v2716_v2 }
 0xda7   : > { %v2721_v37 = vsel %vm2720_vm11, %v5620_v21, %v2717_v34  ;;  %v2919_v22 = vpop.permute.xlu0 %2918 }
 0xda8   : > { %v2736_v52 = vmul.f32 %v2721_v37, %v2634_v45  ;;  %5288 = vmatpush.xpose.msk.msrb.mxu3 %vm517_vm3, %v2919_v22 }
 0xdaa   : > { %v2742_v3 = vmul.f32 %v2736_v52, %v6359_v20 }
 0xdab   : > { %5289 = vmatmul.msk.f32.vlgmr.msrb.gmra.mxu3 %vm517_vm3, %v6570_v29 }
 0xdac   : > { %v6590_v53 = vadd.f32 %v2742_v3, %v6362_v38 }
 0xdae   : > { %5280 = vmatmul.msk.f32.gmra.mxu0 %vm460_vm2, %v6590_v53 }
 0xdc0   : > { %v6601_v33 = vpop.f32.mrf.mxu3 }
 0xdc1   : > { %v2999_v55 = vmul.f32 0.35355338, %v6601_v33 }
 0xdc3   : > { %v3007_v2 = vsel %vm517_vm3, %v2999_v55, -inf }
 0xdc9   : > { %v2659_v4 = vpop.xlane.xlu2 %2658 }
 0xdca   : > { %v2665_v8 = vmul.f32 %v2659_v4, %v6319_v31 }
 0xdcc   : > { %v2671_v9 = vadd.f32 1e-05, %v2665_v8 }
 0xdce   : > { %5621 = vrsqrt.f32 %v2671_v9  ;;  %vm2728_vm13 = vweird.f32 %v2671_v9 }
 0xdd4   : > { %v5622_v12 = vpop.eup %5621 }
 0xdd5   : > { %v2723_v60 = vmul.f32 %v5622_v12, %v2671_v9  ;;  %vm2729_vm12 = vweird.f32 %v5622_v12 }
 0xdd6   : > { %vm2730_vm14 = vmor %vm2728_vm13, %vm2729_vm12 }
 0xdd7   : > { %v2724_v15 = vmul.f32 %v5622_v12, %v2723_v60 }
 0xdd9   : > { %v2725_v39 = vmul.f32 0.5, %v2724_v15 }
 0xddb   : > { %v2726_v24 = vsub.f32 1.5, %v2725_v39 }
 0xddd   : > { %v2727_v0 = vmul.f32 %v5622_v12, %v2726_v24 }
 0xddf   : > { %v2731_v6 = vsel %vm2730_vm14, %v5622_v12, %v2727_v0 }
 0xde0   : > { %v2737_v26 = vmul.f32 %v2731_v6, %v2635_v54 }
 0xde2   : > { %v2743_v27 = vmul.f32 %v2737_v26, %v6359_v20  ;;  %v6611_v20 = vpack.i.bf16 %v6570_v29, %v6564_v46 }
 0xde4   : > { %v6597_v47 = vadd.f32 %v2743_v27, %v6362_v38  ;;  %v2860_v38 = vpop.f32.mrf.mxu2 }
 0xde5   : > { %v2998_v45 = vmul.f32 0.35355338, %v2860_v38 }
 0xde6   : > { %5281 = vmatmul.msk.f32.gmra.mxu0 %vm460_vm2, %v6597_v47 }
 0xde7   : > { %v3004_v49 = vsel %vm517_vm3, %v2998_v45, -inf }
 0xe0e   : > { %v2914_v25 = vpop.f32.mrf.mxu2 }
 0xe0f   : > { %v3000_v62 = vmul.f32 0.35355338, %v2914_v25 }
 0xe11   : > { %v3010_v48 = vsel %vm517_vm3, %v3000_v62, -inf }
 0xe2b   : > { %v2830_v63 = vpop.f32.mrf.mxu0 }
 0xe2c   : > { %v6604_v14 = vadd.f32 %v6549_v35, %v2830_v63 }
 0xe2e   : > { %2945 = vrot.lane.b32.xlu0 %v6604_v14, %s5751_s27  ;;  %v2941_v42 = vpop.f32.mrf.mxu3 }
 0xe2f   : > { %v3001_v58 = vmul.f32 0.35355338, %v2941_v42 }
 0xe31   : > { %v3013_v13 = vsel %vm517_vm3, %v3001_v58, -inf }
 0xe32   : > { %3014 = vmax.xlane.f32.xlu1 %v3013_v13 }
 0xe36   : > { %5448 = vrot.lane.b32.xlu0 %v6611_v20, %s5753_s29 }
 0xe4b   : > { %3228 = vrot.lane.b32.xlu1 %v6552_v40, %s5752_s28 }
 0xe60   : > { %3011 = vmax.xlane.f32.xlu0 %v3010_v48 }
 0xe63   : > { %v2833_v23 = vpop.f32.mrf.mxu0 }
 0xe64   : > { %v6619_v44 = vadd.f32 %v6549_v35, %v2833_v23 }
 0xe66   : > { %2972 = vrot.lane.b32.xlu2 %v6619_v44, %s5751_s27  ;;  %v5457_v7 = vpack.i.bf16 %v6604_v14, %v6619_v44  ;;  %v6654_v11 = vpack.i.bf16 %v6619_v44, %v6604_v14 }
 0xe6e   : > { %3226 = vrot.lane.b32.xlu2 %v6552_v40, %s5754_s30 }
 0xe74   : > { %3256 = vrot.lane.b32.xlu0 %v6557_v10, %s5752_s28 }
 0xe76   : > { %3340 = vrot.lane.b32.xlu2 %v6604_v14, %s5752_s28 }
 0xe7c   : > { %3254 = vrot.lane.b32.xlu0 %v6557_v10, %s5754_s30 }
 0xe7e   : > { %3338 = vrot.lane.b32.xlu2 %v6604_v14, %s5754_s30 }
 0xe84   : > { %3368 = vrot.lane.b32.xlu0 %v6619_v44, %s5752_s28 }
 0xe86   : > { %3366 = vrot.lane.b32.xlu2 %v6619_v44, %s5754_s30 }
 0xea0   : > { %v2946_v35 = vpop.permute.xlu0 %2945 }
 0xea1   : > { %5290 = vmatpush.xpose.msk.msrb.mxu1 %vm517_vm3, %v2946_v35 }
 0xea4   : > { %5291 = vmatmul.msk.f32.vlgmr.msrb.gmra.mxu1 %vm517_vm3, %v6604_v14 }
 0xea5   : > { %v3015_v59 = vpop.xlane.xlu1 %3014 }
 0xea6   : > { %v3025_v57 = vsub.f32 %v3001_v58, %v3015_v59 }
 0xea8   : > { %v5449_v36 = vpop.permute.xlu0 %5448  ;;  %v3034_v61 = vmul.f32 1.442695, %v3025_v57 }
 0xea9   : > { %v5450_v41 = vunpack.i.l.bf16 %v5449_v36  ;;  %v5451_v17 = vunpack.i.h.bf16 %v5449_v36  ;;  %v5452_v36 = vpack.i.bf16 %v6552_v40, %v6557_v10 }
 0xeab   : > { %3143 = vmatpush.msra.mxu1 %v5450_v41 }
 0xeae   : > { %3005 = vmax.xlane.f32.xlu0 %v3004_v49 }
 0xebd   : > { %v3229_v5 = vpop.permute.xlu1 %3228 }
 0xebe   : > { %5300 = vmatpush.xpose.msk.msrb.mxu1 %vm517_vm3, %v3229_v5 }
 0xec0   : > { %v2973_v56 = vpop.permute.xlu2 %2972 }
 0xec1   : > { %5292 = vmatpush.xpose.msk.msrb.mxu0 %vm517_vm3, %v2973_v56 }
 0xec2   : > { %5458 = vrot.lane.b32.xlu0 %v5457_v7, %s5753_s29 }
 0xec4   : > { %5293 = vmatmul.msk.f32.vlgmr.msrb.gmra.mxu0 %vm517_vm3, %v6619_v44 }
 0xec5   : > { %3169 = vmatpush.msra.mxu0 %v5451_v17 }
 0xec8   : > { %v3227_v0 = vpop.permute.xlu2 %3226 }
 0xeca   : > { %3284 = vrot.lane.b32.xlu0 %v6564_v46, %s5752_s28 }
 0xed0   : > { %v3341_v63 = vpop.permute.xlu2 %3340 }
 0xed2   : > { %3282 = vrot.lane.b32.xlu0 %v6564_v46, %s5754_s30 }
 0xed3   : > { %v3012_v32 = vpop.xlane.xlu0 %3011 }
 0xed4   : > { %v3024_v54 = vsub.f32 %v3000_v62, %v3012_v32 }
 0xed6   : > { %v3032_v50 = vmul.f32 1.442695, %v3024_v54 }
 0xed8   : > { %5623 = vpow2.f32 %v3032_v50  ;;  %v3339_v62 = vpop.permute.xlu2 %3338 }
 0xed9   : > { %5625 = vpow2.f32 %v3034_v61 }
 0xeda   : > { %5468 = vrot.lane.b32.xlu0 %v6654_v11, %s5755_s11 }
 0xede   : > { %v5624_v1 = vpop.eup %5623 }
 0xedf   : > { %v3046_v28 = vsel %vm517_vm3, %v5624_v1, 0.0  ;;  %v5626_v21 = vpop.eup %5625 }
 0xee0   : > { %3047 = vadd.xlane.f32.xlu1 %v3046_v28  ;;  %v3049_v16 = vsel %vm517_vm3, %v5626_v21, 0.0  ;;  %v3367_v35 = vpop.permute.xlu2 %3366 }
 0xee2   : > { %3758 = vrot.lane.b32.xlu0 %v6557_v10, %s5756_s12 }
 0xee6   : > { %v3257_v51 = vpop.permute.xlu0 %3256 }
 0xee7   : > { %5302 = vmatpush.xpose.msk.msrb.mxu0 %vm517_vm3, %v3257_v51 }
 0xee8   : > { %3050 = vadd.xlane.f32.xlu1 %v3049_v16 }
 0xeee   : > { %v3255_v34 = vpop.permute.xlu0 %3254 }
 0xef0   : > { %3008 = vmax.xlane.f32.xlu1 %v3007_v2 }
 0xef6   : > { %v3369_v37 = vpop.permute.xlu0 %3368 }
 0xf21   : > { %v2968_v22 = vpop.f32.mrf.mxu1  ;;  %v3006_v52 = vpop.xlane.xlu0 %3005 }
 0xf22   : > { %v3002_v3 = vmul.f32 0.35355338, %v2968_v22  ;;  %v3022_v4 = vsub.f32 %v2998_v45, %v3006_v52  ;;  %v6691_v45 = vpack.i.bf16 %v6557_v10, %v6552_v40 }
 0xf24   : > { %v3028_v8 = vmul.f32 1.442695, %v3022_v4  ;;  %v3016_v9 = vsel %vm517_vm3, %v3002_v3, -inf }
 0xf25   : > { %3017 = vmax.xlane.f32.xlu1 %v3016_v9 }
 0xf26   : > { %5627 = vpow2.f32 %v3028_v8 }
 0xf2c   : > { %v6666_v12 = vpop.eup %5627 }
 0xf2d   : > { %v3040_v60 = vsel %vm517_vm3, %v6666_v12, 0.0 }
 0xf2e   : > { %3041 = vadd.xlane.f32.xlu1 %v3040_v60 }
 0xf41   : > { %v2995_v15 = vpop.f32.mrf.mxu0 }
 0xf42   : > { %v3003_v39 = vmul.f32 0.35355338, %v2995_v15 }
 0xf44   : > { %v3019_v24 = vsel %vm517_vm3, %v3003_v39, -inf }
 0xf45   : > { %3020 = vmax.xlane.f32.xlu2 %v3019_v24 }
 0xf47   : > { %3312 = vrot.lane.b32.xlu1 %v6570_v29, %s5752_s28 }
 0xf4f   : > { %3730 = vrot.lane.b32.xlu1 %v6552_v40, %s5756_s12 }
 0xf53   : > { %v3048_v6 = vpop.xlane.xlu1 %3047 }
 0xf54   : > { %5629 = vrcp.f32 %v3048_v6 }
 0xf5a   : > { %v5630_v26 = vpop.eup %5629 }
 0xf5b   : > { %v3066_v27 = vmul.f32 %v5630_v26, %v5624_v1  ;;  %v3051_v33 = vpop.xlane.xlu1 %3050 }
 0xf5c   : > { %5631 = vrcp.f32 %v3051_v33 }
 0xf5d   : > { %5296 = vmatmul.msk.f32.vlgmr.msra.gmra.mxu1 %vm517_vm3, %v3066_v27 }
 0xf5e   : > { %5308 = vmatpush.xpose.msk.msra.mxu1 %vm517_vm3, %v3341_v63 }
 0xf62   : > { %v5632_v42 = vpop.eup %5631 }
 0xf63   : > { %v3067_v58 = vmul.f32 %v5632_v42, %v5626_v21  ;;  %v3009_v13 = vpop.xlane.xlu1 %3008 }
 0xf64   : > { %v3023_v38 = vsub.f32 %v2999_v55, %v3009_v13  ;;  %v5459_v55 = vpop.permute.xlu0 %5458 }
 0xf65   : > { %5297 = vmatmul.msk.f32.vlgmr.msra.gmra.mxu0 %vm517_vm3, %v3067_v58  ;;  %5301 = vmatmul.msk.f32.vlgmr.msrb.gmra.mxu1 %vm517_vm3, %v3227_v0  ;;  %v5461_v0 = vunpack.i.h.bf16 %v5459_v55  ;;  %v5460_v6 = vunpack.i.l.bf16 %v5459_v55 }
 0xf66   : > { %v3030_v25 = vmul.f32 1.442695, %v3023_v38  ;;  %5310 = vmatpush.xpose.msk.msra.mxu0 %vm517_vm3, %v3369_v37 }
 0xf68   : > { %5633 = vpow2.f32 %v3030_v25 }
 0xf6c   : > { %v3285_v26 = vpop.permute.xlu0 %3284 }
 0xf6d   : > { %5303 = vmatmul.msk.f32.vlgmr.msrb.gmra.mxu0 %vm517_vm3, %v3255_v34  ;;  %5309 = vmatmul.msk.f32.vlgmr.msra.gmra.mxu1 %vm517_vm3, %v3339_v62 }
 0xf6e   : > { %v5634_v48 = vpop.eup %5633 }
 0xf6f   : > { %v3043_v23 = vsel %vm517_vm3, %v5634_v48, 0.0 }
 0xf70   : > { %3044 = vadd.xlane.f32.xlu2 %v3043_v23 }
 0xf74   : > { %v3283_v42 = vpop.permute.xlu0 %3282 }
 0xf75   : > { %5311 = vmatmul.msk.f32.vlgmr.msra.gmra.mxu0 %vm517_vm3, %v3367_v35 }
 0xf7c   : > { %v5469_v35 = vpop.permute.xlu0 %5468 }
 0xf88   : > { %5453 = vrot.lane.b32.xlu2 %v5452_v36, %s5753_s29  ;;  %v5470_v36 = vunpack.i.l.bf16 %v5469_v35 }
 0xf90   : > { %3310 = vrot.lane.b32.xlu2 %v6570_v29, %s5754_s30 }
 0xf98   : > { %v3018_v41 = vpop.xlane.xlu1 %3017  ;;  %5463 = vrot.lane.b32.xlu2 %v6691_v45, %s5755_s11 }
 0xf99   : > { %v3026_v49 = vsub.f32 %v3002_v3, %v3018_v41  ;;  %v6736_v41 = vpop.permute.xlu0 %3758 }
 0xf9b   : > { %v3036_v59 = vmul.f32 1.442695, %v3026_v49 }
 0xf9d   : > { %5635 = vpow2.f32 %v3036_v59 }
 0xfa0   : > { %3728 = vrot.lane.b32.xlu2 %v6552_v40, %s5757_s14 }
 0xfa1   : > { %v3042_v61 = vpop.xlane.xlu1 %3041 }
 0xfa3   : > { %v5636_v5 = vpop.eup %5635 }
 0xfa4   : > { %v3052_v17 = vsel %vm517_vm3, %v5636_v5, 0.0 }
 0xfa5   : > { %3053 = vadd.xlane.f32.xlu1 %v3052_v17 }
 0xfb8   : > { %v3021_v56 = vpop.xlane.xlu2 %3020 }
 0xfb9   : > { %v3027_v7 = vsub.f32 %v3003_v39, %v3021_v56  ;;  %v3313_v27 = vpop.permute.xlu1 %3312  ;;  %v5471_v56 = vunpack.i.h.bf16 %v5469_v35 }
 0xfbb   : > { %v3038_v32 = vmul.f32 1.442695, %v3027_v7 }
 0xfbd   : > { %5637 = vpow2.f32 %v3038_v32 }
 0xfbe   : > { %3756 = vrot.lane.b32.xlu1 %v6557_v10, %s5757_s14  ;;  %5639 = vrcp.f32 %v3042_v61 }
 0xfc3   : > { %v6700_v54 = vpop.eup %5637 }
 0xfc4   : > { %v3055_v57 = vsel %vm517_vm3, %v6700_v54, 0.0  ;;  %v5640_v2 = vpop.eup %5639 }
 0xfc5   : > { %3056 = vadd.xlane.f32.xlu0 %v3055_v57  ;;  %v3064_v39 = vmul.f32 %v5640_v2, %v6666_v12  ;;  %v6731_v12 = vpop.permute.xlu1 %3730 }
 0xfda   : > { %v6704_v50 = vpop.f32.mrf.mxu1 }
 0xfe2   : > { %v6706_v1 = vpop.f32.mrf.mxu0  ;;  %v3251_v28 = vpop.f32.mrf.mxu1 }
 0xfe3   : > { %v6708_v21 = vmul.f32 0.35355338, %v3251_v28  ;;  %v3045_v51 = vpop.xlane.xlu2 %3044 }
 0xfe4   : > { %5641 = vrcp.f32 %v3045_v51 }
 0xfe5   : > { %v3400_v16 = vsel %vm517_vm3, %v6708_v21, -inf }
 0xfe6   : > { %3401 = vmax.xlane.f32.xlu0 %v3400_v16 }
 0xfea   : > { %v3279_v34 = vpop.f32.mrf.mxu0  ;;  %v3363_v37 = vpop.f32.mrf.mxu1 }
 0xfeb   : > { %v5642_v22 = vpop.eup %5641  ;;  %v6712_v52 = vmul.f32 0.35355338, %v3279_v34  ;;  %v6714_v3 = vmul.f32 0.35355338, %v3363_v37  ;;  %v5454_v4 = vpop.permute.xlu2 %5453 }
 0xfec   : > { %v5456_v8 = vunpack.i.h.bf16 %v5454_v4  ;;  %v5455_v9 = vunpack.i.l.bf16 %v5454_v4  ;;  %v3065_v24 = vmul.f32 %v5642_v22, %v5634_v48 }
 0xfed   : > { %v3403_v60 = vsel %vm517_vm3, %v6712_v52, -inf  ;;  %v3412_v15 = vsel %vm517_vm3, %v6714_v3, -inf }
 0xfee   : > { %3404 = vmax.xlane.f32.xlu2 %v3403_v60  ;;  %3413 = vmax.xlane.f32.xlu1 %v3412_v15 }
 0xfef   : > { %3091 = vmatpush.msrb.mxu2 %v5456_v8  ;;  %3117 = vmatpush.msra.mxu3 %v5455_v9 }
 0xff0   : > { %5294 = vmatmul.msk.f32.vlgmr.msrb.gmra.mxu2 %vm517_vm3, %v3064_v39  ;;  %5295 = vmatmul.msk.f32.vlgmr.msra.gmra.mxu3 %vm517_vm3, %v3065_v24 }
 0xff1   : > { %3195 = vmatpush.msra.mxu2 %v5461_v0  ;;  %3221 = vmatpush.msrb.mxu3 %v5460_v6 }
 0xff2   : > { %v3391_v58 = vpop.f32.mrf.mxu0 }
 0xff3   : > { %5304 = vmatpush.xpose.msk.msrb.mxu2 %vm517_vm3, %v3285_v26  ;;  %5306 = vmatpush.xpose.msk.msra.mxu3 %vm517_vm3, %v3313_v27  ;;  %v3311_v33 = vpop.permute.xlu2 %3310  ;;  %v3399_v25 = vmul.f32 0.35355338, %v3391_v58 }
 0xff5   : > { %v3415_v23 = vsel %vm517_vm3, %v3399_v25, -inf }
 0xffa   : > { %3784 = vrot.lane.b32.xlu0 %v6564_v46, %s5757_s14 }
 0xffb   : > { %v5464_v13 = vpop.permute.xlu2 %5463 }
 0xffc   : > { %v5465_v48 = vunpack.i.l.bf16 %v5464_v13  ;;  %v5466_v17 = vunpack.i.h.bf16 %v5464_v13 }
0x1003   : > { %v6743_v7 = vpop.permute.xlu2 %3728 }
0x1006   : > { %3786 = vrot.lane.b32.xlu2 %v6564_v46, %s5756_s12 }
0x1007   : > { %3842 = vrot.lane.b32.xlu1 %v6604_v14, %s5756_s12 }
0x1018   : > { %v3054_v63 = vpop.xlane.xlu1 %3053 }
0x1019   : > { %5643 = vrcp.f32 %v3054_v63 }
0x101f   : > { %v5644_v38 = vpop.eup %5643 }
0x1020   : > { %v3068_v62 = vmul.f32 %v5644_v38, %v5636_v5 }
0x1022   : > { %5298 = vmatmul.msk.f32.vlgmr.msra.gmra.mxu2 %vm517_vm3, %v3068_v62 }
0x1023   : > { %3487 = vmatpush.msra.mxu2 %v5465_v48 }
0x1024   : > { %3416 = vmax.xlane.f32.xlu0 %v3415_v23 }
0x102a   : > { %5305 = vmatmul.msk.f32.vlgmr.msrb.gmra.mxu2 %vm517_vm3, %v3283_v42 }
0x102b   : > { %3591 = vmatpush.msrb.mxu2 %v5470_v36 }
0x1030   : > { %v6745_v32 = vpop.permute.xlu1 %3756 }
0x1038   : > { %3812 = vrot.lane.b32.xlu0 %v6570_v29, %s5757_s14  ;;  %v3057_v49 = vpop.xlane.xlu0 %3056 }
0x1039   : > { %5645 = vrcp.f32 %v3057_v49 }
0x103f   : > { %v5646_v59 = vpop.eup %5645 }
0x1040   : > { %v3069_v5 = vmul.f32 %v5646_v59, %v6700_v54 }
0x1042   : > { %5299 = vmatmul.msk.f32.vlgmr.msrb.gmra.mxu3 %vm517_vm3, %v3069_v5 }
0x1043   : > { %3513 = vmatpush.msrb.mxu3 %v5466_v17 }
0x104a   : > { %5307 = vmatmul.msk.f32.vlgmr.msra.gmra.mxu3 %vm517_vm3, %v3311_v33 }
0x104b   : > { %3617 = vmatpush.msra.mxu3 %v5471_v56 }
0x1059   : > { %v3402_v57 = vpop.xlane.xlu0 %3401 }
0x105a   : > { %v3418_v61 = vsub.f32 %v6708_v21, %v3402_v57 }
0x105c   : > { %v3424_v28 = vmul.f32 1.442695, %v3418_v61 }
0x105e   : > { %5647 = vpow2.f32 %v3424_v28 }
0x1061   : > { %v3414_v51 = vpop.xlane.xlu1 %3413  ;;  %v3405_v16 = vpop.xlane.xlu2 %3404 }
0x1062   : > { %v3422_v54 = vsub.f32 %v6714_v3, %v3414_v51  ;;  %v3419_v55 = vsub.f32 %v6712_v52, %v3405_v16 }
0x1064   : > { %v5648_v2 = vpop.eup %5647  ;;  %v3432_v34 = vmul.f32 1.442695, %v3422_v54  ;;  %v3426_v37 = vmul.f32 1.442695, %v3419_v55 }
0x1065   : > { %v3436_v22 = vsel %vm517_vm3, %v5648_v2, 0.0 }
0x1066   : > { %5649 = vpow2.f32 %v3432_v34  ;;  %3437 = vadd.xlane.f32.xlu2 %v3436_v22 }
0x1067   : > { %5651 = vpow2.f32 %v3426_v37 }
0x1069   : > { %v3787_v63 = vpop.permute.xlu2 %3786 }
0x106c   : > { %v5650_v4 = vpop.eup %5649  ;;  %v3785_v52 = vpop.permute.xlu0 %3784 }
0x106d   : > { %v5652_v8 = vpop.eup %5651  ;;  %v3448_v21 = vsel %vm517_vm3, %v5650_v4, 0.0 }
0x106e   : > { %3449 = vadd.xlane.f32.xlu0 %v3448_v21  ;;  %v3439_v9 = vsel %vm517_vm3, %v5652_v8, 0.0 }
0x106f   : > { %3440 = vadd.xlane.f32.xlu1 %v3439_v9 }
0x1073   : > { %v6760_v0 = vpop.f32.mrf.mxu3  ;;  %v3093_v51 = vpop.f32.mrf.mxu2 }
0x1079   : > { %v3843_v13 = vpop.permute.xlu1 %3842 }
0x107e   : > { %3814 = vrot.lane.b32.xlu2 %v6570_v29, %s5756_s12 }
0x1082   : > { %3868 = vrot.lane.b32.xlu0 %v6619_v44, %s5757_s14 }
0x1086   : > { %3840 = vrot.lane.b32.xlu2 %v6604_v14, %s5757_s14 }
0x1097   : > { %v3417_v3 = vpop.xlane.xlu0 %3416 }
0x1098   : > { %v3423_v60 = vsub.f32 %v3399_v25, %v3417_v3 }
0x109a   : > { %v3434_v15 = vmul.f32 1.442695, %v3423_v60 }
0x109c   : > { %5653 = vpow2.f32 %v3434_v15 }
0x10a2   : > { %v5654_v39 = vpop.eup %5653 }
0x10a3   : > { %v3451_v24 = vsel %vm517_vm3, %v5654_v39, 0.0 }
0x10a4   : > { %3452 = vadd.xlane.f32.xlu1 %v3451_v24 }
0x10aa   : > { %v3813_v42 = vpop.permute.xlu0 %3812 }
0x10bd   : > { %3870 = vrot.lane.b32.xlu1 %v6619_v44, %s5756_s12 }
0x10c5   : > { %v6764_v6 = vpop.f32.mrf.mxu3 }
0x10cd   : > { %v3335_v26 = vpop.f32.mrf.mxu3 }
0x10ce   : > { %v3397_v27 = vmul.f32 0.35355338, %v3335_v26 }
0x10d0   : > { %v3409_v33 = vsel %vm517_vm3, %v3397_v27, -inf }
0x10d1   : > { %3410 = vmax.xlane.f32.xlu2 %v3409_v33 }
0x10d9   : > { %v3438_v58 = vpop.xlane.xlu2 %3437 }
0x10da   : > { %5655 = vrcp.f32 %v3438_v58 }
0x10e0   : > { %v5656_v38 = vpop.eup %5655 }
0x10e1   : > { %v3460_v25 = vmul.f32 %v5656_v38, %v5648_v2  ;;  %v3450_v62 = vpop.xlane.xlu0 %3449 }
0x10e2   : > { %5657 = vrcp.f32 %v3450_v62  ;;  %v3441_v48 = vpop.xlane.xlu1 %3440 }
0x10e3   : > { %5659 = vrcp.f32 %v3441_v48  ;;  %5312 = vmatmul.msk.f32.vlgmr.msra.gmra.mxu2 %vm517_vm3, %v3460_v25 }
0x10e4   : > { %5330 = vmatpush.xpose.msk.msra.mxu2 %vm517_vm3, %v6731_v12  ;;  %v3815_v12 = vpop.permute.xlu2 %3814 }
0x10e8   : > { %v5658_v23 = vpop.eup %5657 }
0x10e9   : > { %v5660_v35 = vpop.eup %5659  ;;  %v3464_v36 = vmul.f32 %v5658_v23, %v5650_v4  ;;  %3544 = vrot.lane.b32.xlu2 %v6570_v29, %s5755_s11 }
0x10ea   : > { %v3461_v49 = vmul.f32 %v5660_v35, %v5652_v8 }
0x10eb   : > { %5316 = vmatmul.msk.f32.vlgmr.msrb.gmra.mxu2 %vm517_vm3, %v3464_v36 }
0x10ec   : > { %5313 = vmatmul.msk.f32.vlgmr.msrb.gmra.mxu3 %vm517_vm3, %v3461_v49  ;;  %5334 = vmatpush.xpose.msk.msrb.mxu2 %vm517_vm3, %v3787_v63  ;;  %v3841_v59 = vpop.permute.xlu2 %3840 }
0x10ed   : > { %5332 = vmatpush.xpose.msk.msrb.mxu3 %vm517_vm3, %v6736_v41 }
0x10f3   : > { %5331 = vmatmul.msk.f32.vlgmr.msra.gmra.mxu2 %vm517_vm3, %v6743_v7 }
0x10f4   : > { %5338 = vmatpush.xpose.msk.msra.mxu2 %vm517_vm3, %v3843_v13  ;;  %v3869_v7 = vpop.permute.xlu0 %3868 }
0x10fb   : > { %5335 = vmatmul.msk.f32.vlgmr.msrb.gmra.mxu2 %vm517_vm3, %v3785_v52 }
0x1103   : > { %5339 = vmatmul.msk.f32.vlgmr.msra.gmra.mxu2 %vm517_vm3, %v3841_v59 }
0x1117   : > { %v3453_v5 = vpop.xlane.xlu1 %3452 }
0x1118   : > { %5661 = vrcp.f32 %v3453_v5 }
0x111e   : > { %v5662_v17 = vpop.eup %5661 }
0x111f   : > { %v3465_v56 = vmul.f32 %v5662_v17, %v5654_v39 }
0x1121   : > { %5317 = vmatmul.msk.f32.vlgmr.msra.gmra.mxu3 %vm517_vm3, %v3465_v56 }
0x1122   : > { %5336 = vmatpush.xpose.msk.msra.mxu3 %vm517_vm3, %v3815_v12 }
0x1129   : > { %5333 = vmatmul.msk.f32.vlgmr.msrb.gmra.mxu3 %vm517_vm3, %v6745_v32  ;;  %v3197_v32 = vpop.f32.mrf.mxu2 }
0x112f   : > { %v3871_v41 = vpop.permute.xlu1 %3870 }
0x1130   : > { %5340 = vmatpush.xpose.msk.msrb.mxu3 %vm517_vm3, %v3871_v41 }
0x1131   : > { %5337 = vmatmul.msk.f32.vlgmr.msra.gmra.mxu3 %vm517_vm3, %v3813_v42  ;;  %v6790_v2 = vpop.f32.mrf.mxu2  ;;  %v5258_v42 = vld [vmem:[%s7247_s5 + $0x20] sm:$0xff] }
0x1139   : > { %5341 = vmatmul.msk.f32.vlgmr.msrb.gmra.mxu3 %vm517_vm3, %v3869_v7 }
0x1144   : > { %v3411_v57 = vpop.xlane.xlu2 %3410 }
0x1145   : > { %v3421_v61 = vsub.f32 %v3397_v27, %v3411_v57 }
0x1147   : > { %v3430_v28 = vmul.f32 1.442695, %v3421_v61 }
0x1149   : > { %5663 = vpow2.f32 %v3430_v28 }
0x114c   : > { %v3545_v16 = vpop.permute.xlu2 %3544 }
0x114d   : > { %3565 = vmatpush.msrb.mxu0 %v3545_v16 }
0x114f   : > { %v5664_v54 = vpop.eup %5663  ;;  %3708 = vmatpush.msra.mxu0 %v5258_v42 }
0x1150   : > { %v3445_v55 = vsel %vm517_vm3, %v5664_v54, 0.0 }
0x1151   : > { %3446 = vadd.xlane.f32.xlu0 %v3445_v55 }
0x1166   : > { %v6792_v34 = vpop.f32.mrf.mxu2 }
0x116e   : > { %v6794_v37 = vpop.f32.mrf.mxu2 }
0x116f   : > { %v6799_v39 = vpop.f32.mrf.mxu3 }
0x1176   : > { %v3753_v22 = vpop.f32.mrf.mxu2 }
0x1177   : > { %v3896_v4 = vmul.f32 0.35355338, %v3753_v22 }
0x1179   : > { %v3902_v8 = vsel %vm517_vm3, %v3896_v4, -inf }
0x117a   : > { %3903 = vmax.xlane.f32.xlu1 %v3902_v8 }
0x117e   : > { %v3809_v21 = vpop.f32.mrf.mxu2 }
0x117f   : > { %v3898_v9 = vmul.f32 0.35355338, %v3809_v21 }
0x1181   : > { %v3908_v52 = vsel %vm517_vm3, %v3898_v9, -inf }
0x1182   : > { %3909 = vmax.xlane.f32.xlu2 %v3908_v52 }
0x1186   : > { %v3865_v3 = vpop.f32.mrf.mxu2 }
0x1187   : > { %v3900_v60 = vmul.f32 0.35355338, %v3865_v3 }
0x1189   : > { %v3914_v15 = vsel %vm517_vm3, %v3900_v60, -inf }
0x118a   : > { %3915 = vmax.xlane.f32.xlu2 %v3914_v15 }
0x11a2   : > { %4185 = vrot.lane.b32.xlu2 %v6552_v40, %s5760_s21 }
0x11a4   : > { %v6803_v24 = vpop.f32.mrf.mxu3 }
0x11ac   : > { %v3781_v26 = vpop.f32.mrf.mxu3 }
0x11ad   : > { %v3897_v27 = vmul.f32 0.35355338, %v3781_v26 }
0x11af   : > { %v3905_v33 = vsel %vm517_vm3, %v3897_v27, -inf }
0x11b0   : > { %3906 = vmax.xlane.f32.xlu0 %v3905_v33 }
0x11b4   : > { %v3837_v63 = vpop.f32.mrf.mxu3 }
0x11b5   : > { %v3899_v58 = vmul.f32 0.35355338, %v3837_v63 }
0x11b7   : > { %v3911_v13 = vsel %vm517_vm3, %v3899_v58, -inf }
0x11b8   : > { %3912 = vmax.xlane.f32.xlu1 %v3911_v13 }
0x11bc   : > { %v3893_v38 = vpop.f32.mrf.mxu3 }
0x11bd   : > { %v3901_v25 = vmul.f32 0.35355338, %v3893_v38 }
0x11bf   : > { %v3917_v62 = vsel %vm517_vm3, %v3901_v25, -inf }
0x11c0   : > { %3918 = vmax.xlane.f32.xlu1 %v3917_v62 }
0x11c4   : > { %5478 = vrot.lane.b32.xlu0 %v6611_v20, %s5758_s15  ;;  %v3447_v48 = vpop.xlane.xlu0 %3446 }
0x11c5   : > { %5665 = vrcp.f32 %v3447_v48 }
0x11cb   : > { %v5666_v23 = vpop.eup %5665 }
0x11cc   : > { %v3463_v35 = vmul.f32 %v5666_v23, %v5664_v54  ;;  %5483 = vrot.lane.b32.xlu0 %v6654_v11, %s5758_s15 }
0x11ce   : > { %5315 = vmatmul.msk.f32.vlgmr.msrb.gmra.mxu0 %vm517_vm3, %v3463_v35 }
0x11d4   : > { %4213 = vrot.lane.b32.xlu0 %v6557_v10, %s5760_s21 }
0x11d6   : > { %5324 = vmatmul.msk.f32.vlgmr.msra.gmra.mxu0 %vm517_vm3, %v3093_v51 }
0x11d9   : > { %5473 = vrot.lane.b32.xlu1 %v6691_v45, %s5758_s15 }
0x11dc   : > { %4211 = vrot.lane.b32.xlu0 %v6557_v10, %s5759_s20 }
0x11de   : > { %5325 = vmatmul.msk.f32.gmra.mxu0 %vm517_vm3, %v6760_v0 }
0x11e4   : > { %4183 = vrot.lane.b32.xlu0 %v6552_v40, %s5759_s20 }
0x11e6   : > { %5326 = vmatmul.msk.f32.gmra.mxu0 %vm517_vm3, %v6704_v50 }
0x11ec   : > { %4241 = vrot.lane.b32.xlu0 %v6564_v46, %s5760_s21 }
0x11ed   : > { %v3904_v49 = vpop.xlane.xlu1 %3903 }
0x11ee   : > { %5327 = vmatmul.msk.f32.gmra.mxu0 %vm517_vm3, %v6706_v1  ;;  %v3920_v40 = vsub.f32 %v3896_v4, %v3904_v49 }
0x11f0   : > { %v3926_v59 = vmul.f32 1.442695, %v3920_v40 }
0x11f5   : > { %v3910_v11 = vpop.xlane.xlu2 %3909 }
0x11f6   : > { %5328 = vmatmul.msk.f32.gmra.mxu0 %vm517_vm3, %v3197_v32  ;;  %v3922_v5 = vsub.f32 %v3898_v9, %v3910_v11 }
0x11f8   : > { %v3930_v17 = vmul.f32 1.442695, %v3922_v5 }
0x11fd   : > { %v3916_v36 = vpop.xlane.xlu2 %3915 }
0x11fe   : > { %v3924_v10 = vsub.f32 %v3900_v60, %v3916_v36  ;;  %5329 = vmatmul.msk.f32.gmra.mxu0 %vm517_vm3, %v6764_v6 }
0x1200   : > { %v3934_v0 = vmul.f32 1.442695, %v3924_v10 }
0x1202   : > { %5667 = vpow2.f32 %v3934_v0 }
0x1203   : > { %5669 = vpow2.f32 %v3926_v59 }
0x1204   : > { %5671 = vpow2.f32 %v3930_v17 }
0x1205   : > { %v4186_v12 = vpop.permute.xlu2 %4185 }
0x1206   : > { %5354 = vmatpush.xpose.msk.msrb.mxu0 %vm517_vm3, %v4186_v12 }
0x1208   : > { %v6837_v50 = vpop.eup %5667 }
0x1209   : > { %v3950_v1 = vsel %vm517_vm3, %v6837_v50, 0.0  ;;  %v5670_v56 = vpop.eup %5669 }
0x120a   : > { %3951 = vadd.xlane.f32.xlu2 %v3950_v1  ;;  %v3938_v6 = vsel %vm517_vm3, %v5670_v56, 0.0  ;;  %v6842_v41 = vpop.eup %5671 }
0x120b   : > { %v3944_v7 = vsel %vm517_vm3, %v6842_v41, 0.0 }
0x1216   : > { %3939 = vadd.xlane.f32.xlu0 %v3938_v6 }
0x121e   : > { %3945 = vadd.xlane.f32.xlu0 %v3944_v7 }
0x1222   : > { %4295 = vrot.lane.b32.xlu2 %v6604_v14, %s5759_s20 }
0x1223   : > { %v3907_v57 = vpop.xlane.xlu0 %3906 }
0x1224   : > { %v3921_v61 = vsub.f32 %v3897_v27, %v3907_v57 }
0x1226   : > { %v3928_v28 = vmul.f32 1.442695, %v3921_v61 }
0x1228   : > { %5673 = vpow2.f32 %v3928_v28 }
0x122a   : > { %4267 = vrot.lane.b32.xlu2 %v6570_v29, %s5759_s20 }
0x122b   : > { %v3913_v51 = vpop.xlane.xlu1 %3912 }
0x122c   : > { %v3923_v16 = vsub.f32 %v3899_v58, %v3913_v51 }
0x122e   : > { %v6850_v54 = vpop.eup %5673  ;;  %v3932_v55 = vmul.f32 1.442695, %v3923_v16 }
0x122f   : > { %v3941_v32 = vsel %vm517_vm3, %v6850_v54, 0.0 }
0x1230   : > { %5675 = vpow2.f32 %v3932_v55  ;;  %3942 = vadd.xlane.f32.xlu1 %v3941_v32 }
0x1232   : > { %4323 = vrot.lane.b32.xlu2 %v6619_v44, %s5759_s20 }
0x1233   : > { %v3919_v22 = vpop.xlane.xlu1 %3918 }
0x1234   : > { %v3925_v4 = vsub.f32 %v3901_v25, %v3919_v22  ;;  %v6874_v25 = vmul.f32 0.35355338, %v6790_v2 }
0x1236   : > { %v6856_v8 = vpop.eup %5675  ;;  %v3936_v21 = vmul.f32 1.442695, %v3925_v4  ;;  %v5479_v9 = vpop.permute.xlu0 %5478  ;;  %v3406_v48 = vsel %vm517_vm3, %v6874_v25, -inf }
0x1237   : > { %v3947_v52 = vsel %vm517_vm3, %v6856_v8, 0.0  ;;  %v5481_v42 = vunpack.i.h.bf16 %v5479_v9  ;;  %v5480_v58 = vunpack.i.l.bf16 %v5479_v9 }
0x1238   : > { %5677 = vpow2.f32 %v3936_v21  ;;  %3948 = vadd.xlane.f32.xlu0 %v3947_v52 }
0x123e   : > { %v6860_v3 = vpop.eup %5677  ;;  %v5484_v60 = vpop.permute.xlu0 %5483 }
0x123f   : > { %v3953_v15 = vsel %vm517_vm3, %v6860_v3, 0.0  ;;  %v5485_v10 = vunpack.i.l.bf16 %v5484_v60 }
0x1240   : > { %3954 = vadd.xlane.f32.xlu1 %v3953_v15 }
0x1246   : > { %v4214_v26 = vpop.permute.xlu0 %4213 }
0x124b   : > { %v5474_v27 = vpop.permute.xlu1 %5473  ;;  %v6878_v35 = vpop.f32.mrf.mxu0 }
0x124c   : > { %v5476_v33 = vunpack.i.h.bf16 %v5474_v27  ;;  %v5475_v63 = vunpack.i.l.bf16 %v5474_v27  ;;  %4297 = vrot.lane.b32.xlu0 %v6604_v14, %s5760_s21 }
0x124e   : > { %3989 = vmatpush.msrb.mxu2 %v5475_v63  ;;  %4015 = vmatpush.msra.mxu3 %v5476_v33  ;;  %v4212_v13 = vpop.permute.xlu0 %4211 }
0x1250   : > { %4041 = vmatpush.msra.mxu2 %v5480_v58  ;;  %4067 = vmatpush.msrb.mxu3 %v5481_v42 }
0x1253   : > { %v6882_v40 = vpop.f32.mrf.mxu0 }
0x1254   : > { %4269 = vrot.lane.b32.xlu0 %v6570_v29, %s5760_s21 }
0x1256   : > { %v4184_v38 = vpop.permute.xlu0 %4183 }
0x1257   : > { %5355 = vmatmul.msk.f32.vlgmr.msrb.gmra.mxu0 %vm517_vm3, %v4184_v38 }
0x1259   : > { %4239 = vrot.lane.b32.xlu1 %v6564_v46, %s5759_s20 }
0x125b   : > { %v6888_v5 = vpop.f32.mrf.mxu0 }
0x125c   : > { %4325 = vrot.lane.b32.xlu0 %v6619_v44, %s5760_s21 }
0x125e   : > { %v4242_v62 = vpop.permute.xlu0 %4241 }
0x1263   : > { %v6893_v7 = vpop.f32.mrf.mxu0 }
0x126b   : > { %v6898_v28 = vpop.f32.mrf.mxu0 }
0x1273   : > { %v6903_v32 = vpop.f32.mrf.mxu0 }
0x127b   : > { %v6908_v21 = vpop.f32.mrf.mxu0 }
0x127d   : > { %v3952_v0 = vpop.xlane.xlu2 %3951 }
0x1283   : > { %3407 = vmax.xlane.f32.xlu1 %v3406_v48 }
0x1285   : > { %v4296_v55 = vpop.permute.xlu2 %4295 }
0x1289   : > { %v3940_v23 = vpop.xlane.xlu0 %3939 }
0x128a   : > { %5679 = vrcp.f32 %v3940_v23 }
0x128d   : > { %v4268_v4 = vpop.permute.xlu2 %4267 }
0x1290   : > { %v5680_v29 = vpop.eup %5679 }
0x1291   : > { %v3962_v11 = vmul.f32 %v5680_v29, %v5670_v56  ;;  %v3946_v36 = vpop.xlane.xlu0 %3945 }
0x1292   : > { %5681 = vrcp.f32 %v3946_v36 }
0x1293   : > { %5342 = vmatmul.msk.f32.vlgmr.msrb.gmra.mxu2 %vm517_vm3, %v3962_v11  ;;  %5683 = vrcp.f32 %v3952_v0 }
0x1294   : > { %4093 = vmatpush.msrb.mxu2 %v5485_v10 }
0x1295   : > { %v4324_v52 = vpop.permute.xlu2 %4323 }
0x1298   : > { %v5682_v2 = vpop.eup %5681 }
0x1299   : > { %v3964_v49 = vmul.f32 %v5682_v2, %v6842_v41  ;;  %v5684_v12 = vpop.eup %5683  ;;  %v5486_v41 = vunpack.i.h.bf16 %v5484_v60 }
0x129a   : > { %v3966_v59 = vmul.f32 %v5684_v12, %v6837_v50 }
0x129b   : > { %5344 = vmatmul.msk.f32.vlgmr.msra.gmra.mxu2 %vm517_vm3, %v3964_v49 }
0x129c   : > { %5356 = vmatpush.xpose.msk.msra.mxu2 %vm517_vm3, %v4214_v26 }
0x12a3   : > { %v3943_v1 = vpop.xlane.xlu1 %3942  ;;  %5346 = vmatmul.msk.f32.vlgmr.msrb.gmra.mxu2 %vm517_vm3, %v3966_v59 }
0x12a4   : > { %5685 = vrcp.f32 %v3943_v1 }
0x12aa   : > { %v5686_v17 = vpop.eup %5685 }
0x12ab   : > { %v3963_v56 = vmul.f32 %v5686_v17, %v6850_v54  ;;  %v3949_v6 = vpop.xlane.xlu0 %3948  ;;  %5357 = vmatmul.msk.f32.vlgmr.msra.gmra.mxu2 %vm517_vm3, %v4212_v13 }
0x12ac   : > { %5687 = vrcp.f32 %v3949_v6 }
0x12ad   : > { %5343 = vmatmul.msk.f32.vlgmr.msra.gmra.mxu3 %vm517_vm3, %v3963_v56 }
0x12ae   : > { %4119 = vmatpush.msra.mxu3 %v5486_v41 }
0x12b2   : > { %v5688_v50 = vpop.eup %5687 }
0x12b3   : > { %v3965_v57 = vmul.f32 %v5688_v50, %v6856_v8  ;;  %v3955_v61 = vpop.xlane.xlu1 %3954 }
0x12b4   : > { %5689 = vrcp.f32 %v3955_v61 }
0x12b5   : > { %5345 = vmatmul.msk.f32.vlgmr.msrb.gmra.mxu3 %vm517_vm3, %v3965_v57 }
0x12b6   : > { %5358 = vmatpush.xpose.msk.msrb.mxu3 %vm517_vm3, %v4242_v62 }
0x12ba   : > { %v5690_v51 = vpop.eup %5689 }
0x12bb   : > { %v3967_v16 = vmul.f32 %v5690_v51, %v6860_v3 }
0x12bd   : > { %5347 = vmatmul.msk.f32.vlgmr.msra.gmra.mxu3 %vm517_vm3, %v3967_v16  ;;  %v5259_v16 = vld [vmem:[%s7247_s5 + $0x28] sm:$0xff] }
0x12be   : > { %v4298_v54 = vpop.permute.xlu0 %4297 }
0x12bf   : > { %5362 = vmatpush.xpose.msk.msrb.mxu2 %vm517_vm3, %v4298_v54 }
0x12c2   : > { %5363 = vmatmul.msk.f32.vlgmr.msrb.gmra.mxu2 %vm517_vm3, %v4296_v55 }
0x12c6   : > { %v4270_v22 = vpop.permute.xlu0 %4269 }
0x12c7   : > { %5360 = vmatpush.xpose.msk.msra.mxu0 %vm517_vm3, %v4270_v22 }
0x12ca   : > { %5361 = vmatmul.msk.f32.vlgmr.msra.gmra.mxu0 %vm517_vm3, %v4268_v4 }
0x12cb   : > { %v4240_v8 = vpop.permute.xlu1 %4239 }
0x12cc   : > { %5359 = vmatmul.msk.f32.vlgmr.msrb.gmra.mxu3 %vm517_vm3, %v4240_v8 }
0x12ce   : > { %v4326_v9 = vpop.permute.xlu0 %4325 }
0x12cf   : > { %5364 = vmatpush.xpose.msk.msra.mxu3 %vm517_vm3, %v4326_v9 }
0x12d4   : > { %v4208_v3 = vpop.f32.mrf.mxu0  ;;  %5365 = vmatmul.msk.f32.vlgmr.msra.gmra.mxu3 %vm517_vm3, %v4324_v52 }
0x12d5   : > { %v4351_v60 = vmul.f32 0.35355338, %v4208_v3 }
0x12d7   : > { %v4357_v15 = vsel %vm517_vm3, %v4351_v60, -inf }
0x12d8   : > { %4358 = vmax.xlane.f32.xlu0 %v4357_v15 }
0x12f6   : > { %v3408_v26 = vpop.xlane.xlu1 %3407 }
0x12f7   : > { %v3420_v27 = vsub.f32 %v6874_v25, %v3408_v26 }
0x12f9   : > { %v3428_v33 = vmul.f32 1.442695, %v3420_v27 }
0x12fb   : > { %5691 = vpow2.f32 %v3428_v33 }
0x1301   : > { %v5692_v63 = vpop.eup %5691 }
0x1302   : > { %v3442_v42 = vsel %vm517_vm3, %v5692_v63, 0.0 }
0x1303   : > { %3443 = vadd.xlane.f32.xlu0 %v3442_v42 }
0x1316   : > { %v6916_v58 = vpop.f32.mrf.mxu2 }
0x1317   : > { %3518 = vrot.lane.b32.xlu0 %v6564_v46, %s5755_s11  ;;  %s7198_s11 = scalar_lea.vmem %s7252_s10, %s5130_s18 }
0x131e   : > { %v6920_v13 = vpop.f32.mrf.mxu2 }
0x131f   : > { %5493 = vrot.lane.b32.xlu0 %v6611_v20, %s5761_s22 }
0x1326   : > { %v6924_v38 = vpop.f32.mrf.mxu2 }
0x132e   : > { %v4236_v62 = vpop.f32.mrf.mxu2 }
0x132f   : > { %v4352_v25 = vmul.f32 0.35355338, %v4236_v62 }
0x1330   : > { %v6927_v23 = vpop.f32.mrf.mxu3 }
0x1331   : > { %v4360_v48 = vsel %vm517_vm3, %v4352_v25, -inf }
0x1332   : > { %4361 = vmax.xlane.f32.xlu2 %v4360_v48 }
0x1338   : > { %v6929_v29 = vpop.f32.mrf.mxu3 }
0x1340   : > { %v6931_v11 = vpop.f32.mrf.mxu3 }
0x1345   : > { %v4320_v56 = vpop.f32.mrf.mxu2 }
0x1346   : > { %v4355_v6 = vmul.f32 0.35355338, %v4320_v56 }
0x1347   : > { %v4292_v36 = vpop.f32.mrf.mxu0 }
0x1348   : > { %v4354_v46 = vmul.f32 0.35355338, %v4292_v36  ;;  %v4369_v41 = vsel %vm517_vm3, %v4355_v6, -inf }
0x134a   : > { %v4366_v10 = vsel %vm517_vm3, %v4354_v46, -inf }
0x134b   : > { %v4359_v0 = vpop.xlane.xlu0 %4358  ;;  %4367 = vmax.xlane.f32.xlu2 %v4366_v10 }
0x134c   : > { %v4375_v20 = vsub.f32 %v4351_v60, %v4359_v0 }
0x134e   : > { %v4381_v2 = vmul.f32 1.442695, %v4375_v20 }
0x134f   : > { %v4264_v49 = vpop.f32.mrf.mxu3 }
0x1350   : > { %v4353_v12 = vmul.f32 0.35355338, %v4264_v49  ;;  %5693 = vpow2.f32 %v4381_v2 }
0x1352   : > { %v4363_v59 = vsel %vm517_vm3, %v4353_v12, -inf }
0x1353   : > { %4364 = vmax.xlane.f32.xlu1 %v4363_v59 }
0x1356   : > { %v5694_v1 = vpop.eup %5693 }
0x1357   : > { %v4393_v17 = vsel %vm517_vm3, %v5694_v1, 0.0  ;;  %v4348_v60 = vpop.f32.mrf.mxu3 }
0x1358   : > { %v4356_v26 = vmul.f32 0.35355338, %v4348_v60 }
0x135a   : > { %v4372_v33 = vsel %vm517_vm3, %v4356_v26, -inf }
0x135b   : > { %4394 = vadd.xlane.f32.xlu1 %v4393_v17 }
0x1363   : > { %4370 = vmax.xlane.f32.xlu1 %v4369_v41 }
0x1376   : > { %v3444_v50 = vpop.xlane.xlu0 %3443 }
0x1377   : > { %5695 = vrcp.f32 %v3444_v50 }
0x137c   : > { %5488 = vrot.lane.b32.xlu1 %v6691_v45, %s5761_s22 }
0x137d   : > { %v5696_v57 = vpop.eup %5695 }
0x137e   : > { %v3462_v61 = vmul.f32 %v5696_v57, %v5692_v63 }
0x1384   : > { %4527 = vrot.lane.b32.xlu1 %v6604_v14, %s5761_s22 }
0x1389   : > { %v3519_v51 = vpop.permute.xlu0 %3518 }
0x138a   : > { %3539 = vmatpush.msrb.mxu1 %v3519_v51 }
0x138b   : > { %5314 = vmatmul.msk.f32.vlgmr.msrb.gmra.mxu1 %vm517_vm3, %v3462_v61 }
0x138c   : > { %3655 = vmatpush.msra.mxu1 %v5259_v16 }
0x1391   : > { %v5494_v54 = vpop.permute.xlu0 %5493 }
0x1392   : > { %v5495_v55 = vunpack.i.l.bf16 %v5494_v54  ;;  %v5496_v17 = vunpack.i.h.bf16 %v5494_v54 }
0x1393   : > { %5318 = vmatmul.msk.f32.vlgmr.msra.gmra.mxu1 %vm517_vm3, %v6792_v34 }
0x1394   : > { %4496 = vmatpush.msrb.mxu3 %v5495_v55 }
0x139b   : > { %5319 = vmatmul.msk.f32.gmra.mxu1 %vm517_vm3, %v6799_v39 }
0x13a5   : > { %v4362_v14 = vpop.xlane.xlu2 %4361 }
0x13a6   : > { %v4376_v52 = vsub.f32 %v4352_v25, %v4362_v14 }
0x13a8   : > { %v4383_v15 = vmul.f32 1.442695, %v4376_v52 }
0x13be   : > { %v4368_v45 = vpop.xlane.xlu2 %4367 }
0x13bf   : > { %v4378_v22 = vsub.f32 %v4354_v46, %v4368_v45 }
0x13c1   : > { %v4387_v4 = vmul.f32 1.442695, %v4378_v22 }
0x13c3   : > { %5697 = vpow2.f32 %v4387_v4 }
0x13c4   : > { %5699 = vpow2.f32 %v4383_v15 }
0x13c6   : > { %v4365_v8 = vpop.xlane.xlu1 %4364 }
0x13c7   : > { %v4377_v34 = vsub.f32 %v4353_v12, %v4365_v8 }
0x13c9   : > { %v5698_v9 = vpop.eup %5697  ;;  %v4385_v39 = vmul.f32 1.442695, %v4377_v34 }
0x13ca   : > { %v4402_v3 = vsel %vm517_vm3, %v5698_v9, 0.0  ;;  %v5700_v42 = vpop.eup %5699 }
0x13cb   : > { %4403 = vadd.xlane.f32.xlu2 %v4402_v3  ;;  %5701 = vpow2.f32 %v4385_v39  ;;  %v4396_v25 = vsel %vm517_vm3, %v5700_v42, 0.0 }
0x13ce   : > { %v4395_v27 = vpop.xlane.xlu1 %4394 }
0x13d1   : > { %v5702_v36 = vpop.eup %5701 }
0x13d2   : > { %v4399_v0 = vsel %vm517_vm3, %v5702_v36, 0.0 }
0x13d3   : > { %4373 = vmax.xlane.f32.xlu2 %v4372_v33 }
0x13d6   : > { %v4371_v63 = vpop.xlane.xlu1 %4370 }
0x13d7   : > { %v4379_v62 = vsub.f32 %v4355_v6, %v4371_v63  ;;  %v5260_v6 = vld [vmem:[%s7247_s5 + $0x30] sm:$0xff] }
0x13d8   : > { %4157 = vmatpush.msrb.mxu1 %v5260_v6 }
0x13d9   : > { %v4389_v48 = vmul.f32 1.442695, %v4379_v62 }
0x13db   : > { %5703 = vpow2.f32 %v4389_v48  ;;  %4397 = vadd.xlane.f32.xlu2 %v4396_v25 }
0x13dc   : > { %5705 = vrcp.f32 %v4395_v27 }
0x13e1   : > { %v5704_v46 = vpop.eup %5703 }
0x13e2   : > { %v4405_v10 = vsel %vm517_vm3, %v5704_v46, 0.0  ;;  %v5706_v20 = vpop.eup %5705 }
0x13e3   : > { %4406 = vadd.xlane.f32.xlu0 %v4405_v10  ;;  %4400 = vadd.xlane.f32.xlu2 %v4399_v0  ;;  %v4417_v59 = vmul.f32 %v5706_v20, %v5694_v1 }
0x13ee   : > { %v5489_v2 = vpop.permute.xlu1 %5488 }
0x13ef   : > { %v5491_v49 = vunpack.i.h.bf16 %v5489_v2  ;;  %v5490_v12 = vunpack.i.l.bf16 %v5489_v2 }
0x13f1   : > { %4444 = vmatpush.msrb.mxu0 %v5490_v12  ;;  %4470 = vmatpush.msra.mxu2 %v5491_v49 }
0x13f2   : > { %5366 = vmatmul.msk.f32.vlgmr.msrb.gmra.mxu0 %vm517_vm3, %v4417_v59 }
0x13f3   : > { %4522 = vmatpush.msra.mxu0 %v5496_v17 }
0x13f6   : > { %v4528_v56 = vpop.permute.xlu1 %4527 }
0x13f7   : > { %4548 = vmatpush.msrb.mxu2 %v4528_v56 }
0x1408   : > { %v3541_v41 = vpop.f32.mrf.mxu1 }
0x1409   : > { %5320 = vmatmul.msk.f32.gmra.mxu1 %vm517_vm3, %v3541_v41 }
0x1410   : > { %v3657_v22 = vpop.f32.mrf.mxu1 }
0x1411   : > { %5321 = vmatmul.msk.f32.gmra.mxu1 %vm517_vm3, %v6878_v35  ;;  %v3711_v63 = vadd.f32 %v6882_v40, %v3657_v22 }
0x1418   : > { %v3660_v4 = vpop.f32.mrf.mxu1 }
0x1419   : > { %5322 = vmatmul.msk.f32.gmra.mxu1 %vm517_vm3, %v6794_v37  ;;  %v3714_v49 = vadd.f32 %v6888_v5, %v3660_v4 }
0x1421   : > { %5323 = vmatmul.msk.f32.gmra.mxu1 %vm517_vm3, %v6803_v24 }
0x1429   : > { %5348 = vmatmul.msk.f32.vlgmr.msrb.gmra.mxu1 %vm517_vm3, %v6916_v58 }
0x1431   : > { %5349 = vmatmul.msk.f32.gmra.mxu1 %vm517_vm3, %v6927_v23 }
0x1439   : > { %5350 = vmatmul.msk.f32.gmra.mxu1 %vm517_vm3, %v6920_v13  ;;  %v5261_v13 = vld [vmem:[%s7247_s5 + $0x38] sm:$0xff] }
0x143a   : > { %4612 = vmatpush.msrb.mxu0 %v5261_v13 }
0x143e   : > { %v4404_v1 = vpop.xlane.xlu2 %4403 }
0x143f   : > { %5707 = vrcp.f32 %v4404_v1 }
0x1441   : > { %5351 = vmatmul.msk.f32.gmra.mxu1 %vm517_vm3, %v6929_v29 }
0x1445   : > { %v5708_v35 = vpop.eup %5707 }
0x1446   : > { %v4420_v50 = vmul.f32 %v5708_v35, %v5698_v9  ;;  %v4374_v37 = vpop.xlane.xlu2 %4373 }
0x1447   : > { %v4380_v57 = vsub.f32 %v4356_v26, %v4374_v37 }
0x1448   : > { %5369 = vmatmul.msk.f32.vlgmr.msra.gmra.mxu0 %vm517_vm3, %v4420_v50 }
0x1449   : > { %v4391_v24 = vmul.f32 1.442695, %v4380_v57  ;;  %5352 = vmatmul.msk.f32.gmra.mxu1 %vm517_vm3, %v6924_v38 }
0x144b   : > { %5709 = vpow2.f32 %v4391_v24 }
0x144e   : > { %v4398_v58 = vpop.xlane.xlu2 %4397 }
0x144f   : > { %5711 = vrcp.f32 %v4398_v58 }
0x1451   : > { %v5710_v23 = vpop.eup %5709  ;;  %5353 = vmatmul.msk.f32.gmra.mxu1 %vm517_vm3, %v6931_v11 }
0x1452   : > { %v4408_v29 = vsel %vm517_vm3, %v5710_v23, 0.0 }
0x1453   : > { %4409 = vadd.xlane.f32.xlu2 %v4408_v29 }
0x1455   : > { %v5712_v61 = vpop.eup %5711 }
0x1456   : > { %v4418_v51 = vmul.f32 %v5712_v61, %v5700_v42  ;;  %v4407_v16 = vpop.xlane.xlu0 %4406  ;;  %v4401_v54 = vpop.xlane.xlu2 %4400  ;;  %v6997_v42 = vld [vmem:[%s7251_s9 + $0x4] sm:$0xf] }
0x1457   : > { %5713 = vrcp.f32 %v4407_v16 }
0x1458   : > { %5715 = vrcp.f32 %v4401_v54  ;;  %5367 = vmatmul.msk.f32.vlgmr.msra.gmra.mxu2 %vm517_vm3, %v4418_v51 }
0x145d   : > { %v5714_v38 = vpop.eup %5713 }
0x145e   : > { %v5716_v55 = vpop.eup %5715  ;;  %v4421_v14 = vmul.f32 %v5714_v38, %v5704_v46 }
0x145f   : > { %v4419_v45 = vmul.f32 %v5716_v55, %v5702_v36  ;;  %v4644_v36 = vperm.slane %v6997_v42, 0 }
0x1460   : > { %5370 = vmatmul.msk.f32.vlgmr.msrb.gmra.mxu2 %vm517_vm3, %v4421_v14 }
0x1461   : > { %5368 = vmatmul.msk.f32.vlgmr.msrb.gmra.mxu3 %vm517_vm3, %v4419_v45 }
0x146b   : > { %4553 = vrot.lane.b32.xlu2 %v6619_v44, %s5761_s22 }
0x146f   : > { %v4446_v11 = vpop.f32.mrf.mxu0 }
0x1470   : > { %5372 = vmatmul.msk.f32.vlgmr.msrb.gmra.mxu0 %vm517_vm3, %v4446_v11 }
0x1486   : > { %v3663_v8 = vpop.f32.mrf.mxu1 }
0x1487   : > { %v3717_v41 = vadd.f32 %v6893_v7, %v3663_v8 }
0x148e   : > { %v3666_v52 = vpop.f32.mrf.mxu1 }
0x148f   : > { %v3720_v5 = vadd.f32 %v6898_v28, %v3666_v52 }
0x1496   : > { %v3669_v26 = vpop.f32.mrf.mxu1 }
0x1497   : > { %v3723_v51 = vadd.f32 %v6903_v32, %v3669_v26 }
0x149e   : > { %v6990_v44 = vpop.f32.mrf.mxu1 }
0x14a6   : > { %v4159_v39 = vpop.f32.mrf.mxu1 }
0x14a7   : > { %v4177_v62 = vadd.f32 %v4159_v39, %v3711_v63 }
0x14ae   : > { %v4162_v40 = vpop.f32.mrf.mxu1 }
0x14af   : > { %v4178_v12 = vadd.f32 %v4162_v40, %v3714_v49 }
0x14b6   : > { %v4165_v17 = vpop.f32.mrf.mxu1 }
0x14b7   : > { %v4179_v35 = vadd.f32 %v4165_v17, %v3717_v41  ;;  %v5262_v17 = vld [vmem:[%s7248_s6 + $0x20] sm:$0xff] }
0x14be   : > { %v4168_v57 = vpop.f32.mrf.mxu1 }
0x14bf   : > { %v4180_v13 = vadd.f32 %v4168_v57, %v3720_v5 }
0x14c5   : > { %v4524_v33 = vpop.f32.mrf.mxu0 }
0x14c6   : > { %v4410_v9 = vpop.xlane.xlu2 %4409  ;;  %v4171_v61 = vpop.f32.mrf.mxu1 }
0x14c7   : > { %5717 = vrcp.f32 %v4410_v9  ;;  %v4181_v54 = vadd.f32 %v4171_v61, %v3723_v51  ;;  %v3726_v9 = vadd.f32 %v6908_v21, %v6990_v44 }
0x14cd   : > { %v5718_v3 = vpop.eup %5717 }
0x14ce   : > { %v4422_v60 = vmul.f32 %v5718_v3, %v5710_v23  ;;  %v4554_v15 = vpop.permute.xlu2 %4553  ;;  %v4174_v8 = vpop.f32.mrf.mxu1 }
0x14cf   : > { %4574 = vmatpush.msra.mxu3 %v4554_v15  ;;  %v4182_v52 = vadd.f32 %v4174_v8, %v3726_v9 }
0x14d0   : > { %5371 = vmatmul.msk.f32.vlgmr.msra.gmra.mxu3 %vm517_vm3, %v4422_v60 }
0x14db   : > { %v4472_v27 = vpop.f32.mrf.mxu2 }
0x14dc   : > { %5373 = vmatmul.msk.f32.gmra.mxu0 %vm517_vm3, %v4472_v27 }
0x14e3   : > { %v4550_v0 = vpop.f32.mrf.mxu2 }
0x14e4   : > { %v4498_v34 = vpop.f32.mrf.mxu3 }
0x14e5   : > { %5374 = vmatmul.msk.f32.gmra.mxu0 %vm517_vm3, %v4498_v34 }
0x14ed   : > { %5375 = vmatmul.msk.f32.gmra.mxu0 %vm517_vm3, %v4524_v33  ;;  %v4614_v48 = vpop.f32.mrf.mxu0 }
0x14ee   : > { %v4632_v25 = vadd.f32 %v4614_v48, %v4177_v62 }
0x14f0   : > { %v4638_v46 = vadd.f32 %v4632_v25, %v6513_v30 }
0x14f2   : > { %v4645_v10 = vadd.f32 %v4644_v36, %v4638_v46 }
0x14f4   : > { %v4651_v20 = vsel %vm460_vm2, %v4645_v10, 0.0 }
0x14f5   : > { %5376 = vmatmul.msk.f32.gmra.mxu0 %vm517_vm3, %v4550_v0  ;;  %4652 = vadd.xlane.f32.xlu1 %v4651_v20  ;;  %v5265_v0 = vld [vmem:[%s7248_s6 + $0x38] sm:$0xff] }
0x14f6   : > { %4830 = vmatpush.msra.mxu2 %v5265_v0 }
0x1553   : > { %v4576_v2 = vpop.f32.mrf.mxu3 }
0x1554   : > { %5377 = vmatmul.msk.f32.gmra.mxu0 %vm517_vm3, %v4576_v2  ;;  %v5264_v2 = vld [vmem:[%s7248_s6 + $0x30] sm:$0xff] }
0x1555   : > { %4831 = vmatpush.msra.mxu2 %v5264_v2  ;;  %v5271_v2 = vld [vmem:[%s7250_s8 + $0x60] sm:$0xff] }
0x1559   : > { %v4617_v59 = vpop.f32.mrf.mxu0 }
0x155a   : > { %v4633_v56 = vadd.f32 %v4617_v59, %v4178_v12  ;;  %v5263_v12 = vld [vmem:[%s7248_s6 + $0x28] sm:$0xff] }
0x155b   : > { %4832 = vmatpush.msra.mxu2 %v5263_v12 }
0x155c   : > { %v4639_v6 = vadd.f32 %v4633_v56, %v6520_v19 }
0x155d   : > { %4833 = vmatpush.msra.mxu2 %v5262_v17 }
0x155e   : > { %v4646_v30 = vadd.f32 %v4644_v36, %v4639_v6 }
0x1560   : > { %v4654_v1 = vsel %vm460_vm2, %v4646_v30, 0.0 }
0x1561   : > { %4655 = vadd.xlane.f32.xlu2 %v4654_v1 }
0x1562   : > { %v4620_v50 = vpop.f32.mrf.mxu0 }
0x1563   : > { %v4634_v37 = vadd.f32 %v4620_v50, %v4179_v35 }
0x1565   : > { %v4640_v24 = vadd.f32 %v4634_v37, %v6532_v18 }
0x1567   : > { %v4647_v58 = vadd.f32 %v4644_v36, %v4640_v24 }
0x1568   : > { %v4653_v55 = vpop.xlane.xlu1 %4652 }
0x1569   : > { %v4657_v23 = vsel %vm460_vm2, %v4647_v58, 0.0  ;;  %v4669_v14 = vmul.f32 %v4653_v55, %v6319_v31 }
0x156a   : > { %4658 = vadd.xlane.f32.xlu0 %v4657_v23  ;;  %v4623_v19 = vpop.f32.mrf.mxu0  ;;  %v7068_v23 = vperm.slane %v6997_v42, 3 }
0x156b   : > { %v4635_v29 = vadd.f32 %v4623_v19, %v4180_v13  ;;  %v7017_v22 = vsub.f32 %v4645_v10, %v4669_v14 }
0x156d   : > { %v4641_v7 = vadd.f32 %v4635_v29, %v6540_v43  ;;  %v4681_v32 = vmul.f32 %v7017_v22, %v7017_v22 }
0x156f   : > { %v4648_v16 = vadd.f32 %v4644_v36, %v4641_v7  ;;  %v4687_v4 = vsel %vm460_vm2, %v4681_v32, 0.0 }
0x1571   : > { %v4660_v38 = vsel %vm460_vm2, %v4648_v16, 0.0 }
0x1572   : > { %4661 = vadd.xlane.f32.xlu0 %v4660_v38  ;;  %v4626_v18 = vpop.f32.mrf.mxu0 }
0x1573   : > { %v4636_v28 = vadd.f32 %v4626_v18, %v4181_v54 }
0x1575   : > { %v4642_v45 = vadd.f32 %v4636_v28, %v6590_v53 }
0x1577   : > { %v4649_v11 = vadd.f32 %v4644_v36, %v4642_v45 }
0x1579   : > { %v4663_v43 = vsel %vm460_vm2, %v4649_v11, 0.0 }
0x157a   : > { %4664 = vadd.xlane.f32.xlu0 %v4663_v43 }
0x1582   : > { %4688 = vadd.xlane.f32.xlu0 %v4687_v4 }
0x15d1   : > { %v4629_v3 = vpop.f32.mrf.mxu0 }
0x15d2   : > { %v4637_v60 = vadd.f32 %v4629_v3, %v4182_v52 }
0x15d4   : > { %v4643_v53 = vadd.f32 %v4637_v60, %v6597_v47  ;;  %v4656_v15 = vpop.xlane.xlu2 %4655 }
0x15d5   : > { %v4670_v26 = vmul.f32 %v4656_v15, %v6319_v31 }
0x15d6   : > { %v4650_v27 = vadd.f32 %v4644_v36, %v4643_v53 }
0x15d7   : > { %v7027_v34 = vsub.f32 %v4646_v30, %v4670_v26 }
0x15d8   : > { %v4666_v33 = vsel %vm460_vm2, %v4650_v27, 0.0 }
0x15d9   : > { %4667 = vadd.xlane.f32.xlu1 %v4666_v33  ;;  %v4682_v39 = vmul.f32 %v7027_v34, %v7027_v34 }
0x15db   : > { %v4690_v62 = vsel %vm460_vm2, %v4682_v39, 0.0 }
0x15dd   : > { %v4659_v63 = vpop.xlane.xlu0 %4658 }
0x15de   : > { %v4671_v21 = vmul.f32 %v4659_v63, %v6319_v31  ;;  %v5274_v63 = vld [vmem:[%s7250_s8 + $0x78] sm:$0xff] }
0x15df   : > { %4886 = vmatpush.msrb.mxu3 %v5274_v63 }
0x15e0   : > { %v7033_v44 = vsub.f32 %v4647_v58, %v4671_v21  ;;  %v7065_v58 = vperm.slane %v6997_v42, 2  ;;  %v5273_v21 = vld [vmem:[%s7250_s8 + $0x70] sm:$0xff] }
0x15e1   : > { %4691 = vadd.xlane.f32.xlu1 %v4690_v62  ;;  %4887 = vmatpush.msrb.mxu3 %v5273_v21 }
0x15e2   : > { %v4683_v47 = vmul.f32 %v7033_v44, %v7033_v44 }
0x15e4   : > { %v4693_v48 = vsel %vm460_vm2, %v4683_v47, 0.0 }
0x15e5   : > { %v4662_v25 = vpop.xlane.xlu0 %4661  ;;  %4694 = vadd.xlane.f32.xlu0 %v4693_v48 }
0x15e6   : > { %v4672_v36 = vmul.f32 %v4662_v25, %v6319_v31 }
0x15e8   : > { %v7040_v46 = vsub.f32 %v4648_v16, %v4672_v36 }
0x15ea   : > { %v4684_v10 = vmul.f32 %v7040_v46, %v7040_v46 }
0x15ec   : > { %v4696_v20 = vsel %vm460_vm2, %v4684_v10, 0.0  ;;  %v5272_v10 = vld [vmem:[%s7250_s8 + $0x68] sm:$0xff] }
0x15ed   : > { %v4665_v40 = vpop.xlane.xlu0 %4664  ;;  %4697 = vadd.xlane.f32.xlu1 %v4696_v20  ;;  %4888 = vmatpush.msrb.mxu3 %v5272_v10 }
0x15ee   : > { %v4673_v49 = vmul.f32 %v4665_v40, %v6319_v31 }
0x15ef   : > { %4889 = vmatpush.msrb.mxu3 %v5271_v2 }
0x15f0   : > { %v7055_v59 = vsub.f32 %v4649_v11, %v4673_v49 }
0x15f2   : > { %v4685_v56 = vmul.f32 %v7055_v59, %v7055_v59 }
0x15f4   : > { %v4699_v6 = vsel %vm460_vm2, %v4685_v56, 0.0  ;;  %v5270_v56 = vld [vmem:[%s7250_s8 + $0x58] sm:$0xff] }
0x15f5   : > { %4700 = vadd.xlane.f32.xlu2 %v4699_v6  ;;  %v4689_v30 = vpop.xlane.xlu0 %4688  ;;  %4890 = vmatpush.msrb.mxu3 %v5270_v56 }
0x15f6   : > { %v4705_v41 = vmul.f32 %v4689_v30, %v6319_v31 }
0x15f8   : > { %v4711_v1 = vadd.f32 1e-05, %v4705_v41 }
0x15fa   : > { %5719 = vrsqrt.f32 %v4711_v1  ;;  %vm4723_vm15 = vweird.f32 %v4711_v1 }
0x1600   : > { %v5720_v35 = vpop.eup %5719 }
0x1601   : > { %v4718_v50 = vmul.f32 %v5720_v35, %v4711_v1  ;;  %vm4724_vm3 = vweird.f32 %v5720_v35 }
0x1602   : > { %vm4725_vm0 = vmor %vm4723_vm15, %vm4724_vm3 }
0x1603   : > { %v4719_v37 = vmul.f32 %v5720_v35, %v4718_v50  ;;  %v5269_v50 = vld [vmem:[%s7250_s8 + $0x50] sm:$0xff] }
0x1604   : > { %4891 = vmatpush.msrb.mxu3 %v5269_v50 }
0x1605   : > { %v4720_v57 = vmul.f32 0.5, %v4719_v37 }
0x1607   : > { %v4721_v24 = vsub.f32 1.5, %v4720_v57 }
0x1609   : > { %v4722_v5 = vmul.f32 %v5720_v35, %v4721_v24 }
0x160b   : > { %v4726_v13 = vsel %vm4725_vm0, %v5720_v35, %v4722_v5 }
0x160c   : > { %v4777_v19 = vmul.f32 %v4726_v13, %v7017_v22  ;;  %v5268_v13 = vld [vmem:[%s7250_s8 + $0x48] sm:$0xff] }
0x160d   : > { %4892 = vmatpush.msrb.mxu3 %v5268_v13 }
0x160e   : > { %v4784_v29 = vmul.f32 %v7065_v58, %v4777_v19 }
0x1610   : > { %v7073_v7 = vadd.f32 %v7068_v23, %v4784_v29  ;;  %v5267_v29 = vld [vmem:[%s7250_s8 + $0x40] sm:$0xff] }
0x1611   : > { %4893 = vmatpush.msrb.mxu3 %v5267_v29 }
0x1612   : > { %5378 = vmatmul.msk.f32.vlgmr.msra.gmra.mxu2 %vm460_vm2, %v7073_v7 }
0x164c   : > { %v4668_v61 = vpop.xlane.xlu1 %4667 }
0x164d   : > { %v4674_v51 = vmul.f32 %v4668_v61, %v6319_v31 }
0x164f   : > { %v7078_v16 = vsub.f32 %v4650_v27, %v4674_v51 }
0x1651   : > { %v4686_v54 = vmul.f32 %v7078_v16, %v7078_v16 }
0x1653   : > { %v4702_v38 = vsel %vm460_vm2, %v4686_v54, 0.0 }
0x1654   : > { %4703 = vadd.xlane.f32.xlu0 %v4702_v38  ;;  %v4692_v55 = vpop.xlane.xlu1 %4691 }
0x1655   : > { %v4706_v18 = vmul.f32 %v4692_v55, %v6319_v31 }
0x1657   : > { %v4712_v28 = vadd.f32 1e-05, %v4706_v18 }
0x1658   : > { %v4695_v14 = vpop.xlane.xlu0 %4694 }
0x1659   : > { %5721 = vrsqrt.f32 %v4712_v28  ;;  %v4707_v45 = vmul.f32 %v4695_v14, %v6319_v31  ;;  %vm4733_vm5 = vweird.f32 %v4712_v28  ;;  %v5500_v14 = vld [vmem:[%s7249_s7 + $0x1] ss:$0 sm:$0xff] }
0x165b   : > { %v4713_v11 = vadd.f32 1e-05, %v4707_v45 }
0x165d   : > { %5723 = vrsqrt.f32 %v4713_v11  ;;  %vm4743_vm8 = vweird.f32 %v4713_v11 }
0x165f   : > { %v5722_v22 = vpop.eup %5721 }
0x1660   : > { %v4728_v43 = vmul.f32 %v5722_v22, %v4712_v28  ;;  %v4698_v32 = vpop.xlane.xlu1 %4697  ;;  %vm4734_vm4 = vweird.f32 %v5722_v22 }
0x1661   : > { %v4708_v4 = vmul.f32 %v4698_v32, %v6319_v31  ;;  %vm4735_vm6 = vmor %vm4733_vm5, %vm4734_vm4 }
0x1662   : > { %v4729_v8 = vmul.f32 %v5722_v22, %v4728_v43 }
0x1663   : > { %v5724_v9 = vpop.eup %5723  ;;  %v4714_v52 = vadd.f32 1e-05, %v4708_v4 }
0x1664   : > { %v4730_v3 = vmul.f32 0.5, %v4729_v8  ;;  %v4738_v60 = vmul.f32 %v5724_v9, %v4713_v11  ;;  %vm4744_vm7 = vweird.f32 %v5724_v9 }
0x1665   : > { %5725 = vrsqrt.f32 %v4714_v52  ;;  %vm4745_vm9 = vmor %vm4743_vm8, %vm4744_vm7  ;;  %vm4753_vm11 = vweird.f32 %v4714_v52 }
0x1666   : > { %v4731_v53 = vsub.f32 1.5, %v4730_v3  ;;  %v4739_v15 = vmul.f32 %v5724_v9, %v4738_v60 }
0x1668   : > { %v4732_v26 = vmul.f32 %v5722_v22, %v4731_v53  ;;  %v4740_v27 = vmul.f32 0.5, %v4739_v15  ;;  %v4701_v33 = vpop.xlane.xlu2 %4700 }
0x1669   : > { %v4709_v39 = vmul.f32 %v4701_v33, %v6319_v31 }
0x166a   : > { %v4736_v62 = vsel %vm4735_vm6, %v5722_v22, %v4732_v26  ;;  %v4741_v47 = vsub.f32 1.5, %v4740_v27 }
0x166b   : > { %v5726_v48 = vpop.eup %5725  ;;  %v4778_v25 = vmul.f32 %v4736_v62, %v7027_v34  ;;  %v4715_v36 = vadd.f32 1e-05, %v4709_v39 }
0x166c   : > { %v4742_v0 = vmul.f32 %v5724_v9, %v4741_v47  ;;  %v4748_v20 = vmul.f32 %v5726_v48, %v4714_v52  ;;  %vm4754_vm10 = vweird.f32 %v5726_v48 }
0x166d   : > { %5727 = vrsqrt.f32 %v4715_v36  ;;  %v4785_v40 = vmul.f32 %v7065_v58, %v4778_v25  ;;  %vm4755_vm12 = vmor %vm4753_vm11, %vm4754_vm10  ;;  %vm4763_vm14 = vweird.f32 %v4715_v36 }
0x166e   : > { %v4746_v49 = vsel %vm4745_vm9, %v5724_v9, %v4742_v0  ;;  %v4749_v12 = vmul.f32 %v5726_v48, %v4748_v20  ;;  %v4859_v20 = vperm.slane %v6997_v42, 1 }
0x166f   : > { %v4779_v34 = vmul.f32 %v4746_v49, %v7033_v44  ;;  %v7103_v17 = vadd.f32 %v7068_v23, %v4785_v40 }
0x1670   : > { %v4750_v6 = vmul.f32 0.5, %v4749_v12 }
0x1671   : > { %5379 = vmatmul.msk.f32.gmra.mxu2 %vm460_vm2, %v7103_v17  ;;  %v4786_v1 = vmul.f32 %v7065_v58, %v4779_v34 }
0x1672   : > { %v4751_v30 = vsub.f32 1.5, %v4750_v6 }
0x1673   : > { %v5728_v41 = vpop.eup %5727  ;;  %v7116_v5 = vadd.f32 %v7068_v23, %v4786_v1 }
0x1674   : > { %v4752_v35 = vmul.f32 %v5726_v48, %v4751_v30  ;;  %v4758_v44 = vmul.f32 %v5728_v41, %v4715_v36  ;;  %vm4764_vm13 = vweird.f32 %v5728_v41 }
0x1675   : > { %vm4765_vm3 = vmor %vm4763_vm14, %vm4764_vm13 }
0x1676   : > { %v4756_v37 = vsel %vm4755_vm12, %v5726_v48, %v4752_v35  ;;  %v4759_v57 = vmul.f32 %v5728_v41, %v4758_v44 }
0x1677   : > { %v4780_v24 = vmul.f32 %v4756_v37, %v7040_v46 }
0x1678   : > { %v4760_v19 = vmul.f32 0.5, %v4759_v57 }
0x1679   : > { %5380 = vmatmul.msk.f32.gmra.mxu2 %vm460_vm2, %v7116_v5  ;;  %v4787_v46 = vmul.f32 %v7065_v58, %v4780_v24 }
0x167a   : > { %v4761_v61 = vsub.f32 1.5, %v4760_v19 }
0x167b   : > { %v7129_v55 = vadd.f32 %v7068_v23, %v4787_v46 }
0x167c   : > { %v4762_v51 = vmul.f32 %v5728_v41, %v4761_v61 }
0x167e   : > { %v4766_v54 = vsel %vm4765_vm3, %v5728_v41, %v4762_v51 }
0x167f   : > { %v4781_v38 = vmul.f32 %v4766_v54, %v7055_v59 }
0x1681   : > { %5381 = vmatmul.msk.f32.gmra.mxu2 %vm460_vm2, %v7129_v55  ;;  %v4788_v18 = vmul.f32 %v7065_v58, %v4781_v38 }
0x1683   : > { %v7135_v28 = vadd.f32 %v7068_v23, %v4788_v18 }
0x1689   : > { %5382 = vmatmul.msk.f32.gmra.mxu2 %vm460_vm2, %v7135_v28 }
0x1695   : > { %v4835_v45 = vpop.f32.mrf.mxu2 }
0x1696   : > { %v4836_v59 = vadd.f32 %v5500_v14, %v4835_v45 }
0x1698   : > { %v4853_v11 = vmax.f32 %v4836_v59, 0.0 }
0x169a   : > { %5384 = vmatmul.msk.f32.vlgmr.msrb.gmra.mxu3 %vm2546_vm1, %v4853_v11 }
0x16c7   : > { %v4704_v22 = vpop.xlane.xlu0 %4703 }
0x16c8   : > { %v4710_v43 = vmul.f32 %v4704_v22, %v6319_v31 }
0x16ca   : > { %v4716_v32 = vadd.f32 1e-05, %v4710_v43 }
0x16cc   : > { %5729 = vrsqrt.f32 %v4716_v32  ;;  %vm4773_vm0 = vweird.f32 %v4716_v32 }
0x16d2   : > { %v5730_v4 = vpop.eup %5729 }
0x16d3   : > { %v4768_v8 = vmul.f32 %v5730_v4, %v4716_v32  ;;  %vm4774_vm15 = vweird.f32 %v5730_v4 }
0x16d4   : > { %vm4775_vm4 = vmor %vm4773_vm0, %vm4774_vm15 }
0x16d5   : > { %v4769_v9 = vmul.f32 %v5730_v4, %v4768_v8 }
0x16d7   : > { %v4770_v52 = vmul.f32 0.5, %v4769_v9 }
0x16d9   : > { %v4771_v3 = vsub.f32 1.5, %v4770_v52 }
0x16db   : > { %v4772_v60 = vmul.f32 %v5730_v4, %v4771_v3 }
0x16dd   : > { %v4776_v53 = vsel %vm4775_vm4, %v5730_v4, %v4772_v60 }
0x16de   : > { %v4782_v15 = vmul.f32 %v4776_v53, %v7078_v16 }
0x16e0   : > { %v4789_v26 = vmul.f32 %v7065_v58, %v4782_v15 }
0x16e2   : > { %v4796_v27 = vadd.f32 %v7068_v23, %v4789_v26 }
0x16e4   : > { %5383 = vmatmul.msk.f32.gmra.mxu2 %vm460_vm2, %v4796_v27 }
0x16f4   : > { %v4838_v33 = vpop.f32.mrf.mxu2 }
0x16f5   : > { %v4839_v39 = vadd.f32 %v5500_v14, %v4838_v33 }
0x16f7   : > { %v4854_v63 = vmax.f32 %v4839_v39, 0.0 }
0x16f9   : > { %5385 = vmatmul.msk.f32.gmra.mxu3 %vm2546_vm1, %v4854_v63 }
0x16fc   : > { %v4841_v21 = vpop.f32.mrf.mxu2 }
0x16fd   : > { %v4842_v62 = vadd.f32 %v5500_v14, %v4841_v21 }
0x16ff   : > { %v4855_v47 = vmax.f32 %v4842_v62, 0.0 }
0x1701   : > { %5386 = vmatmul.msk.f32.gmra.mxu3 %vm2546_vm1, %v4855_v47 }
0x1704   : > { %v4844_v48 = vpop.f32.mrf.mxu2 }
0x1705   : > { %v4845_v25 = vadd.f32 %v5500_v14, %v4844_v48 }
0x1707   : > { %v4856_v36 = vmax.f32 %v4845_v25, 0.0 }
0x1709   : > { %5387 = vmatmul.msk.f32.gmra.mxu3 %vm2546_vm1, %v4856_v36 }
0x170c   : > { %v4847_v16 = vpop.f32.mrf.mxu2 }
0x170d   : > { %v4848_v10 = vadd.f32 %v5500_v14, %v4847_v16 }
0x170f   : > { %v4857_v0 = vmax.f32 %v4848_v10, 0.0 }
0x1711   : > { %5388 = vmatmul.msk.f32.gmra.mxu3 %vm2546_vm1, %v4857_v0 }
0x171d   : > { %v4895_v40 = vpop.f32.mrf.mxu3 }
0x171e   : > { %v4896_v2 = vadd.f32 %v4895_v40, %v4859_v20 }
0x1720   : > { %v4913_v49 = vadd.f32 %v4896_v2, %v7073_v7 }
0x1722   : > { %v4919_v12 = vsel %vm460_vm2, %v4913_v49, 0.0 }
0x1723   : > { %4920 = vadd.xlane.f32.xlu1 %v4919_v12 }
0x1767   : > { %v4850_v34 = vpop.f32.mrf.mxu2 }
0x1768   : > { %v4851_v56 = vadd.f32 %v5500_v14, %v4850_v34 }
0x176a   : > { %v4858_v6 = vmax.f32 %v4851_v56, 0.0 }
0x176c   : > { %5389 = vmatmul.msk.f32.gmra.mxu3 %vm2546_vm1, %v4858_v6 }
0x177c   : > { %v4898_v30 = vpop.f32.mrf.mxu3 }
0x177d   : > { %v4899_v41 = vadd.f32 %v4898_v30, %v4859_v20 }
0x177f   : > { %v4914_v1 = vadd.f32 %v4899_v41, %v7103_v17 }
0x1781   : > { %v4922_v35 = vsel %vm460_vm2, %v4914_v1, 0.0 }
0x1782   : > { %4923 = vadd.xlane.f32.xlu2 %v4922_v35 }
0x1784   : > { %v4901_v42 = vpop.f32.mrf.mxu3 }
0x1785   : > { %v4902_v44 = vadd.f32 %v4901_v42, %v4859_v20 }
0x1787   : > { %v4915_v50 = vadd.f32 %v4902_v44, %v7116_v5 }
0x1789   : > { %v4925_v7 = vsel %vm460_vm2, %v4915_v50, 0.0 }
0x178a   : > { %4926 = vadd.xlane.f32.xlu0 %v4925_v7 }
0x178c   : > { %v4904_v37 = vpop.f32.mrf.mxu3 }
0x178d   : > { %v4905_v57 = vadd.f32 %v4904_v37, %v4859_v20 }
0x178f   : > { %v4916_v24 = vadd.f32 %v4905_v57, %v7129_v55 }
0x1791   : > { %v4928_v13 = vsel %vm460_vm2, %v4916_v24, 0.0 }
0x1792   : > { %4929 = vadd.xlane.f32.xlu1 %v4928_v13 }
0x1794   : > { %v4907_v19 = vpop.f32.mrf.mxu3 }
0x1795   : > { %v4908_v29 = vadd.f32 %v4907_v19, %v4859_v20 }
0x1796   : > { %v4921_v17 = vpop.xlane.xlu1 %4920 }
0x1797   : > { %v4917_v61 = vadd.f32 %v4908_v29, %v7135_v28  ;;  %v4937_v46 = vmul.f32 %v4921_v17, %v6319_v31 }
0x1799   : > { %v4943_v51 = vsub.f32 %v4913_v49, %v4937_v46  ;;  %v4931_v5 = vsel %vm460_vm2, %v4917_v61, 0.0 }
0x179a   : > { %4932 = vadd.xlane.f32.xlu2 %v4931_v5 }
0x179b   : > { %v4949_v54 = vmul.f32 %v4943_v51, %v4943_v51 }
0x179d   : > { %v4955_v38 = vsel %vm460_vm2, %v4949_v54, 0.0 }
0x179e   : > { %4956 = vadd.xlane.f32.xlu1 %v4955_v38 }
0x17ef   : > { %v4910_v18 = vpop.f32.mrf.mxu3 }
0x17f0   : > { %v4911_v55 = vadd.f32 %v4910_v18, %v4859_v20 }
0x17f2   : > { %v4918_v14 = vadd.f32 %v4911_v55, %v4796_v27 }
0x17f4   : > { %v4934_v45 = vsel %vm460_vm2, %v4918_v14, 0.0 }
0x17f5   : > { %4935 = vadd.xlane.f32.xlu0 %v4934_v45  ;;  %v4924_v59 = vpop.xlane.xlu2 %4923 }
0x17f6   : > { %v4938_v11 = vmul.f32 %v4924_v59, %v6319_v31 }
0x17f8   : > { %v7168_v28 = vsub.f32 %v4914_v1, %v4938_v11 }
0x17fa   : > { %v4950_v22 = vmul.f32 %v7168_v28, %v7168_v28 }
0x17fc   : > { %v4958_v43 = vsel %vm460_vm2, %v4950_v22, 0.0 }
0x17fd   : > { %v4927_v32 = vpop.xlane.xlu0 %4926  ;;  %4959 = vadd.xlane.f32.xlu2 %v4958_v43 }
0x17fe   : > { %v4939_v4 = vmul.f32 %v4927_v32, %v6319_v31 }
0x1800   : > { %v7174_v8 = vsub.f32 %v4915_v50, %v4939_v4 }
0x1802   : > { %v4951_v9 = vmul.f32 %v7174_v8, %v7174_v8 }
0x1804   : > { %v4961_v52 = vsel %vm460_vm2, %v4951_v9, 0.0 }
0x1805   : > { %v4930_v3 = vpop.xlane.xlu1 %4929  ;;  %4962 = vadd.xlane.f32.xlu0 %v4961_v52 }
0x1806   : > { %v4940_v60 = vmul.f32 %v4930_v3, %v6319_v31 }
0x1808   : > { %v7180_v53 = vsub.f32 %v4916_v24, %v4940_v60 }
0x180a   : > { %v4952_v15 = vmul.f32 %v7180_v53, %v7180_v53 }
0x180c   : > { %v4964_v26 = vsel %vm460_vm2, %v4952_v15, 0.0 }
0x180d   : > { %4965 = vadd.xlane.f32.xlu1 %v4964_v26  ;;  %v4933_v27 = vpop.xlane.xlu2 %4932 }
0x180e   : > { %v4941_v33 = vmul.f32 %v4933_v27, %v6319_v31 }
0x1810   : > { %v7186_v39 = vsub.f32 %v4917_v61, %v4941_v33 }
0x1811   : > { %v4957_v63 = vpop.xlane.xlu1 %4956 }
0x1812   : > { %v4973_v21 = vmul.f32 %v4957_v63, %v6319_v31  ;;  %v4953_v62 = vmul.f32 %v7186_v39, %v7186_v39 }
0x1814   : > { %v4979_v47 = vadd.f32 1e-05, %v4973_v21  ;;  %v4967_v48 = vsel %vm460_vm2, %v4953_v62, 0.0 }
0x1815   : > { %4968 = vadd.xlane.f32.xlu2 %v4967_v48 }
0x1816   : > { %5731 = vrsqrt.f32 %v4979_v47  ;;  %vm4991_vm5 = vweird.f32 %v4979_v47 }
0x181c   : > { %v5732_v25 = vpop.eup %5731 }
0x181d   : > { %v4986_v36 = vmul.f32 %v5732_v25, %v4979_v47  ;;  %vm4992_vm1 = vweird.f32 %v5732_v25 }
0x181e   : > { %vm4993_vm6 = vmor %vm4991_vm5, %vm4992_vm1 }
0x181f   : > { %v4987_v16 = vmul.f32 %v5732_v25, %v4986_v36 }
0x1821   : > { %v4988_v10 = vmul.f32 0.5, %v4987_v16 }
0x1823   : > { %v4989_v0 = vsub.f32 1.5, %v4988_v10 }
0x1825   : > { %v4990_v20 = vmul.f32 %v5732_v25, %v4989_v0 }
0x1827   : > { %v4994_v40 = vsel %vm4993_vm6, %v5732_v25, %v4990_v20 }
0x1828   : > { %v5045_v2 = vmul.f32 %v4994_v40, %v4943_v51 }
0x182a   : > { %v5051_v49 = vmul.f32 %v5045_v2, %v7065_v58 }
0x182c   : > { %v5057_v12 = vadd.f32 %v5051_v49, %v7068_v23 }
0x182e   : > { %5063 = vst.msk [vmem:[%s7198_s11] sm:$0xff] %vm460_vm2, %v5057_v12 }
0x1868   : > { %v4936_v34 = vpop.xlane.xlu0 %4935 }
0x1869   : > { %v4942_v56 = vmul.f32 %v4936_v34, %v6319_v31 }
0x186b   : > { %v7204_v6 = vsub.f32 %v4918_v14, %v4942_v56 }
0x186d   : > { %v4954_v30 = vmul.f32 %v7204_v6, %v7204_v6 }
0x186f   : > { %v4970_v41 = vsel %vm460_vm2, %v4954_v30, 0.0 }
0x1870   : > { %4971 = vadd.xlane.f32.xlu0 %v4970_v41  ;;  %v4960_v1 = vpop.xlane.xlu2 %4959 }
0x1871   : > { %v4974_v35 = vmul.f32 %v4960_v1, %v6319_v31 }
0x1873   : > { %v4980_v42 = vadd.f32 1e-05, %v4974_v35 }
0x1875   : > { %5733 = vrsqrt.f32 %v4980_v42  ;;  %vm5001_vm8 = vweird.f32 %v4980_v42 }
0x1878   : > { %v4963_v44 = vpop.xlane.xlu0 %4962 }
0x1879   : > { %v4975_v50 = vmul.f32 %v4963_v44, %v6319_v31 }
0x187b   : > { %v5734_v7 = vpop.eup %5733  ;;  %v4981_v37 = vadd.f32 1e-05, %v4975_v50 }
0x187c   : > { %v4996_v57 = vmul.f32 %v5734_v7, %v4980_v42  ;;  %vm5002_vm7 = vweird.f32 %v5734_v7 }
0x187d   : > { %5735 = vrsqrt.f32 %v4981_v37  ;;  %vm5003_vm9 = vmor %vm5001_vm8, %vm5002_vm7  ;;  %vm5011_vm11 = vweird.f32 %v4981_v37 }
0x187e   : > { %v4997_v24 = vmul.f32 %v5734_v7, %v4996_v57 }
0x1880   : > { %v4998_v13 = vmul.f32 0.5, %v4997_v24  ;;  %v4966_v19 = vpop.xlane.xlu1 %4965 }
0x1881   : > { %v4976_v29 = vmul.f32 %v4966_v19, %v6319_v31 }
0x1882   : > { %v4999_v17 = vsub.f32 1.5, %v4998_v13 }
0x1883   : > { %v5736_v61 = vpop.eup %5735  ;;  %v4982_v46 = vadd.f32 1e-05, %v4976_v29 }
0x1884   : > { %v5000_v51 = vmul.f32 %v5734_v7, %v4999_v17  ;;  %v5006_v5 = vmul.f32 %v5736_v61, %v4981_v37  ;;  %vm5012_vm10 = vweird.f32 %v5736_v61 }
0x1885   : > { %5737 = vrsqrt.f32 %v4982_v46  ;;  %vm5013_vm12 = vmor %vm5011_vm11, %vm5012_vm10  ;;  %vm5021_vm14 = vweird.f32 %v4982_v46 }
0x1886   : > { %v5004_v54 = vsel %vm5003_vm9, %v5734_v7, %v5000_v51  ;;  %v5007_v38 = vmul.f32 %v5736_v61, %v5006_v5 }
0x1887   : > { %v5046_v18 = vmul.f32 %v5004_v54, %v7168_v28 }
0x1888   : > { %v5008_v55 = vmul.f32 0.5, %v5007_v38  ;;  %v4969_v14 = vpop.xlane.xlu2 %4968 }
0x1889   : > { %v5052_v45 = vmul.f32 %v5046_v18, %v7065_v58  ;;  %v4977_v59 = vmul.f32 %v4969_v14, %v6319_v31 }
0x188a   : > { %v5009_v11 = vsub.f32 1.5, %v5008_v55 }
0x188b   : > { %v5738_v22 = vpop.eup %5737  ;;  %v5058_v43 = vadd.f32 %v5052_v45, %v7068_v23  ;;  %v4983_v32 = vadd.f32 1e-05, %v4977_v59 }
0x188c   : > { %v5010_v4 = vmul.f32 %v5736_v61, %v5009_v11  ;;  %v5016_v9 = vmul.f32 %v5738_v22, %v4982_v46  ;;  %vm5022_vm13 = vweird.f32 %v5738_v22 }
0x188d   : > { %5064 = vst.msk [vmem:[%s7198_s11 + $0x8] sm:$0xff] %vm460_vm2, %v5058_v43  ;;  %5739 = vrsqrt.f32 %v4983_v32  ;;  %vm5023_vm3 = vmor %vm5021_vm14, %vm5022_vm13  ;;  %vm5031_vm0 = vweird.f32 %v4983_v32 }
0x188e   : > { %v5014_v28 = vsel %vm5013_vm12, %v5736_v61, %v5010_v4  ;;  %v5017_v52 = vmul.f32 %v5738_v22, %v5016_v9 }
0x188f   : > { %v5047_v3 = vmul.f32 %v5014_v28, %v7174_v8 }
0x1890   : > { %v5018_v60 = vmul.f32 0.5, %v5017_v52 }
0x1891   : > { %v5053_v15 = vmul.f32 %v5047_v3, %v7065_v58 }
0x1892   : > { %v5019_v26 = vsub.f32 1.5, %v5018_v60 }
0x1893   : > { %v5740_v27 = vpop.eup %5739  ;;  %v5059_v33 = vadd.f32 %v5053_v15, %v7068_v23 }
0x1894   : > { %v5020_v63 = vmul.f32 %v5738_v22, %v5019_v26  ;;  %v5026_v21 = vmul.f32 %v5740_v27, %v4983_v32  ;;  %vm5032_vm15 = vweird.f32 %v5740_v27 }
0x1895   : > { %5065 = vst.msk [vmem:[%s7198_s11 + $0x10] sm:$0xff] %vm460_vm2, %v5059_v33  ;;  %vm5033_vm4 = vmor %vm5031_vm0, %vm5032_vm15 }
0x1896   : > { %v5024_v62 = vsel %vm5023_vm3, %v5738_v22, %v5020_v63  ;;  %v5027_v47 = vmul.f32 %v5740_v27, %v5026_v21 }
0x1897   : > { %v5048_v8 = vmul.f32 %v5024_v62, %v7180_v53 }
0x1898   : > { %v5028_v48 = vmul.f32 0.5, %v5027_v47 }
0x1899   : > { %v5054_v25 = vmul.f32 %v5048_v8, %v7065_v58 }
0x189a   : > { %v5029_v36 = vsub.f32 1.5, %v5028_v48 }
0x189b   : > { %v5060_v16 = vadd.f32 %v5054_v25, %v7068_v23 }
0x189c   : > { %v5030_v10 = vmul.f32 %v5740_v27, %v5029_v36 }
0x189d   : > { %5066 = vst.msk [vmem:[%s7198_s11 + $0x18] sm:$0xff] %vm460_vm2, %v5060_v16 }
0x189e   : > { %v5034_v0 = vsel %vm5033_vm4, %v5740_v27, %v5030_v10 }
0x189f   : > { %v5049_v20 = vmul.f32 %v5034_v0, %v7186_v39 }
0x18a1   : > { %v5055_v40 = vmul.f32 %v5049_v20, %v7065_v58 }
0x18a3   : > { %v5061_v2 = vadd.f32 %v5055_v40, %v7068_v23 }
0x18a5   : > { %5067 = vst.msk [vmem:[%s7198_s11 + $0x20] sm:$0xff] %vm460_vm2, %v5061_v2 }
0x18e3   : > { %v4972_v53 = vpop.xlane.xlu0 %4971 }
0x18e4   : > { %v4978_v49 = vmul.f32 %v4972_v53, %v6319_v31 }
0x18e6   : > { %v4984_v12 = vadd.f32 1e-05, %v4978_v49 }
0x18e8   : > { %5741 = vrsqrt.f32 %v4984_v12  ;;  %vm5041_vm5 = vweird.f32 %v4984_v12 }
0x18ee   : > { %v5742_v34 = vpop.eup %5741 }
0x18ef   : > { %v5036_v56 = vmul.f32 %v5742_v34, %v4984_v12  ;;  %vm5042_vm1 = vweird.f32 %v5742_v34 }
0x18f0   : > { %vm5043_vm6 = vmor %vm5041_vm5, %vm5042_vm1 }
0x18f1   : > { %v5037_v30 = vmul.f32 %v5742_v34, %v5036_v56 }
0x18f3   : > { %v5038_v41 = vmul.f32 0.5, %v5037_v30 }
0x18f5   : > { %v5039_v1 = vsub.f32 1.5, %v5038_v41 }
0x18f7   : > { %v5040_v35 = vmul.f32 %v5742_v34, %v5039_v1 }
0x18f9   : > { %v5044_v39 = vsel %vm5043_vm6, %v5742_v34, %v5040_v35 }
0x18fa   : > { %v5050_v42 = vmul.f32 %v5044_v39, %v7204_v6 }
0x18fc   : > { %v5056_v44 = vmul.f32 %v5050_v42, %v7065_v58 }
0x18fe   : > { %v5062_v50 = vadd.f32 %v5056_v44, %v7068_v23 }
0x1900   : > { %5068 = vst.msk [vmem:[%s7198_s11 + $0x28] sm:$0xff] %vm460_vm2, %v5062_v50 }
0x1901 PF: > { %s20_s13 = sadd.s32 1, %s5749_s13  }
0x1902   : > { %p17_p4 = scmp.ge.s32.totalorder %s20_s13, 4  }
0x1904   :  { %19 = sbr.rel (!%p17_p4) target bundleno = 1 (0x1), region = 97 }

</bundles_post_ra>
